<compile_context>
chip_gen: v7x
topology: tpu7x:2x2x1
jax: 0.10.0
libtpu: 0.0.40
codegen_flags: <defaults>
</compile_context>

<pallas_src>
import functools
import math

import jax
import jax.numpy as jnp
from jax.experimental import pallas as pl

# ----------------------------- model config ---------------------------------
HID = 32          # hid_dim
HEADS = 4         # n_heads
HEAD_DIM = HID // HEADS
PF = 64           # pf_dim
N_LAYERS = 2
INP_DIM = 20      # source vocab
OUT_DIM = 22      # target vocab
PAD_IDX = 0
EPS = 1e-5        # torch.nn.LayerNorm default
NEG_INF = -1e10   # masked_fill value used by the reference
INV_SCALE = 1.0 / math.sqrt(HEAD_DIM)


# --------------------------- in-kernel helpers --------------------------------
def _layernorm(y, g, b):
    mu = jnp.mean(y, axis=-1, keepdims=True)
    var = jnp.mean((y - mu) ** 2, axis=-1, keepdims=True)
    return (y - mu) * jax.lax.rsqrt(var + EPS) * g + b


def _mha(x_q, x_kv, mask, wq, bq, wk, bk, wv, bv, wo, bo, attn_ref, *, B, Lq, Lk):
    """Full multi-head attention sub-layer, all heads batched in-kernel.

    x_q: (B*Lq, HID), x_kv: (B*Lk, HID), mask: (B, Lq, Lk) float {0,1}.
    Writes per-head softmax maps to attn_ref of shape (HEADS, B, Lq, Lk).
    Returns fc_o(multi-head context): (B*Lq, HID).
    """
    q = jnp.dot(x_q, wq, preferred_element_type=jnp.float32) + bq
    k = jnp.dot(x_kv, wk, preferred_element_type=jnp.float32) + bk
    v = jnp.dot(x_kv, wv, preferred_element_type=jnp.float32) + bv

    q3 = q.reshape(B, Lq, HID)      # tile-compatible leading-dim reshape
    k3 = k.reshape(B, Lk, HID)
    v3 = v.reshape(B, Lk, HID)

    col = jax.lax.broadcasted_iota(jnp.int32, (1, 1, HID), 2)
    ctx = jnp.zeros((B, Lq, HID), jnp.float32)
    for h in range(HEADS):          # static unroll (4 heads)
        # {0,1} mask selecting head h's feature columns (no lane slicing).
        hm = ((col >= h * HEAD_DIM) &
              (col < (h + 1) * HEAD_DIM)).astype(jnp.float32)
        qh = q3 * hm
        vh = v3 * hm
        # zeroed columns contribute 0 => exactly head-h's Q @ K^T
        e = jnp.einsum("bqd,bkd->bqk", qh, k3,
                       preferred_element_type=jnp.float32) * INV_SCALE
        e = jnp.where(mask > 0.0, e, NEG_INF)
        m = jnp.max(e, axis=-1, keepdims=True)
        p = jnp.exp(e - m)
        s = jnp.sum(p, axis=-1, keepdims=True)
        a = p / s
        attn_ref[h] = a.astype(attn_ref.dtype)
        # attn @ V_masked is nonzero only in head h's columns -> disjoint sum
        # builds the concatenated multi-head context in lane-dense layout.
        ctx = ctx + jnp.einsum("bqk,bkd->bqd", a, vh,
                               preferred_element_type=jnp.float32)

    ctx2 = ctx.reshape(B * Lq, HID)
    return jnp.dot(ctx2, wo, preferred_element_type=jnp.float32) + bo


# ----------------------------- Pallas kernels --------------------------------
def _encoder_layer_kernel(x_ref, m_ref,
                          wq_ref, bq_ref, wk_ref, bk_ref, wv_ref, bv_ref,
                          wo_ref, bo_ref, g1_ref, be1_ref,
                          w1_ref, fb1_ref, w2_ref, fb2_ref, g2_ref, be2_ref,
                          o_ref, attn_ref, *, B, L):
    x = x_ref[...]                                         # (B*L, HID)
    ao = _mha(x, x, m_ref[...],
              wq_ref[...], bq_ref[...], wk_ref[...], bk_ref[...],
              wv_ref[...], bv_ref[...], wo_ref[...], bo_ref[...],
              attn_ref, B=B, Lq=L, Lk=L)
    y = _layernorm(x + ao, g1_ref[...], be1_ref[...])
    h1 = jnp.maximum(jnp.dot(y, w1_ref[...],
                             preferred_element_type=jnp.float32) + fb1_ref[...], 0.0)
    f = jnp.dot(h1, w2_ref[...], preferred_element_type=jnp.float32) + fb2_ref[...]
    o_ref[...] = _layernorm(y + f, g2_ref[...], be2_ref[...]).astype(o_ref.dtype)


def _decoder_layer_kernel(x_ref, enc_ref, tm_ref, sm_ref,
                          swq_ref, sbq_ref, swk_ref, sbk_ref, swv_ref, sbv_ref,
                          swo_ref, sbo_ref, g1_ref, be1_ref,
                          ewq_ref, ebq_ref, ewk_ref, ebk_ref, ewv_ref, ebv_ref,
                          ewo_ref, ebo_ref, g2_ref, be2_ref,
                          w1_ref, fb1_ref, w2_ref, fb2_ref, g3_ref, be3_ref,
                          o_ref, sattn_ref, eattn_ref, *, B, Lt, Ls):
    x = x_ref[...]                                         # (B*Lt, HID)
    enc = enc_ref[...]                                     # (B*Ls, HID)
    # --- masked self-attention ---
    ao = _mha(x, x, tm_ref[...],
              swq_ref[...], sbq_ref[...], swk_ref[...], sbk_ref[...],
              swv_ref[...], sbv_ref[...], swo_ref[...], sbo_ref[...],
              sattn_ref, B=B, Lq=Lt, Lk=Lt)
    y = _layernorm(x + ao, g1_ref[...], be1_ref[...])
    # --- encoder-decoder attention ---
    ao2 = _mha(y, enc, sm_ref[...],
               ewq_ref[...], ebq_ref[...], ewk_ref[...], ebk_ref[...],
               ewv_ref[...], ebv_ref[...], ewo_ref[...], ebo_ref[...],
               eattn_ref, B=B, Lq=Lt, Lk=Ls)
    y2 = _layernorm(y + ao2, g2_ref[...], be2_ref[...])
    # --- feed-forward ---
    h1 = jnp.maximum(jnp.dot(y2, w1_ref[...],
                             preferred_element_type=jnp.float32) + fb1_ref[...], 0.0)
    f = jnp.dot(h1, w2_ref[...], preferred_element_type=jnp.float32) + fb2_ref[...]
    o_ref[...] = _layernorm(y2 + f, g3_ref[...], be3_ref[...]).astype(o_ref.dtype)


def _linear_kernel(x_ref, w_ref, b_ref, o_ref):
    o_ref[...] = (jnp.dot(x_ref[...], w_ref[...],
                          preferred_element_type=jnp.float32)
                  + b_ref[...]).astype(o_ref.dtype)


# ----------------------------- layer wrappers ---------------------------------
def _b2(v):
    return v.reshape(1, -1)


def encoder_layer(p, x2, mask_f, B, L):
    sa, ff = p["self_attn"], p["ff"]
    out, attn = pl.pallas_call(
        functools.partial(_encoder_layer_kernel, B=B, L=L),
        out_shape=(jax.ShapeDtypeStruct((B * L, HID), jnp.float32),
                   jax.ShapeDtypeStruct((HEADS, B, L, L), jnp.float32)),
    )(x2, mask_f,
      sa["wq"], _b2(sa["bq"]), sa["wk"], _b2(sa["bk"]),
      sa["wv"], _b2(sa["bv"]), sa["wo"], _b2(sa["bo"]),
      _b2(p["self_attn_norm_g"]), _b2(p["self_attn_norm_b"]),
      ff["w1"], _b2(ff["b1"]), ff["w2"], _b2(ff["b2"]),
      _b2(p["ff_norm_g"]), _b2(p["ff_norm_b"]))
    return out, jnp.transpose(attn, (1, 0, 2, 3))          # (B, H, L, L)


def decoder_layer(p, x2, enc2, trg_mask_f, cross_mask_f, B, Lt, Ls):
    sa, ea, ff = p["self_attn"], p["enc_attn"], p["ff"]
    out, sattn, eattn = pl.pallas_call(
        functools.partial(_decoder_layer_kernel, B=B, Lt=Lt, Ls=Ls),
        out_shape=(jax.ShapeDtypeStruct((B * Lt, HID), jnp.float32),
                   jax.ShapeDtypeStruct((HEADS, B, Lt, Lt), jnp.float32),
                   jax.ShapeDtypeStruct((HEADS, B, Lt, Ls), jnp.float32)),
    )(x2, enc2, trg_mask_f, cross_mask_f,
      sa["wq"], _b2(sa["bq"]), sa["wk"], _b2(sa["bk"]),
      sa["wv"], _b2(sa["bv"]), sa["wo"], _b2(sa["bo"]),
      _b2(p["self_attn_norm_g"]), _b2(p["self_attn_norm_b"]),
      ea["wq"], _b2(ea["bq"]), ea["wk"], _b2(ea["bk"]),
      ea["wv"], _b2(ea["bv"]), ea["wo"], _b2(ea["bo"]),
      _b2(p["enc_attn_norm_g"]), _b2(p["enc_attn_norm_b"]),
      ff["w1"], _b2(ff["b1"]), ff["w2"], _b2(ff["b2"]),
      _b2(p["ff_norm_g"]), _b2(p["ff_norm_b"]))
    return (out,
            jnp.transpose(sattn, (1, 0, 2, 3)),
            jnp.transpose(eattn, (1, 0, 2, 3)))


# ----------------------------- full model ------------------------------------
def encoder(p, src, src_pad):
    B, L = src.shape
    pos = jnp.broadcast_to(jnp.arange(L)[None, :], (B, L))
    x = jnp.take(p["tok_embs"], src, axis=0) * jnp.sqrt(jnp.float32(HID))
    x = x + jnp.take(p["pos_embs"], pos, axis=0)
    x2 = x.reshape(B * L, HID)
    # compact (B, Lq, Lk) float mask — NOT broadcast over heads
    mask_f = jnp.broadcast_to(src_pad[:, None, :], (B, L, L)).astype(jnp.float32)
    attns = []
    for lp in p["layers"]:
        x2, a = encoder_layer(lp, x2, mask_f, B, L)
        attns.append(a)
    return x2, attns


def decoder(p, trg, trg_mask_f, src_enc2, src_pad, B, Lt, Ls):
    pos = jnp.broadcast_to(jnp.arange(Lt)[None, :], (B, Lt))
    x = jnp.take(p["tok_embs"], trg, axis=0) * jnp.sqrt(jnp.float32(HID))
    x = x + jnp.take(p["pos_embs"], pos, axis=0)
    x2 = x.reshape(B * Lt, HID)
    cross_mask_f = jnp.broadcast_to(src_pad[:, None, :], (B, Lt, Ls)).astype(jnp.float32)
    sattns, eattns = [], []
    for lp in p["layers"]:
        x2, sa, ea = decoder_layer(lp, x2, src_enc2, trg_mask_f, cross_mask_f, B, Lt, Ls)
        sattns.append(sa)
        eattns.append(ea)
    logits = pl.pallas_call(
        _linear_kernel,
        out_shape=jax.ShapeDtypeStruct((B * Lt, OUT_DIM), jnp.float32),
    )(x2, p["fc_out_w"], _b2(p["fc_out_b"]))
    return logits.reshape(B, Lt, OUT_DIM), sattns, eattns


def model_forward(params, src, trg):
    B, Ls = src.shape
    _, Lt = trg.shape
    src_pad = (src != PAD_IDX)                                   # (B, Ls)
    trg_pad = (trg != PAD_IDX)                                   # (B, Lt)
    sub = jnp.tril(jnp.ones((Lt, Lt), dtype=bool))
    trg_mask_f = (trg_pad[:, None, :] & sub[None]).astype(jnp.float32)   # (B,Lt,Lt)
    src_enc2, enc_self = encoder(params["encoder"], src, src_pad)
    out, dec_self, enc_dec = decoder(params["decoder"], trg, trg_mask_f,
                                     src_enc2, src_pad, B, Lt, Ls)
    return out, enc_self, dec_self, enc_dec


# ------------------------- pure-JAX reference (check) -------------------------
def _ref_ln(x, g, b):
    mu = x.mean(-1, keepdims=True)
    var = ((x - mu) ** 2).mean(-1, keepdims=True)
    return (x - mu) / jnp.sqrt(var + EPS) * g + b


def _ref_mha(p, query, key, value, mask):
    B, Lq, _ = query.shape
    Q = query @ p["wq"] + p["bq"]
    K = key @ p["wk"] + p["bk"]
    V = value @ p["wv"] + p["bv"]
    sh = lambda x: x.reshape(B, -1, HEADS, HEAD_DIM).transpose(0, 2, 1, 3)
    Qh, Kh, Vh = sh(Q), sh(K), sh(V)
    energy = jnp.einsum("bhqd,bhkd->bhqk", Qh, Kh) / math.sqrt(HEAD_DIM)
    energy = jnp.where(mask, energy, NEG_INF)
    attn = jax.nn.softmax(energy, axis=-1)
    x = jnp.einsum("bhqk,bhkd->bhqd", attn, Vh)
    x = x.transpose(0, 2, 1, 3).reshape(B, Lq, HID)
    return x @ p["wo"] + p["bo"], attn


def _ref_enc_layer(p, x, mask):
    ax, a = _ref_mha(p["self_attn"], x, x, x, mask)
    x = _ref_ln(x + ax, p["self_attn_norm_g"], p["self_attn_norm_b"])
    f = jnp.maximum(x @ p["ff"]["w1"] + p["ff"]["b1"], 0.0) @ p["ff"]["w2"] + p["ff"]["b2"]
    return _ref_ln(x + f, p["ff_norm_g"], p["ff_norm_b"]), a


def _ref_dec_layer(p, x, mask, enc, src_mask):
    ax, sa = _ref_mha(p["self_attn"], x, x, x, mask)
    x = _ref_ln(x + ax, p["self_attn_norm_g"], p["self_attn_norm_b"])
    ax, ea = _ref_mha(p["enc_attn"], x, enc, enc, src_mask)
    x = _ref_ln(x + ax, p["enc_attn_norm_g"], p["enc_attn_norm_b"])
    f = jnp.maximum(x @ p["ff"]["w1"] + p["ff"]["b1"], 0.0) @ p["ff"]["w2"] + p["ff"]["b2"]
    return _ref_ln(x + f, p["ff_norm_g"], p["ff_norm_b"]), sa, ea


def reference_forward(params, src, trg):
    B, Ls = src.shape
    _, Lt = trg.shape
    src_mask = (src != PAD_IDX)[:, None, None, :]
    sub = jnp.tril(jnp.ones((Lt, Lt), dtype=bool))
    trg_mask = (trg != PAD_IDX)[:, None, None, :] & sub[None, None]
    ep, dp = params["encoder"], params["decoder"]
    x = jnp.take(ep["tok_embs"], src, axis=0) * jnp.sqrt(jnp.float32(HID))
    x = x + jnp.take(ep["pos_embs"],
                     jnp.broadcast_to(jnp.arange(Ls)[None], (B, Ls)), axis=0)
    enc_attns = []
    for lp in ep["layers"]:
        x, a = _ref_enc_layer(lp, x, src_mask)
        enc_attns.append(a)
    enc = x
    y = jnp.take(dp["tok_embs"], trg, axis=0) * jnp.sqrt(jnp.float32(HID))
    y = y + jnp.take(dp["pos_embs"],
                     jnp.broadcast_to(jnp.arange(Lt)[None], (B, Lt)), axis=0)
    sattns, eattns = [], []
    for lp in dp["layers"]:
        y, sa, ea = _ref_dec_layer(lp, y, trg_mask, enc, src_mask)
        sattns.append(sa)
        eattns.append(ea)
    return y @ dp["fc_out_w"] + dp["fc_out_b"], enc_attns, sattns, eattns


# ----------------------------- parameter init --------------------------------
def _xavier(key, shape):
    fan_in, fan_out = shape[0], shape[1]
    limit = math.sqrt(6.0 / (fan_in + fan_out))
    return jax.random.uniform(key, shape, jnp.float32, -limit, limit)


def _mha_params(key):
    ks = jax.random.split(key, 4)
    return dict(
        wq=_xavier(ks[0], (HID, HID)), bq=jnp.zeros((HID,), jnp.float32),
        wk=_xavier(ks[1], (HID, HID)), bk=jnp.zeros((HID,), jnp.float32),
        wv=_xavier(ks[2], (HID, HID)), bv=jnp.zeros((HID,), jnp.float32),
        wo=_xavier(ks[3], (HID, HID)), bo=jnp.zeros((HID,), jnp.float32),
    )


def _ff_params(key):
    k1, k2 = jax.random.split(key)
    return dict(
        w1=_xavier(k1, (HID, PF)), b1=jnp.zeros((PF,), jnp.float32),
        w2=_xavier(k2, (PF, HID)), b2=jnp.zeros((HID,), jnp.float32),
    )


def _enc_layer_params(key):
    k1, k2 = jax.random.split(key)
    return dict(
        self_attn=_mha_params(k1), ff=_ff_params(k2),
        self_attn_norm_g=jnp.ones((HID,), jnp.float32),
        self_attn_norm_b=jnp.zeros((HID,), jnp.float32),
        ff_norm_g=jnp.ones((HID,), jnp.float32),
        ff_norm_b=jnp.zeros((HID,), jnp.float32),
    )


def _dec_layer_params(key):
    k1, k2, k3 = jax.random.split(key, 3)
    return dict(
        self_attn=_mha_params(k1), enc_attn=_mha_params(k2), ff=_ff_params(k3),
        self_attn_norm_g=jnp.ones((HID,), jnp.float32),
        self_attn_norm_b=jnp.zeros((HID,), jnp.float32),
        enc_attn_norm_g=jnp.ones((HID,), jnp.float32),
        enc_attn_norm_b=jnp.zeros((HID,), jnp.float32),
        ff_norm_g=jnp.ones((HID,), jnp.float32),
        ff_norm_b=jnp.zeros((HID,), jnp.float32),
    )


def init_params(key, max_len):
    k_et, k_ep, k_dt, k_dp, k_o, k_el, k_dl = jax.random.split(key, 7)
    return dict(
        encoder=dict(
            tok_embs=_xavier(k_et, (INP_DIM, HID)),
            pos_embs=_xavier(k_ep, (max_len, HID)),
            layers=[_enc_layer_params(k) for k in jax.random.split(k_el, N_LAYERS)],
        ),
        decoder=dict(
            tok_embs=_xavier(k_dt, (OUT_DIM, HID)),
            pos_embs=_xavier(k_dp, (max_len, HID)),
            fc_out_w=_xavier(k_o, (HID, OUT_DIM)),
            fc_out_b=jnp.zeros((OUT_DIM,), jnp.float32),
            layers=[_dec_layer_params(k) for k in jax.random.split(k_dl, N_LAYERS)],
        ),
    )


# TODO(synk): greedy_generate / beam_generate are host-side autoregressive loops
# around this forward pass; they are not kernel work and are not reimplemented.

# ----------------------------------- main ------------------------------------
if __name__ == "__main__":
    MAX_LEN = 16
    B, L_SRC, L_TRG = 2, 8, 8

    key = jax.random.PRNGKey(0)
    k_param, k_src, k_trg = jax.random.split(key, 3)
    params = init_params(k_param, MAX_LEN)

    src = jax.random.randint(k_src, (B, L_SRC), 1, INP_DIM, dtype=jnp.int32)
    trg = jax.random.randint(k_trg, (B, L_TRG), 1, OUT_DIM, dtype=jnp.int32)
    # introduce some padding to exercise the masks
    src = src.at[1, 6:].set(PAD_IDX)
    trg = trg.at[0, 7:].set(PAD_IDX)

    fwd = jax.jit(lambda s, t: model_forward(params, s, t))
    out, enc_self, dec_self, enc_dec = fwd(src, trg)
    jax.block_until_ready(out)

    # shape checks
    assert out.shape == (B, L_TRG, OUT_DIM)
    assert len(enc_self) == N_LAYERS
    assert enc_self[0].shape == (B, HEADS, L_SRC, L_SRC)
    assert dec_self[0].shape == (B, HEADS, L_TRG, L_TRG)
    assert enc_dec[0].shape == (B, HEADS, L_TRG, L_SRC)
    assert bool(jnp.all(jnp.isfinite(out)))

    # numeric check against a pure-JAX reference of the PyTorch module
    r_out, r_enc, r_dec, r_xdec = reference_forward(params, src, trg)
    assert bool(jnp.allclose(out, r_out, atol=1e-3, rtol=1e-3))
    for a, r in zip(enc_self, r_enc):
        assert bool(jnp.allclose(a, r, atol=1e-3, rtol=1e-3))
    for a, r in zip(dec_self, r_dec):
        assert bool(jnp.allclose(a, r, atol=1e-3, rtol=1e-3))
    for a, r in zip(enc_dec, r_xdec):
        assert bool(jnp.allclose(a, r, atol=1e-3, rtol=1e-3))

    print("KERNEL_OK")
</pallas_src>

<mosaic_0001>
module attributes {stable_mosaic.version = 11 : i64} {
  func.func @_encoder_layer_kernel(%arg0: memref<16x32xf32, #tpu.memory_space<vmem>>, %arg1: memref<2x8x8xf32, #tpu.memory_space<vmem>>, %arg2: memref<32x32xf32, #tpu.memory_space<vmem>>, %arg3: memref<1x32xf32, #tpu.memory_space<vmem>>, %arg4: memref<32x32xf32, #tpu.memory_space<vmem>>, %arg5: memref<1x32xf32, #tpu.memory_space<vmem>>, %arg6: memref<32x32xf32, #tpu.memory_space<vmem>>, %arg7: memref<1x32xf32, #tpu.memory_space<vmem>>, %arg8: memref<32x32xf32, #tpu.memory_space<vmem>>, %arg9: memref<1x32xf32, #tpu.memory_space<vmem>>, %arg10: memref<1x32xf32, #tpu.memory_space<vmem>>, %arg11: memref<1x32xf32, #tpu.memory_space<vmem>>, %arg12: memref<32x64xf32, #tpu.memory_space<vmem>>, %arg13: memref<1x64xf32, #tpu.memory_space<vmem>>, %arg14: memref<64x32xf32, #tpu.memory_space<vmem>>, %arg15: memref<1x32xf32, #tpu.memory_space<vmem>>, %arg16: memref<1x32xf32, #tpu.memory_space<vmem>>, %arg17: memref<1x32xf32, #tpu.memory_space<vmem>>, %arg18: memref<16x32xf32, #tpu.memory_space<vmem>>, %arg19: memref<4x2x8x8xf32, #tpu.memory_space<vmem>>) attributes {dimension_semantics = [], scalar_prefetch = 0 : i64, scratch_operands = 0 : i64, tpu.core_type = #tpu.core_type<tc>} {
    %c0 = arith.constant 0 : index
    %c0_0 = arith.constant 0 : index
    %0 = vector.load %arg0[%c0, %c0_0] : memref<16x32xf32, #tpu.memory_space<vmem>>, vector<16x32xf32>
    %c0_1 = arith.constant 0 : index
    %c0_2 = arith.constant 0 : index
    %c0_3 = arith.constant 0 : index
    %1 = vector.load %arg1[%c0_1, %c0_2, %c0_3] : memref<2x8x8xf32, #tpu.memory_space<vmem>>, vector<2x8x8xf32>
    %c0_4 = arith.constant 0 : index
    %c0_5 = arith.constant 0 : index
    %2 = vector.load %arg2[%c0_4, %c0_5] : memref<32x32xf32, #tpu.memory_space<vmem>>, vector<32x32xf32>
    %c0_6 = arith.constant 0 : index
    %c0_7 = arith.constant 0 : index
    %3 = vector.load %arg3[%c0_6, %c0_7] : memref<1x32xf32, #tpu.memory_space<vmem>>, vector<1x32xf32>
    %c0_8 = arith.constant 0 : index
    %c0_9 = arith.constant 0 : index
    %4 = vector.load %arg4[%c0_8, %c0_9] : memref<32x32xf32, #tpu.memory_space<vmem>>, vector<32x32xf32>
    %c0_10 = arith.constant 0 : index
    %c0_11 = arith.constant 0 : index
    %5 = vector.load %arg5[%c0_10, %c0_11] : memref<1x32xf32, #tpu.memory_space<vmem>>, vector<1x32xf32>
    %c0_12 = arith.constant 0 : index
    %c0_13 = arith.constant 0 : index
    %6 = vector.load %arg6[%c0_12, %c0_13] : memref<32x32xf32, #tpu.memory_space<vmem>>, vector<32x32xf32>
    %c0_14 = arith.constant 0 : index
    %c0_15 = arith.constant 0 : index
    %7 = vector.load %arg7[%c0_14, %c0_15] : memref<1x32xf32, #tpu.memory_space<vmem>>, vector<1x32xf32>
    %c0_16 = arith.constant 0 : index
    %c0_17 = arith.constant 0 : index
    %8 = vector.load %arg8[%c0_16, %c0_17] : memref<32x32xf32, #tpu.memory_space<vmem>>, vector<32x32xf32>
    %c0_18 = arith.constant 0 : index
    %c0_19 = arith.constant 0 : index
    %9 = vector.load %arg9[%c0_18, %c0_19] : memref<1x32xf32, #tpu.memory_space<vmem>>, vector<1x32xf32>
    %cst = arith.constant dense<0.000000e+00> : vector<16x32xf32>
    %10 = tpu.matmul %0, %2, %cst {dimension_numbers = #tpu.dot_dimension_numbers<[1], [0], [0], [1], [0, 0, 1, 1], [], []>} : vector<16x32xf32>, vector<32x32xf32>, vector<16x32xf32> -> vector<16x32xf32>
    %11 = vector.broadcast %3 : vector<1x32xf32> to vector<16x32xf32>
    %12 = arith.addf %10, %11 : vector<16x32xf32>
    %cst_20 = arith.constant dense<0.000000e+00> : vector<16x32xf32>
    %13 = tpu.matmul %0, %4, %cst_20 {dimension_numbers = #tpu.dot_dimension_numbers<[1], [0], [0], [1], [0, 0, 1, 1], [], []>} : vector<16x32xf32>, vector<32x32xf32>, vector<16x32xf32> -> vector<16x32xf32>
    %14 = vector.broadcast %5 : vector<1x32xf32> to vector<16x32xf32>
    %15 = arith.addf %13, %14 : vector<16x32xf32>
    %cst_21 = arith.constant dense<0.000000e+00> : vector<16x32xf32>
    %16 = tpu.matmul %0, %6, %cst_21 {dimension_numbers = #tpu.dot_dimension_numbers<[1], [0], [0], [1], [0, 0, 1, 1], [], []>} : vector<16x32xf32>, vector<32x32xf32>, vector<16x32xf32> -> vector<16x32xf32>
    %17 = vector.broadcast %7 : vector<1x32xf32> to vector<16x32xf32>
    %18 = arith.addf %16, %17 : vector<16x32xf32>
    %19 = vector.shape_cast %12 : vector<16x32xf32> to vector<2x8x32xf32>
    %20 = vector.shape_cast %15 : vector<16x32xf32> to vector<2x8x32xf32>
    %21 = vector.shape_cast %18 : vector<16x32xf32> to vector<2x8x32xf32>
    %22 = tpu.iota {dimensions = array<i32: 2>} : vector<1x1x32xi32>
    %cst_22 = arith.constant 0.000000e+00 : f32
    %23 = vector.broadcast %cst_22 : f32 to vector<2x8x32xf32>
    %c0_i32 = arith.constant 0 : i32
    %24 = vector.broadcast %c0_i32 : i32 to vector<1x1x32xi32>
    %25 = arith.cmpi sge, %22, %24 : vector<1x1x32xi32>
    %c8_i32 = arith.constant 8 : i32
    %26 = vector.broadcast %c8_i32 : i32 to vector<1x1x32xi32>
    %27 = arith.cmpi slt, %22, %26 : vector<1x1x32xi32>
    %28 = arith.andi %25, %27 : vector<1x1x32xi1>
    %29 = arith.extui %28 : vector<1x1x32xi1> to vector<1x1x32xi32>
    %30 = arith.sitofp %29 : vector<1x1x32xi32> to vector<1x1x32xf32>
    %31 = vector.broadcast %30 : vector<1x1x32xf32> to vector<2x8x32xf32>
    %32 = arith.mulf %19, %31 : vector<2x8x32xf32>
    %33 = vector.broadcast %30 : vector<1x1x32xf32> to vector<2x8x32xf32>
    %34 = arith.mulf %21, %33 : vector<2x8x32xf32>
    "tpu.trace_start"() <{level = 10 : i32, message = "bqd,bkd->bqk"}> : () -> ()
    %cst_23 = arith.constant dense<0.000000e+00> : vector<2x8x8xf32>
    %35 = tpu.matmul %32, %20, %cst_23 {dimension_numbers = #tpu.dot_dimension_numbers<[2], [2], [1], [1], [0, 0, 0, 1, 1, 1], [0], [0]>} : vector<2x8x32xf32>, vector<2x8x32xf32>, vector<2x8x8xf32> -> vector<2x8x8xf32>
    "tpu.trace_stop"() : () -> ()
    %cst_24 = arith.constant 0.353553385 : f32
    %36 = vector.broadcast %cst_24 : f32 to vector<2x8x8xf32>
    %37 = arith.mulf %35, %36 : vector<2x8x8xf32>
    %cst_25 = arith.constant 0.000000e+00 : f32
    %38 = vector.broadcast %cst_25 : f32 to vector<2x8x8xf32>
    %39 = arith.cmpf ogt, %1, %38 : vector<2x8x8xf32>
    %cst_26 = arith.constant -1.000000e+10 : f32
    %40 = vector.broadcast %cst_26 : f32 to vector<2x8x8xf32>
    %41 = arith.select %39, %37, %40 : vector<2x8x8xi1>, vector<2x8x8xf32>
    %cst_27 = arith.constant dense<0xFF800000> : vector<2x8xf32>
    %42 = vector.multi_reduction <maximumf>, %41, %cst_27 [2] : vector<2x8x8xf32> to vector<2x8xf32>
    %43 = vector.shape_cast %42 : vector<2x8xf32> to vector<2x8x1xf32>
    %44 = vector.broadcast %43 : vector<2x8x1xf32> to vector<2x8x8xf32>
    %45 = arith.subf %41, %44 : vector<2x8x8xf32>
    %46 = math.exp %45 : vector<2x8x8xf32>
    %cst_28 = arith.constant dense<0.000000e+00> : vector<2x8xf32>
    %47 = vector.multi_reduction <add>, %46, %cst_28 [2] : vector<2x8x8xf32> to vector<2x8xf32>
    %48 = vector.shape_cast %47 : vector<2x8xf32> to vector<2x8x1xf32>
    %49 = vector.broadcast %48 : vector<2x8x1xf32> to vector<2x8x8xf32>
    %50 = arith.divf %46, %49 : vector<2x8x8xf32>
    %c0_29 = arith.constant 0 : index
    %c0_30 = arith.constant 0 : index
    %c0_31 = arith.constant 0 : index
    %c0_32 = arith.constant 0 : index
    %51 = vector.load %arg19[%c0_29, %c0_30, %c0_31, %c0_32] : memref<4x2x8x8xf32, #tpu.memory_space<vmem>>, vector<1x2x8x8xf32>
    %52 = vector.shape_cast %51 : vector<1x2x8x8xf32> to vector<2x8x8xf32>
    %53 = vector.shape_cast %50 : vector<2x8x8xf32> to vector<1x2x8x8xf32>
    tpu.vector_store %arg19[%c0_29, %c0_30, %c0_31, %c0_32], %53 {strides = array<i32>} : memref<4x2x8x8xf32, #tpu.memory_space<vmem>>, vector<1x2x8x8xf32>,
    "tpu.trace_start"() <{level = 10 : i32, message = "bqk,bkd->bqd"}> : () -> ()
    %cst_33 = arith.constant dense<0.000000e+00> : vector<2x8x32xf32>
    %54 = tpu.matmul %50, %34, %cst_33 {dimension_numbers = #tpu.dot_dimension_numbers<[2], [1], [1], [2], [0, 0, 0, 1, 1, 2], [0], [0]>} : vector<2x8x8xf32>, vector<2x8x32xf32>, vector<2x8x32xf32> -> vector<2x8x32xf32>
    "tpu.trace_stop"() : () -> ()
    %55 = arith.addf %23, %54 : vector<2x8x32xf32>
    %c8_i32_34 = arith.constant 8 : i32
    %56 = vector.broadcast %c8_i32_34 : i32 to vector<1x1x32xi32>
    %57 = arith.cmpi sge, %22, %56 : vector<1x1x32xi32>
    %c16_i32 = arith.constant 16 : i32
    %58 = vector.broadcast %c16_i32 : i32 to vector<1x1x32xi32>
    %59 = arith.cmpi slt, %22, %58 : vector<1x1x32xi32>
    %60 = arith.andi %57, %59 : vector<1x1x32xi1>
    %61 = arith.extui %60 : vector<1x1x32xi1> to vector<1x1x32xi32>
    %62 = arith.sitofp %61 : vector<1x1x32xi32> to vector<1x1x32xf32>
    %63 = vector.broadcast %62 : vector<1x1x32xf32> to vector<2x8x32xf32>
    %64 = arith.mulf %19, %63 : vector<2x8x32xf32>
    %65 = vector.broadcast %62 : vector<1x1x32xf32> to vector<2x8x32xf32>
    %66 = arith.mulf %21, %65 : vector<2x8x32xf32>
    "tpu.trace_start"() <{level = 10 : i32, message = "bqd,bkd->bqk"}> : () -> ()
    %cst_35 = arith.constant dense<0.000000e+00> : vector<2x8x8xf32>
    %67 = tpu.matmul %64, %20, %cst_35 {dimension_numbers = #tpu.dot_dimension_numbers<[2], [2], [1], [1], [0, 0, 0, 1, 1, 1], [0], [0]>} : vector<2x8x32xf32>, vector<2x8x32xf32>, vector<2x8x8xf32> -> vector<2x8x8xf32>
    "tpu.trace_stop"() : () -> ()
    %cst_36 = arith.constant 0.353553385 : f32
    %68 = vector.broadcast %cst_36 : f32 to vector<2x8x8xf32>
    %69 = arith.mulf %67, %68 : vector<2x8x8xf32>
    %cst_37 = arith.constant 0.000000e+00 : f32
    %70 = vector.broadcast %cst_37 : f32 to vector<2x8x8xf32>
    %71 = arith.cmpf ogt, %1, %70 : vector<2x8x8xf32>
    %cst_38 = arith.constant -1.000000e+10 : f32
    %72 = vector.broadcast %cst_38 : f32 to vector<2x8x8xf32>
    %73 = arith.select %71, %69, %72 : vector<2x8x8xi1>, vector<2x8x8xf32>
    %cst_39 = arith.constant dense<0xFF800000> : vector<2x8xf32>
    %74 = vector.multi_reduction <maximumf>, %73, %cst_39 [2] : vector<2x8x8xf32> to vector<2x8xf32>
    %75 = vector.shape_cast %74 : vector<2x8xf32> to vector<2x8x1xf32>
    %76 = vector.broadcast %75 : vector<2x8x1xf32> to vector<2x8x8xf32>
    %77 = arith.subf %73, %76 : vector<2x8x8xf32>
    %78 = math.exp %77 : vector<2x8x8xf32>
    %cst_40 = arith.constant dense<0.000000e+00> : vector<2x8xf32>
    %79 = vector.multi_reduction <add>, %78, %cst_40 [2] : vector<2x8x8xf32> to vector<2x8xf32>
    %80 = vector.shape_cast %79 : vector<2x8xf32> to vector<2x8x1xf32>
    %81 = vector.broadcast %80 : vector<2x8x1xf32> to vector<2x8x8xf32>
    %82 = arith.divf %78, %81 : vector<2x8x8xf32>
    %c1 = arith.constant 1 : index
    %c0_41 = arith.constant 0 : index
    %c0_42 = arith.constant 0 : index
    %c0_43 = arith.constant 0 : index
    %83 = vector.load %arg19[%c1, %c0_41, %c0_42, %c0_43] : memref<4x2x8x8xf32, #tpu.memory_space<vmem>>, vector<1x2x8x8xf32>
    %84 = vector.shape_cast %83 : vector<1x2x8x8xf32> to vector<2x8x8xf32>
    %85 = vector.shape_cast %82 : vector<2x8x8xf32> to vector<1x2x8x8xf32>
    tpu.vector_store %arg19[%c1, %c0_41, %c0_42, %c0_43], %85 {strides = array<i32>} : memref<4x2x8x8xf32, #tpu.memory_space<vmem>>, vector<1x2x8x8xf32>,
    "tpu.trace_start"() <{level = 10 : i32, message = "bqk,bkd->bqd"}> : () -> ()
    %cst_44 = arith.constant dense<0.000000e+00> : vector<2x8x32xf32>
    %86 = tpu.matmul %82, %66, %cst_44 {dimension_numbers = #tpu.dot_dimension_numbers<[2], [1], [1], [2], [0, 0, 0, 1, 1, 2], [0], [0]>} : vector<2x8x8xf32>, vector<2x8x32xf32>, vector<2x8x32xf32> -> vector<2x8x32xf32>
    "tpu.trace_stop"() : () -> ()
    %87 = arith.addf %55, %86 : vector<2x8x32xf32>
    %c16_i32_45 = arith.constant 16 : i32
    %88 = vector.broadcast %c16_i32_45 : i32 to vector<1x1x32xi32>
    %89 = arith.cmpi sge, %22, %88 : vector<1x1x32xi32>
    %c24_i32 = arith.constant 24 : i32
    %90 = vector.broadcast %c24_i32 : i32 to vector<1x1x32xi32>
    %91 = arith.cmpi slt, %22, %90 : vector<1x1x32xi32>
    %92 = arith.andi %89, %91 : vector<1x1x32xi1>
    %93 = arith.extui %92 : vector<1x1x32xi1> to vector<1x1x32xi32>
    %94 = arith.sitofp %93 : vector<1x1x32xi32> to vector<1x1x32xf32>
    %95 = vector.broadcast %94 : vector<1x1x32xf32> to vector<2x8x32xf32>
    %96 = arith.mulf %19, %95 : vector<2x8x32xf32>
    %97 = vector.broadcast %94 : vector<1x1x32xf32> to vector<2x8x32xf32>
    %98 = arith.mulf %21, %97 : vector<2x8x32xf32>
    "tpu.trace_start"() <{level = 10 : i32, message = "bqd,bkd->bqk"}> : () -> ()
    %cst_46 = arith.constant dense<0.000000e+00> : vector<2x8x8xf32>
    %99 = tpu.matmul %96, %20, %cst_46 {dimension_numbers = #tpu.dot_dimension_numbers<[2], [2], [1], [1], [0, 0, 0, 1, 1, 1], [0], [0]>} : vector<2x8x32xf32>, vector<2x8x32xf32>, vector<2x8x8xf32> -> vector<2x8x8xf32>
    "tpu.trace_stop"() : () -> ()
    %cst_47 = arith.constant 0.353553385 : f32
    %100 = vector.broadcast %cst_47 : f32 to vector<2x8x8xf32>
    %101 = arith.mulf %99, %100 : vector<2x8x8xf32>
    %cst_48 = arith.constant 0.000000e+00 : f32
    %102 = vector.broadcast %cst_48 : f32 to vector<2x8x8xf32>
    %103 = arith.cmpf ogt, %1, %102 : vector<2x8x8xf32>
    %cst_49 = arith.constant -1.000000e+10 : f32
    %104 = vector.broadcast %cst_49 : f32 to vector<2x8x8xf32>
    %105 = arith.select %103, %101, %104 : vector<2x8x8xi1>, vector<2x8x8xf32>
    %cst_50 = arith.constant dense<0xFF800000> : vector<2x8xf32>
    %106 = vector.multi_reduction <maximumf>, %105, %cst_50 [2] : vector<2x8x8xf32> to vector<2x8xf32>
    %107 = vector.shape_cast %106 : vector<2x8xf32> to vector<2x8x1xf32>
    %108 = vector.broadcast %107 : vector<2x8x1xf32> to vector<2x8x8xf32>
    %109 = arith.subf %105, %108 : vector<2x8x8xf32>
    %110 = math.exp %109 : vector<2x8x8xf32>
    %cst_51 = arith.constant dense<0.000000e+00> : vector<2x8xf32>
    %111 = vector.multi_reduction <add>, %110, %cst_51 [2] : vector<2x8x8xf32> to vector<2x8xf32>
    %112 = vector.shape_cast %111 : vector<2x8xf32> to vector<2x8x1xf32>
    %113 = vector.broadcast %112 : vector<2x8x1xf32> to vector<2x8x8xf32>
    %114 = arith.divf %110, %113 : vector<2x8x8xf32>
    %c2 = arith.constant 2 : index
    %c0_52 = arith.constant 0 : index
    %c0_53 = arith.constant 0 : index
    %c0_54 = arith.constant 0 : index
    %115 = vector.load %arg19[%c2, %c0_52, %c0_53, %c0_54] : memref<4x2x8x8xf32, #tpu.memory_space<vmem>>, vector<1x2x8x8xf32>
    %116 = vector.shape_cast %115 : vector<1x2x8x8xf32> to vector<2x8x8xf32>
    %117 = vector.shape_cast %114 : vector<2x8x8xf32> to vector<1x2x8x8xf32>
    tpu.vector_store %arg19[%c2, %c0_52, %c0_53, %c0_54], %117 {strides = array<i32>} : memref<4x2x8x8xf32, #tpu.memory_space<vmem>>, vector<1x2x8x8xf32>,
    "tpu.trace_start"() <{level = 10 : i32, message = "bqk,bkd->bqd"}> : () -> ()
    %cst_55 = arith.constant dense<0.000000e+00> : vector<2x8x32xf32>
    %118 = tpu.matmul %114, %98, %cst_55 {dimension_numbers = #tpu.dot_dimension_numbers<[2], [1], [1], [2], [0, 0, 0, 1, 1, 2], [0], [0]>} : vector<2x8x8xf32>, vector<2x8x32xf32>, vector<2x8x32xf32> -> vector<2x8x32xf32>
    "tpu.trace_stop"() : () -> ()
    %119 = arith.addf %87, %118 : vector<2x8x32xf32>
    %c24_i32_56 = arith.constant 24 : i32
    %120 = vector.broadcast %c24_i32_56 : i32 to vector<1x1x32xi32>
    %121 = arith.cmpi sge, %22, %120 : vector<1x1x32xi32>
    %c32_i32 = arith.constant 32 : i32
    %122 = vector.broadcast %c32_i32 : i32 to vector<1x1x32xi32>
    %123 = arith.cmpi slt, %22, %122 : vector<1x1x32xi32>
    %124 = arith.andi %121, %123 : vector<1x1x32xi1>
    %125 = arith.extui %124 : vector<1x1x32xi1> to vector<1x1x32xi32>
    %126 = arith.sitofp %125 : vector<1x1x32xi32> to vector<1x1x32xf32>
    %127 = vector.broadcast %126 : vector<1x1x32xf32> to vector<2x8x32xf32>
    %128 = arith.mulf %19, %127 : vector<2x8x32xf32>
    %129 = vector.broadcast %126 : vector<1x1x32xf32> to vector<2x8x32xf32>
    %130 = arith.mulf %21, %129 : vector<2x8x32xf32>
    "tpu.trace_start"() <{level = 10 : i32, message = "bqd,bkd->bqk"}> : () -> ()
    %cst_57 = arith.constant dense<0.000000e+00> : vector<2x8x8xf32>
    %131 = tpu.matmul %128, %20, %cst_57 {dimension_numbers = #tpu.dot_dimension_numbers<[2], [2], [1], [1], [0, 0, 0, 1, 1, 1], [0], [0]>} : vector<2x8x32xf32>, vector<2x8x32xf32>, vector<2x8x8xf32> -> vector<2x8x8xf32>
    "tpu.trace_stop"() : () -> ()
    %cst_58 = arith.constant 0.353553385 : f32
    %132 = vector.broadcast %cst_58 : f32 to vector<2x8x8xf32>
    %133 = arith.mulf %131, %132 : vector<2x8x8xf32>
    %cst_59 = arith.constant 0.000000e+00 : f32
    %134 = vector.broadcast %cst_59 : f32 to vector<2x8x8xf32>
    %135 = arith.cmpf ogt, %1, %134 : vector<2x8x8xf32>
    %cst_60 = arith.constant -1.000000e+10 : f32
    %136 = vector.broadcast %cst_60 : f32 to vector<2x8x8xf32>
    %137 = arith.select %135, %133, %136 : vector<2x8x8xi1>, vector<2x8x8xf32>
    %cst_61 = arith.constant dense<0xFF800000> : vector<2x8xf32>
    %138 = vector.multi_reduction <maximumf>, %137, %cst_61 [2] : vector<2x8x8xf32> to vector<2x8xf32>
    %139 = vector.shape_cast %138 : vector<2x8xf32> to vector<2x8x1xf32>
    %140 = vector.broadcast %139 : vector<2x8x1xf32> to vector<2x8x8xf32>
    %141 = arith.subf %137, %140 : vector<2x8x8xf32>
    %142 = math.exp %141 : vector<2x8x8xf32>
    %cst_62 = arith.constant dense<0.000000e+00> : vector<2x8xf32>
    %143 = vector.multi_reduction <add>, %142, %cst_62 [2] : vector<2x8x8xf32> to vector<2x8xf32>
    %144 = vector.shape_cast %143 : vector<2x8xf32> to vector<2x8x1xf32>
    %145 = vector.broadcast %144 : vector<2x8x1xf32> to vector<2x8x8xf32>
    %146 = arith.divf %142, %145 : vector<2x8x8xf32>
    %c3 = arith.constant 3 : index
    %c0_63 = arith.constant 0 : index
    %c0_64 = arith.constant 0 : index
    %c0_65 = arith.constant 0 : index
    %147 = vector.load %arg19[%c3, %c0_63, %c0_64, %c0_65] : memref<4x2x8x8xf32, #tpu.memory_space<vmem>>, vector<1x2x8x8xf32>
    %148 = vector.shape_cast %147 : vector<1x2x8x8xf32> to vector<2x8x8xf32>
    %149 = vector.shape_cast %146 : vector<2x8x8xf32> to vector<1x2x8x8xf32>
    tpu.vector_store %arg19[%c3, %c0_63, %c0_64, %c0_65], %149 {strides = array<i32>} : memref<4x2x8x8xf32, #tpu.memory_space<vmem>>, vector<1x2x8x8xf32>,
    "tpu.trace_start"() <{level = 10 : i32, message = "bqk,bkd->bqd"}> : () -> ()
    %cst_66 = arith.constant dense<0.000000e+00> : vector<2x8x32xf32>
    %150 = tpu.matmul %146, %130, %cst_66 {dimension_numbers = #tpu.dot_dimension_numbers<[2], [1], [1], [2], [0, 0, 0, 1, 1, 2], [0], [0]>} : vector<2x8x8xf32>, vector<2x8x32xf32>, vector<2x8x32xf32> -> vector<2x8x32xf32>
    "tpu.trace_stop"() : () -> ()
    %151 = arith.addf %119, %150 : vector<2x8x32xf32>
    %152 = vector.shape_cast %151 : vector<2x8x32xf32> to vector<16x32xf32>
    %cst_67 = arith.constant dense<0.000000e+00> : vector<16x32xf32>
    %153 = tpu.matmul %152, %8, %cst_67 {dimension_numbers = #tpu.dot_dimension_numbers<[1], [0], [0], [1], [0, 0, 1, 1], [], []>} : vector<16x32xf32>, vector<32x32xf32>, vector<16x32xf32> -> vector<16x32xf32>
    %154 = vector.broadcast %9 : vector<1x32xf32> to vector<16x32xf32>
    %155 = arith.addf %153, %154 : vector<16x32xf32>
    %156 = arith.addf %0, %155 : vector<16x32xf32>
    %c0_68 = arith.constant 0 : index
    %c0_69 = arith.constant 0 : index
    %157 = vector.load %arg10[%c0_68, %c0_69] : memref<1x32xf32, #tpu.memory_space<vmem>>, vector<1x32xf32>
    %c0_70 = arith.constant 0 : index
    %c0_71 = arith.constant 0 : index
    %158 = vector.load %arg11[%c0_70, %c0_71] : memref<1x32xf32, #tpu.memory_space<vmem>>, vector<1x32xf32>
    %cst_72 = arith.constant dense<0.000000e+00> : vector<16xf32>
    %159 = vector.multi_reduction <add>, %156, %cst_72 [1] : vector<16x32xf32> to vector<16xf32>
    %160 = vector.shape_cast %159 : vector<16xf32> to vector<16x1xf32>
    %cst_73 = arith.constant 3.200000e+01 : f32
    %161 = vector.broadcast %cst_73 : f32 to vector<16x1xf32>
    %162 = arith.divf %160, %161 : vector<16x1xf32>
    %163 = vector.broadcast %162 : vector<16x1xf32> to vector<16x32xf32>
    %164 = arith.subf %156, %163 : vector<16x32xf32>
    %165 = arith.mulf %164, %164 : vector<16x32xf32>
    %cst_74 = arith.constant dense<0.000000e+00> : vector<16xf32>
    %166 = vector.multi_reduction <add>, %165, %cst_74 [1] : vector<16x32xf32> to vector<16xf32>
    %167 = vector.shape_cast %166 : vector<16xf32> to vector<16x1xf32>
    %cst_75 = arith.constant 3.200000e+01 : f32
    %168 = vector.broadcast %cst_75 : f32 to vector<16x1xf32>
    %169 = arith.divf %167, %168 : vector<16x1xf32>
    %170 = vector.broadcast %162 : vector<16x1xf32> to vector<16x32xf32>
    %171 = arith.subf %156, %170 : vector<16x32xf32>
    %cst_76 = arith.constant 9.99999974E-6 : f32
    %172 = vector.broadcast %cst_76 : f32 to vector<16x1xf32>
    %173 = arith.addf %169, %172 : vector<16x1xf32>
    %174 = math.rsqrt %173 : vector<16x1xf32>
    %175 = vector.broadcast %174 : vector<16x1xf32> to vector<16x32xf32>
    %176 = arith.mulf %171, %175 : vector<16x32xf32>
    %177 = vector.broadcast %157 : vector<1x32xf32> to vector<16x32xf32>
    %178 = arith.mulf %176, %177 : vector<16x32xf32>
    %179 = vector.broadcast %158 : vector<1x32xf32> to vector<16x32xf32>
    %180 = arith.addf %178, %179 : vector<16x32xf32>
    %c0_77 = arith.constant 0 : index
    %c0_78 = arith.constant 0 : index
    %181 = vector.load %arg12[%c0_77, %c0_78] : memref<32x64xf32, #tpu.memory_space<vmem>>, vector<32x64xf32>
    %cst_79 = arith.constant dense<0.000000e+00> : vector<16x64xf32>
    %182 = tpu.matmul %180, %181, %cst_79 {dimension_numbers = #tpu.dot_dimension_numbers<[1], [0], [0], [1], [0, 0, 1, 1], [], []>} : vector<16x32xf32>, vector<32x64xf32>, vector<16x64xf32> -> vector<16x64xf32>
    %c0_80 = arith.constant 0 : index
    %c0_81 = arith.constant 0 : index
    %183 = vector.load %arg13[%c0_80, %c0_81] : memref<1x64xf32, #tpu.memory_space<vmem>>, vector<1x64xf32>
    %184 = vector.broadcast %183 : vector<1x64xf32> to vector<16x64xf32>
    %185 = arith.addf %182, %184 : vector<16x64xf32>
    %cst_82 = arith.constant 0.000000e+00 : f32
    %186 = vector.broadcast %cst_82 : f32 to vector<16x64xf32>
    %187 = arith.maximumf %185, %186 : vector<16x64xf32>
    %c0_83 = arith.constant 0 : index
    %c0_84 = arith.constant 0 : index
    %188 = vector.load %arg14[%c0_83, %c0_84] : memref<64x32xf32, #tpu.memory_space<vmem>>, vector<64x32xf32>
    %cst_85 = arith.constant dense<0.000000e+00> : vector<16x32xf32>
    %189 = tpu.matmul %187, %188, %cst_85 {dimension_numbers = #tpu.dot_dimension_numbers<[1], [0], [0], [1], [0, 0, 1, 1], [], []>} : vector<16x64xf32>, vector<64x32xf32>, vector<16x32xf32> -> vector<16x32xf32>
    %c0_86 = arith.constant 0 : index
    %c0_87 = arith.constant 0 : index
    %190 = vector.load %arg15[%c0_86, %c0_87] : memref<1x32xf32, #tpu.memory_space<vmem>>, vector<1x32xf32>
    %191 = vector.broadcast %190 : vector<1x32xf32> to vector<16x32xf32>
    %192 = arith.addf %189, %191 : vector<16x32xf32>
    %193 = arith.addf %180, %192 : vector<16x32xf32>
    %c0_88 = arith.constant 0 : index
    %c0_89 = arith.constant 0 : index
    %194 = vector.load %arg16[%c0_88, %c0_89] : memref<1x32xf32, #tpu.memory_space<vmem>>, vector<1x32xf32>
    %c0_90 = arith.constant 0 : index
    %c0_91 = arith.constant 0 : index
    %195 = vector.load %arg17[%c0_90, %c0_91] : memref<1x32xf32, #tpu.memory_space<vmem>>, vector<1x32xf32>
    %cst_92 = arith.constant dense<0.000000e+00> : vector<16xf32>
    %196 = vector.multi_reduction <add>, %193, %cst_92 [1] : vector<16x32xf32> to vector<16xf32>
    %197 = vector.shape_cast %196 : vector<16xf32> to vector<16x1xf32>
    %cst_93 = arith.constant 3.200000e+01 : f32
    %198 = vector.broadcast %cst_93 : f32 to vector<16x1xf32>
    %199 = arith.divf %197, %198 : vector<16x1xf32>
    %200 = vector.broadcast %199 : vector<16x1xf32> to vector<16x32xf32>
    %201 = arith.subf %193, %200 : vector<16x32xf32>
    %202 = arith.mulf %201, %201 : vector<16x32xf32>
    %cst_94 = arith.constant dense<0.000000e+00> : vector<16xf32>
    %203 = vector.multi_reduction <add>, %202, %cst_94 [1] : vector<16x32xf32> to vector<16xf32>
    %204 = vector.shape_cast %203 : vector<16xf32> to vector<16x1xf32>
    %cst_95 = arith.constant 3.200000e+01 : f32
    %205 = vector.broadcast %cst_95 : f32 to vector<16x1xf32>
    %206 = arith.divf %204, %205 : vector<16x1xf32>
    %207 = vector.broadcast %199 : vector<16x1xf32> to vector<16x32xf32>
    %208 = arith.subf %193, %207 : vector<16x32xf32>
    %cst_96 = arith.constant 9.99999974E-6 : f32
    %209 = vector.broadcast %cst_96 : f32 to vector<16x1xf32>
    %210 = arith.addf %206, %209 : vector<16x1xf32>
    %211 = math.rsqrt %210 : vector<16x1xf32>
    %212 = vector.broadcast %211 : vector<16x1xf32> to vector<16x32xf32>
    %213 = arith.mulf %208, %212 : vector<16x32xf32>
    %214 = vector.broadcast %194 : vector<1x32xf32> to vector<16x32xf32>
    %215 = arith.mulf %213, %214 : vector<16x32xf32>
    %216 = vector.broadcast %195 : vector<1x32xf32> to vector<16x32xf32>
    %217 = arith.addf %215, %216 : vector<16x32xf32>
    %c0_97 = arith.constant 0 : index
    %c0_98 = arith.constant 0 : index
    %218 = vector.load %arg18[%c0_97, %c0_98] : memref<16x32xf32, #tpu.memory_space<vmem>>, vector<16x32xf32>
    tpu.vector_store %arg18[%c0_97, %c0_98], %217 {strides = array<i32>} : memref<16x32xf32, #tpu.memory_space<vmem>>, vector<16x32xf32>,
    return
  }
}

module attributes {stable_mosaic.version = 11 : i64} {
  func.func @_linear_kernel(%arg0: memref<16x32xf32, #tpu.memory_space<vmem>>, %arg1: memref<32x22xf32, #tpu.memory_space<vmem>>, %arg2: memref<1x22xf32, #tpu.memory_space<vmem>>, %arg3: memref<16x22xf32, #tpu.memory_space<vmem>>) attributes {dimension_semantics = [], scalar_prefetch = 0 : i64, scratch_operands = 0 : i64, tpu.core_type = #tpu.core_type<tc>} {
    %c0 = arith.constant 0 : index
    %c0_0 = arith.constant 0 : index
    %0 = vector.load %arg0[%c0, %c0_0] : memref<16x32xf32, #tpu.memory_space<vmem>>, vector<16x32xf32>
    %c0_1 = arith.constant 0 : index
    %c0_2 = arith.constant 0 : index
    %1 = vector.load %arg1[%c0_1, %c0_2] : memref<32x22xf32, #tpu.memory_space<vmem>>, vector<32x22xf32>
    %cst = arith.constant dense<0.000000e+00> : vector<16x22xf32>
    %2 = tpu.matmul %0, %1, %cst {dimension_numbers = #tpu.dot_dimension_numbers<[1], [0], [0], [1], [0, 0, 1, 1], [], []>} : vector<16x32xf32>, vector<32x22xf32>, vector<16x22xf32> -> vector<16x22xf32>
    %c0_3 = arith.constant 0 : index
    %c0_4 = arith.constant 0 : index
    %3 = vector.load %arg2[%c0_3, %c0_4] : memref<1x22xf32, #tpu.memory_space<vmem>>, vector<1x22xf32>
    %4 = vector.broadcast %3 : vector<1x22xf32> to vector<16x22xf32>
    %5 = arith.addf %2, %4 : vector<16x22xf32>
    %c0_5 = arith.constant 0 : index
    %c0_6 = arith.constant 0 : index
    %6 = vector.load %arg3[%c0_5, %c0_6] : memref<16x22xf32, #tpu.memory_space<vmem>>, vector<16x22xf32>
    tpu.vector_store %arg3[%c0_5, %c0_6], %5 {strides = array<i32>} : memref<16x22xf32, #tpu.memory_space<vmem>>, vector<16x22xf32>,
    return
  }
}

module attributes {stable_mosaic.version = 11 : i64} {
  func.func @_decoder_layer_kernel(%arg0: memref<16x32xf32, #tpu.memory_space<vmem>>, %arg1: memref<16x32xf32, #tpu.memory_space<vmem>>, %arg2: memref<2x8x8xf32, #tpu.memory_space<vmem>>, %arg3: memref<2x8x8xf32, #tpu.memory_space<vmem>>, %arg4: memref<32x32xf32, #tpu.memory_space<vmem>>, %arg5: memref<1x32xf32, #tpu.memory_space<vmem>>, %arg6: memref<32x32xf32, #tpu.memory_space<vmem>>, %arg7: memref<1x32xf32, #tpu.memory_space<vmem>>, %arg8: memref<32x32xf32, #tpu.memory_space<vmem>>, %arg9: memref<1x32xf32, #tpu.memory_space<vmem>>, %arg10: memref<32x32xf32, #tpu.memory_space<vmem>>, %arg11: memref<1x32xf32, #tpu.memory_space<vmem>>, %arg12: memref<1x32xf32, #tpu.memory_space<vmem>>, %arg13: memref<1x32xf32, #tpu.memory_space<vmem>>, %arg14: memref<32x32xf32, #tpu.memory_space<vmem>>, %arg15: memref<1x32xf32, #tpu.memory_space<vmem>>, %arg16: memref<32x32xf32, #tpu.memory_space<vmem>>, %arg17: memref<1x32xf32, #tpu.memory_space<vmem>>, %arg18: memref<32x32xf32, #tpu.memory_space<vmem>>, %arg19: memref<1x32xf32, #tpu.memory_space<vmem>>, %arg20: memref<32x32xf32, #tpu.memory_space<vmem>>, %arg21: memref<1x32xf32, #tpu.memory_space<vmem>>, %arg22: memref<1x32xf32, #tpu.memory_space<vmem>>, %arg23: memref<1x32xf32, #tpu.memory_space<vmem>>, %arg24: memref<32x64xf32, #tpu.memory_space<vmem>>, %arg25: memref<1x64xf32, #tpu.memory_space<vmem>>, %arg26: memref<64x32xf32, #tpu.memory_space<vmem>>, %arg27: memref<1x32xf32, #tpu.memory_space<vmem>>, %arg28: memref<1x32xf32, #tpu.memory_space<vmem>>, %arg29: memref<1x32xf32, #tpu.memory_space<vmem>>, %arg30: memref<16x32xf32, #tpu.memory_space<vmem>>, %arg31: memref<4x2x8x8xf32, #tpu.memory_space<vmem>>, %arg32: memref<4x2x8x8xf32, #tpu.memory_space<vmem>>) attributes {dimension_semantics = [], scalar_prefetch = 0 : i64, scratch_operands = 0 : i64, tpu.core_type = #tpu.core_type<tc>} {
    %c0 = arith.constant 0 : index
    %c0_0 = arith.constant 0 : index
    %0 = vector.load %arg0[%c0, %c0_0] : memref<16x32xf32, #tpu.memory_space<vmem>>, vector<16x32xf32>
    %c0_1 = arith.constant 0 : index
    %c0_2 = arith.constant 0 : index
    %1 = vector.load %arg1[%c0_1, %c0_2] : memref<16x32xf32, #tpu.memory_space<vmem>>, vector<16x32xf32>
    %c0_3 = arith.constant 0 : index
    %c0_4 = arith.constant 0 : index
    %c0_5 = arith.constant 0 : index
    %2 = vector.load %arg2[%c0_3, %c0_4, %c0_5] : memref<2x8x8xf32, #tpu.memory_space<vmem>>, vector<2x8x8xf32>
    %c0_6 = arith.constant 0 : index
    %c0_7 = arith.constant 0 : index
    %3 = vector.load %arg4[%c0_6, %c0_7] : memref<32x32xf32, #tpu.memory_space<vmem>>, vector<32x32xf32>
    %c0_8 = arith.constant 0 : index
    %c0_9 = arith.constant 0 : index
    %4 = vector.load %arg5[%c0_8, %c0_9] : memref<1x32xf32, #tpu.memory_space<vmem>>, vector<1x32xf32>
    %c0_10 = arith.constant 0 : index
    %c0_11 = arith.constant 0 : index
    %5 = vector.load %arg6[%c0_10, %c0_11] : memref<32x32xf32, #tpu.memory_space<vmem>>, vector<32x32xf32>
    %c0_12 = arith.constant 0 : index
    %c0_13 = arith.constant 0 : index
    %6 = vector.load %arg7[%c0_12, %c0_13] : memref<1x32xf32, #tpu.memory_space<vmem>>, vector<1x32xf32>
    %c0_14 = arith.constant 0 : index
    %c0_15 = arith.constant 0 : index
    %7 = vector.load %arg8[%c0_14, %c0_15] : memref<32x32xf32, #tpu.memory_space<vmem>>, vector<32x32xf32>
    %c0_16 = arith.constant 0 : index
    %c0_17 = arith.constant 0 : index
    %8 = vector.load %arg9[%c0_16, %c0_17] : memref<1x32xf32, #tpu.memory_space<vmem>>, vector<1x32xf32>
    %c0_18 = arith.constant 0 : index
    %c0_19 = arith.constant 0 : index
    %9 = vector.load %arg10[%c0_18, %c0_19] : memref<32x32xf32, #tpu.memory_space<vmem>>, vector<32x32xf32>
    %c0_20 = arith.constant 0 : index
    %c0_21 = arith.constant 0 : index
    %10 = vector.load %arg11[%c0_20, %c0_21] : memref<1x32xf32, #tpu.memory_space<vmem>>, vector<1x32xf32>
    %cst = arith.constant dense<0.000000e+00> : vector<16x32xf32>
    %11 = tpu.matmul %0, %3, %cst {dimension_numbers = #tpu.dot_dimension_numbers<[1], [0], [0], [1], [0, 0, 1, 1], [], []>} : vector<16x32xf32>, vector<32x32xf32>, vector<16x32xf32> -> vector<16x32xf32>
    %12 = vector.broadcast %4 : vector<1x32xf32> to vector<16x32xf32>
    %13 = arith.addf %11, %12 : vector<16x32xf32>
    %cst_22 = arith.constant dense<0.000000e+00> : vector<16x32xf32>
    %14 = tpu.matmul %0, %5, %cst_22 {dimension_numbers = #tpu.dot_dimension_numbers<[1], [0], [0], [1], [0, 0, 1, 1], [], []>} : vector<16x32xf32>, vector<32x32xf32>, vector<16x32xf32> -> vector<16x32xf32>
    %15 = vector.broadcast %6 : vector<1x32xf32> to vector<16x32xf32>
    %16 = arith.addf %14, %15 : vector<16x32xf32>
    %cst_23 = arith.constant dense<0.000000e+00> : vector<16x32xf32>
    %17 = tpu.matmul %0, %7, %cst_23 {dimension_numbers = #tpu.dot_dimension_numbers<[1], [0], [0], [1], [0, 0, 1, 1], [], []>} : vector<16x32xf32>, vector<32x32xf32>, vector<16x32xf32> -> vector<16x32xf32>
    %18 = vector.broadcast %8 : vector<1x32xf32> to vector<16x32xf32>
    %19 = arith.addf %17, %18 : vector<16x32xf32>
    %20 = vector.shape_cast %13 : vector<16x32xf32> to vector<2x8x32xf32>
    %21 = vector.shape_cast %16 : vector<16x32xf32> to vector<2x8x32xf32>
    %22 = vector.shape_cast %19 : vector<16x32xf32> to vector<2x8x32xf32>
    %23 = tpu.iota {dimensions = array<i32: 2>} : vector<1x1x32xi32>
    %cst_24 = arith.constant 0.000000e+00 : f32
    %24 = vector.broadcast %cst_24 : f32 to vector<2x8x32xf32>
    %c0_i32 = arith.constant 0 : i32
    %25 = vector.broadcast %c0_i32 : i32 to vector<1x1x32xi32>
    %26 = arith.cmpi sge, %23, %25 : vector<1x1x32xi32>
    %c8_i32 = arith.constant 8 : i32
    %27 = vector.broadcast %c8_i32 : i32 to vector<1x1x32xi32>
    %28 = arith.cmpi slt, %23, %27 : vector<1x1x32xi32>
    %29 = arith.andi %26, %28 : vector<1x1x32xi1>
    %30 = arith.extui %29 : vector<1x1x32xi1> to vector<1x1x32xi32>
    %31 = arith.sitofp %30 : vector<1x1x32xi32> to vector<1x1x32xf32>
    %32 = vector.broadcast %31 : vector<1x1x32xf32> to vector<2x8x32xf32>
    %33 = arith.mulf %20, %32 : vector<2x8x32xf32>
    %34 = vector.broadcast %31 : vector<1x1x32xf32> to vector<2x8x32xf32>
    %35 = arith.mulf %22, %34 : vector<2x8x32xf32>
    "tpu.trace_start"() <{level = 10 : i32, message = "bqd,bkd->bqk"}> : () -> ()
    %cst_25 = arith.constant dense<0.000000e+00> : vector<2x8x8xf32>
    %36 = tpu.matmul %33, %21, %cst_25 {dimension_numbers = #tpu.dot_dimension_numbers<[2], [2], [1], [1], [0, 0, 0, 1, 1, 1], [0], [0]>} : vector<2x8x32xf32>, vector<2x8x32xf32>, vector<2x8x8xf32> -> vector<2x8x8xf32>
    "tpu.trace_stop"() : () -> ()
    %cst_26 = arith.constant 0.353553385 : f32
    %37 = vector.broadcast %cst_26 : f32 to vector<2x8x8xf32>
    %38 = arith.mulf %36, %37 : vector<2x8x8xf32>
    %cst_27 = arith.constant 0.000000e+00 : f32
    %39 = vector.broadcast %cst_27 : f32 to vector<2x8x8xf32>
    %40 = arith.cmpf ogt, %2, %39 : vector<2x8x8xf32>
    %cst_28 = arith.constant -1.000000e+10 : f32
    %41 = vector.broadcast %cst_28 : f32 to vector<2x8x8xf32>
    %42 = arith.select %40, %38, %41 : vector<2x8x8xi1>, vector<2x8x8xf32>
    %cst_29 = arith.constant dense<0xFF800000> : vector<2x8xf32>
    %43 = vector.multi_reduction <maximumf>, %42, %cst_29 [2] : vector<2x8x8xf32> to vector<2x8xf32>
    %44 = vector.shape_cast %43 : vector<2x8xf32> to vector<2x8x1xf32>
    %45 = vector.broadcast %44 : vector<2x8x1xf32> to vector<2x8x8xf32>
    %46 = arith.subf %42, %45 : vector<2x8x8xf32>
    %47 = math.exp %46 : vector<2x8x8xf32>
    %cst_30 = arith.constant dense<0.000000e+00> : vector<2x8xf32>
    %48 = vector.multi_reduction <add>, %47, %cst_30 [2] : vector<2x8x8xf32> to vector<2x8xf32>
    %49 = vector.shape_cast %48 : vector<2x8xf32> to vector<2x8x1xf32>
    %50 = vector.broadcast %49 : vector<2x8x1xf32> to vector<2x8x8xf32>
    %51 = arith.divf %47, %50 : vector<2x8x8xf32>
    %c0_31 = arith.constant 0 : index
    %c0_32 = arith.constant 0 : index
    %c0_33 = arith.constant 0 : index
    %c0_34 = arith.constant 0 : index
    %52 = vector.load %arg31[%c0_31, %c0_32, %c0_33, %c0_34] : memref<4x2x8x8xf32, #tpu.memory_space<vmem>>, vector<1x2x8x8xf32>
    %53 = vector.shape_cast %52 : vector<1x2x8x8xf32> to vector<2x8x8xf32>
    %54 = vector.shape_cast %51 : vector<2x8x8xf32> to vector<1x2x8x8xf32>
    tpu.vector_store %arg31[%c0_31, %c0_32, %c0_33, %c0_34], %54 {strides = array<i32>} : memref<4x2x8x8xf32, #tpu.memory_space<vmem>>, vector<1x2x8x8xf32>,
    "tpu.trace_start"() <{level = 10 : i32, message = "bqk,bkd->bqd"}> : () -> ()
    %cst_35 = arith.constant dense<0.000000e+00> : vector<2x8x32xf32>
    %55 = tpu.matmul %51, %35, %cst_35 {dimension_numbers = #tpu.dot_dimension_numbers<[2], [1], [1], [2], [0, 0, 0, 1, 1, 2], [0], [0]>} : vector<2x8x8xf32>, vector<2x8x32xf32>, vector<2x8x32xf32> -> vector<2x8x32xf32>
    "tpu.trace_stop"() : () -> ()
    %56 = arith.addf %24, %55 : vector<2x8x32xf32>
    %c8_i32_36 = arith.constant 8 : i32
    %57 = vector.broadcast %c8_i32_36 : i32 to vector<1x1x32xi32>
    %58 = arith.cmpi sge, %23, %57 : vector<1x1x32xi32>
    %c16_i32 = arith.constant 16 : i32
    %59 = vector.broadcast %c16_i32 : i32 to vector<1x1x32xi32>
    %60 = arith.cmpi slt, %23, %59 : vector<1x1x32xi32>
    %61 = arith.andi %58, %60 : vector<1x1x32xi1>
    %62 = arith.extui %61 : vector<1x1x32xi1> to vector<1x1x32xi32>
    %63 = arith.sitofp %62 : vector<1x1x32xi32> to vector<1x1x32xf32>
    %64 = vector.broadcast %63 : vector<1x1x32xf32> to vector<2x8x32xf32>
    %65 = arith.mulf %20, %64 : vector<2x8x32xf32>
    %66 = vector.broadcast %63 : vector<1x1x32xf32> to vector<2x8x32xf32>
    %67 = arith.mulf %22, %66 : vector<2x8x32xf32>
    "tpu.trace_start"() <{level = 10 : i32, message = "bqd,bkd->bqk"}> : () -> ()
    %cst_37 = arith.constant dense<0.000000e+00> : vector<2x8x8xf32>
    %68 = tpu.matmul %65, %21, %cst_37 {dimension_numbers = #tpu.dot_dimension_numbers<[2], [2], [1], [1], [0, 0, 0, 1, 1, 1], [0], [0]>} : vector<2x8x32xf32>, vector<2x8x32xf32>, vector<2x8x8xf32> -> vector<2x8x8xf32>
    "tpu.trace_stop"() : () -> ()
    %cst_38 = arith.constant 0.353553385 : f32
    %69 = vector.broadcast %cst_38 : f32 to vector<2x8x8xf32>
    %70 = arith.mulf %68, %69 : vector<2x8x8xf32>
    %cst_39 = arith.constant 0.000000e+00 : f32
    %71 = vector.broadcast %cst_39 : f32 to vector<2x8x8xf32>
    %72 = arith.cmpf ogt, %2, %71 : vector<2x8x8xf32>
    %cst_40 = arith.constant -1.000000e+10 : f32
    %73 = vector.broadcast %cst_40 : f32 to vector<2x8x8xf32>
    %74 = arith.select %72, %70, %73 : vector<2x8x8xi1>, vector<2x8x8xf32>
    %cst_41 = arith.constant dense<0xFF800000> : vector<2x8xf32>
    %75 = vector.multi_reduction <maximumf>, %74, %cst_41 [2] : vector<2x8x8xf32> to vector<2x8xf32>
    %76 = vector.shape_cast %75 : vector<2x8xf32> to vector<2x8x1xf32>
    %77 = vector.broadcast %76 : vector<2x8x1xf32> to vector<2x8x8xf32>
    %78 = arith.subf %74, %77 : vector<2x8x8xf32>
    %79 = math.exp %78 : vector<2x8x8xf32>
    %cst_42 = arith.constant dense<0.000000e+00> : vector<2x8xf32>
    %80 = vector.multi_reduction <add>, %79, %cst_42 [2] : vector<2x8x8xf32> to vector<2x8xf32>
    %81 = vector.shape_cast %80 : vector<2x8xf32> to vector<2x8x1xf32>
    %82 = vector.broadcast %81 : vector<2x8x1xf32> to vector<2x8x8xf32>
    %83 = arith.divf %79, %82 : vector<2x8x8xf32>
    %c1 = arith.constant 1 : index
    %c0_43 = arith.constant 0 : index
    %c0_44 = arith.constant 0 : index
    %c0_45 = arith.constant 0 : index
    %84 = vector.load %arg31[%c1, %c0_43, %c0_44, %c0_45] : memref<4x2x8x8xf32, #tpu.memory_space<vmem>>, vector<1x2x8x8xf32>
    %85 = vector.shape_cast %84 : vector<1x2x8x8xf32> to vector<2x8x8xf32>
    %86 = vector.shape_cast %83 : vector<2x8x8xf32> to vector<1x2x8x8xf32>
    tpu.vector_store %arg31[%c1, %c0_43, %c0_44, %c0_45], %86 {strides = array<i32>} : memref<4x2x8x8xf32, #tpu.memory_space<vmem>>, vector<1x2x8x8xf32>,
    "tpu.trace_start"() <{level = 10 : i32, message = "bqk,bkd->bqd"}> : () -> ()
    %cst_46 = arith.constant dense<0.000000e+00> : vector<2x8x32xf32>
    %87 = tpu.matmul %83, %67, %cst_46 {dimension_numbers = #tpu.dot_dimension_numbers<[2], [1], [1], [2], [0, 0, 0, 1, 1, 2], [0], [0]>} : vector<2x8x8xf32>, vector<2x8x32xf32>, vector<2x8x32xf32> -> vector<2x8x32xf32>
    "tpu.trace_stop"() : () -> ()
    %88 = arith.addf %56, %87 : vector<2x8x32xf32>
    %c16_i32_47 = arith.constant 16 : i32
    %89 = vector.broadcast %c16_i32_47 : i32 to vector<1x1x32xi32>
    %90 = arith.cmpi sge, %23, %89 : vector<1x1x32xi32>
    %c24_i32 = arith.constant 24 : i32
    %91 = vector.broadcast %c24_i32 : i32 to vector<1x1x32xi32>
    %92 = arith.cmpi slt, %23, %91 : vector<1x1x32xi32>
    %93 = arith.andi %90, %92 : vector<1x1x32xi1>
    %94 = arith.extui %93 : vector<1x1x32xi1> to vector<1x1x32xi32>
    %95 = arith.sitofp %94 : vector<1x1x32xi32> to vector<1x1x32xf32>
    %96 = vector.broadcast %95 : vector<1x1x32xf32> to vector<2x8x32xf32>
    %97 = arith.mulf %20, %96 : vector<2x8x32xf32>
    %98 = vector.broadcast %95 : vector<1x1x32xf32> to vector<2x8x32xf32>
    %99 = arith.mulf %22, %98 : vector<2x8x32xf32>
    "tpu.trace_start"() <{level = 10 : i32, message = "bqd,bkd->bqk"}> : () -> ()
    %cst_48 = arith.constant dense<0.000000e+00> : vector<2x8x8xf32>
    %100 = tpu.matmul %97, %21, %cst_48 {dimension_numbers = #tpu.dot_dimension_numbers<[2], [2], [1], [1], [0, 0, 0, 1, 1, 1], [0], [0]>} : vector<2x8x32xf32>, vector<2x8x32xf32>, vector<2x8x8xf32> -> vector<2x8x8xf32>
    "tpu.trace_stop"() : () -> ()
    %cst_49 = arith.constant 0.353553385 : f32
    %101 = vector.broadcast %cst_49 : f32 to vector<2x8x8xf32>
    %102 = arith.mulf %100, %101 : vector<2x8x8xf32>
    %cst_50 = arith.constant 0.000000e+00 : f32
    %103 = vector.broadcast %cst_50 : f32 to vector<2x8x8xf32>
    %104 = arith.cmpf ogt, %2, %103 : vector<2x8x8xf32>
    %cst_51 = arith.constant -1.000000e+10 : f32
    %105 = vector.broadcast %cst_51 : f32 to vector<2x8x8xf32>
    %106 = arith.select %104, %102, %105 : vector<2x8x8xi1>, vector<2x8x8xf32>
    %cst_52 = arith.constant dense<0xFF800000> : vector<2x8xf32>
    %107 = vector.multi_reduction <maximumf>, %106, %cst_52 [2] : vector<2x8x8xf32> to vector<2x8xf32>
    %108 = vector.shape_cast %107 : vector<2x8xf32> to vector<2x8x1xf32>
    %109 = vector.broadcast %108 : vector<2x8x1xf32> to vector<2x8x8xf32>
    %110 = arith.subf %106, %109 : vector<2x8x8xf32>
    %111 = math.exp %110 : vector<2x8x8xf32>
    %cst_53 = arith.constant dense<0.000000e+00> : vector<2x8xf32>
    %112 = vector.multi_reduction <add>, %111, %cst_53 [2] : vector<2x8x8xf32> to vector<2x8xf32>
    %113 = vector.shape_cast %112 : vector<2x8xf32> to vector<2x8x1xf32>
    %114 = vector.broadcast %113 : vector<2x8x1xf32> to vector<2x8x8xf32>
    %115 = arith.divf %111, %114 : vector<2x8x8xf32>
    %c2 = arith.constant 2 : index
    %c0_54 = arith.constant 0 : index
    %c0_55 = arith.constant 0 : index
    %c0_56 = arith.constant 0 : index
    %116 = vector.load %arg31[%c2, %c0_54, %c0_55, %c0_56] : memref<4x2x8x8xf32, #tpu.memory_space<vmem>>, vector<1x2x8x8xf32>
    %117 = vector.shape_cast %116 : vector<1x2x8x8xf32> to vector<2x8x8xf32>
    %118 = vector.shape_cast %115 : vector<2x8x8xf32> to vector<1x2x8x8xf32>
    tpu.vector_store %arg31[%c2, %c0_54, %c0_55, %c0_56], %118 {strides = array<i32>} : memref<4x2x8x8xf32, #tpu.memory_space<vmem>>, vector<1x2x8x8xf32>,
    "tpu.trace_start"() <{level = 10 : i32, message = "bqk,bkd->bqd"}> : () -> ()
    %cst_57 = arith.constant dense<0.000000e+00> : vector<2x8x32xf32>
    %119 = tpu.matmul %115, %99, %cst_57 {dimension_numbers = #tpu.dot_dimension_numbers<[2], [1], [1], [2], [0, 0, 0, 1, 1, 2], [0], [0]>} : vector<2x8x8xf32>, vector<2x8x32xf32>, vector<2x8x32xf32> -> vector<2x8x32xf32>
    "tpu.trace_stop"() : () -> ()
    %120 = arith.addf %88, %119 : vector<2x8x32xf32>
    %c24_i32_58 = arith.constant 24 : i32
    %121 = vector.broadcast %c24_i32_58 : i32 to vector<1x1x32xi32>
    %122 = arith.cmpi sge, %23, %121 : vector<1x1x32xi32>
    %c32_i32 = arith.constant 32 : i32
    %123 = vector.broadcast %c32_i32 : i32 to vector<1x1x32xi32>
    %124 = arith.cmpi slt, %23, %123 : vector<1x1x32xi32>
    %125 = arith.andi %122, %124 : vector<1x1x32xi1>
    %126 = arith.extui %125 : vector<1x1x32xi1> to vector<1x1x32xi32>
    %127 = arith.sitofp %126 : vector<1x1x32xi32> to vector<1x1x32xf32>
    %128 = vector.broadcast %127 : vector<1x1x32xf32> to vector<2x8x32xf32>
    %129 = arith.mulf %20, %128 : vector<2x8x32xf32>
    %130 = vector.broadcast %127 : vector<1x1x32xf32> to vector<2x8x32xf32>
    %131 = arith.mulf %22, %130 : vector<2x8x32xf32>
    "tpu.trace_start"() <{level = 10 : i32, message = "bqd,bkd->bqk"}> : () -> ()
    %cst_59 = arith.constant dense<0.000000e+00> : vector<2x8x8xf32>
    %132 = tpu.matmul %129, %21, %cst_59 {dimension_numbers = #tpu.dot_dimension_numbers<[2], [2], [1], [1], [0, 0, 0, 1, 1, 1], [0], [0]>} : vector<2x8x32xf32>, vector<2x8x32xf32>, vector<2x8x8xf32> -> vector<2x8x8xf32>
    "tpu.trace_stop"() : () -> ()
    %cst_60 = arith.constant 0.353553385 : f32
    %133 = vector.broadcast %cst_60 : f32 to vector<2x8x8xf32>
    %134 = arith.mulf %132, %133 : vector<2x8x8xf32>
    %cst_61 = arith.constant 0.000000e+00 : f32
    %135 = vector.broadcast %cst_61 : f32 to vector<2x8x8xf32>
    %136 = arith.cmpf ogt, %2, %135 : vector<2x8x8xf32>
    %cst_62 = arith.constant -1.000000e+10 : f32
    %137 = vector.broadcast %cst_62 : f32 to vector<2x8x8xf32>
    %138 = arith.select %136, %134, %137 : vector<2x8x8xi1>, vector<2x8x8xf32>
    %cst_63 = arith.constant dense<0xFF800000> : vector<2x8xf32>
    %139 = vector.multi_reduction <maximumf>, %138, %cst_63 [2] : vector<2x8x8xf32> to vector<2x8xf32>
    %140 = vector.shape_cast %139 : vector<2x8xf32> to vector<2x8x1xf32>
    %141 = vector.broadcast %140 : vector<2x8x1xf32> to vector<2x8x8xf32>
    %142 = arith.subf %138, %141 : vector<2x8x8xf32>
    %143 = math.exp %142 : vector<2x8x8xf32>
    %cst_64 = arith.constant dense<0.000000e+00> : vector<2x8xf32>
    %144 = vector.multi_reduction <add>, %143, %cst_64 [2] : vector<2x8x8xf32> to vector<2x8xf32>
    %145 = vector.shape_cast %144 : vector<2x8xf32> to vector<2x8x1xf32>
    %146 = vector.broadcast %145 : vector<2x8x1xf32> to vector<2x8x8xf32>
    %147 = arith.divf %143, %146 : vector<2x8x8xf32>
    %c3 = arith.constant 3 : index
    %c0_65 = arith.constant 0 : index
    %c0_66 = arith.constant 0 : index
    %c0_67 = arith.constant 0 : index
    %148 = vector.load %arg31[%c3, %c0_65, %c0_66, %c0_67] : memref<4x2x8x8xf32, #tpu.memory_space<vmem>>, vector<1x2x8x8xf32>
    %149 = vector.shape_cast %148 : vector<1x2x8x8xf32> to vector<2x8x8xf32>
    %150 = vector.shape_cast %147 : vector<2x8x8xf32> to vector<1x2x8x8xf32>
    tpu.vector_store %arg31[%c3, %c0_65, %c0_66, %c0_67], %150 {strides = array<i32>} : memref<4x2x8x8xf32, #tpu.memory_space<vmem>>, vector<1x2x8x8xf32>,
    "tpu.trace_start"() <{level = 10 : i32, message = "bqk,bkd->bqd"}> : () -> ()
    %cst_68 = arith.constant dense<0.000000e+00> : vector<2x8x32xf32>
    %151 = tpu.matmul %147, %131, %cst_68 {dimension_numbers = #tpu.dot_dimension_numbers<[2], [1], [1], [2], [0, 0, 0, 1, 1, 2], [0], [0]>} : vector<2x8x8xf32>, vector<2x8x32xf32>, vector<2x8x32xf32> -> vector<2x8x32xf32>
    "tpu.trace_stop"() : () -> ()
    %152 = arith.addf %120, %151 : vector<2x8x32xf32>
    %153 = vector.shape_cast %152 : vector<2x8x32xf32> to vector<16x32xf32>
    %cst_69 = arith.constant dense<0.000000e+00> : vector<16x32xf32>
    %154 = tpu.matmul %153, %9, %cst_69 {dimension_numbers = #tpu.dot_dimension_numbers<[1], [0], [0], [1], [0, 0, 1, 1], [], []>} : vector<16x32xf32>, vector<32x32xf32>, vector<16x32xf32> -> vector<16x32xf32>
    %155 = vector.broadcast %10 : vector<1x32xf32> to vector<16x32xf32>
    %156 = arith.addf %154, %155 : vector<16x32xf32>
    %157 = arith.addf %0, %156 : vector<16x32xf32>
    %c0_70 = arith.constant 0 : index
    %c0_71 = arith.constant 0 : index
    %158 = vector.load %arg12[%c0_70, %c0_71] : memref<1x32xf32, #tpu.memory_space<vmem>>, vector<1x32xf32>
    %c0_72 = arith.constant 0 : index
    %c0_73 = arith.constant 0 : index
    %159 = vector.load %arg13[%c0_72, %c0_73] : memref<1x32xf32, #tpu.memory_space<vmem>>, vector<1x32xf32>
    %cst_74 = arith.constant dense<0.000000e+00> : vector<16xf32>
    %160 = vector.multi_reduction <add>, %157, %cst_74 [1] : vector<16x32xf32> to vector<16xf32>
    %161 = vector.shape_cast %160 : vector<16xf32> to vector<16x1xf32>
    %cst_75 = arith.constant 3.200000e+01 : f32
    %162 = vector.broadcast %cst_75 : f32 to vector<16x1xf32>
    %163 = arith.divf %161, %162 : vector<16x1xf32>
    %164 = vector.broadcast %163 : vector<16x1xf32> to vector<16x32xf32>
    %165 = arith.subf %157, %164 : vector<16x32xf32>
    %166 = arith.mulf %165, %165 : vector<16x32xf32>
    %cst_76 = arith.constant dense<0.000000e+00> : vector<16xf32>
    %167 = vector.multi_reduction <add>, %166, %cst_76 [1] : vector<16x32xf32> to vector<16xf32>
    %168 = vector.shape_cast %167 : vector<16xf32> to vector<16x1xf32>
    %cst_77 = arith.constant 3.200000e+01 : f32
    %169 = vector.broadcast %cst_77 : f32 to vector<16x1xf32>
    %170 = arith.divf %168, %169 : vector<16x1xf32>
    %171 = vector.broadcast %163 : vector<16x1xf32> to vector<16x32xf32>
    %172 = arith.subf %157, %171 : vector<16x32xf32>
    %cst_78 = arith.constant 9.99999974E-6 : f32
    %173 = vector.broadcast %cst_78 : f32 to vector<16x1xf32>
    %174 = arith.addf %170, %173 : vector<16x1xf32>
    %175 = math.rsqrt %174 : vector<16x1xf32>
    %176 = vector.broadcast %175 : vector<16x1xf32> to vector<16x32xf32>
    %177 = arith.mulf %172, %176 : vector<16x32xf32>
    %178 = vector.broadcast %158 : vector<1x32xf32> to vector<16x32xf32>
    %179 = arith.mulf %177, %178 : vector<16x32xf32>
    %180 = vector.broadcast %159 : vector<1x32xf32> to vector<16x32xf32>
    %181 = arith.addf %179, %180 : vector<16x32xf32>
    %c0_79 = arith.constant 0 : index
    %c0_80 = arith.constant 0 : index
    %c0_81 = arith.constant 0 : index
    %182 = vector.load %arg3[%c0_79, %c0_80, %c0_81] : memref<2x8x8xf32, #tpu.memory_space<vmem>>, vector<2x8x8xf32>
    %c0_82 = arith.constant 0 : index
    %c0_83 = arith.constant 0 : index
    %183 = vector.load %arg14[%c0_82, %c0_83] : memref<32x32xf32, #tpu.memory_space<vmem>>, vector<32x32xf32>
    %c0_84 = arith.constant 0 : index
    %c0_85 = arith.constant 0 : index
    %184 = vector.load %arg15[%c0_84, %c0_85] : memref<1x32xf32, #tpu.memory_space<vmem>>, vector<1x32xf32>
    %c0_86 = arith.constant 0 : index
    %c0_87 = arith.constant 0 : index
    %185 = vector.load %arg16[%c0_86, %c0_87] : memref<32x32xf32, #tpu.memory_space<vmem>>, vector<32x32xf32>
    %c0_88 = arith.constant 0 : index
    %c0_89 = arith.constant 0 : index
    %186 = vector.load %arg17[%c0_88, %c0_89] : memref<1x32xf32, #tpu.memory_space<vmem>>, vector<1x32xf32>
    %c0_90 = arith.constant 0 : index
    %c0_91 = arith.constant 0 : index
    %187 = vector.load %arg18[%c0_90, %c0_91] : memref<32x32xf32, #tpu.memory_space<vmem>>, vector<32x32xf32>
    %c0_92 = arith.constant 0 : index
    %c0_93 = arith.constant 0 : index
    %188 = vector.load %arg19[%c0_92, %c0_93] : memref<1x32xf32, #tpu.memory_space<vmem>>, vector<1x32xf32>
    %c0_94 = arith.constant 0 : index
    %c0_95 = arith.constant 0 : index
    %189 = vector.load %arg20[%c0_94, %c0_95] : memref<32x32xf32, #tpu.memory_space<vmem>>, vector<32x32xf32>
    %c0_96 = arith.constant 0 : index
    %c0_97 = arith.constant 0 : index
    %190 = vector.load %arg21[%c0_96, %c0_97] : memref<1x32xf32, #tpu.memory_space<vmem>>, vector<1x32xf32>
    %cst_98 = arith.constant dense<0.000000e+00> : vector<16x32xf32>
    %191 = tpu.matmul %181, %183, %cst_98 {dimension_numbers = #tpu.dot_dimension_numbers<[1], [0], [0], [1], [0, 0, 1, 1], [], []>} : vector<16x32xf32>, vector<32x32xf32>, vector<16x32xf32> -> vector<16x32xf32>
    %192 = vector.broadcast %184 : vector<1x32xf32> to vector<16x32xf32>
    %193 = arith.addf %191, %192 : vector<16x32xf32>
    %cst_99 = arith.constant dense<0.000000e+00> : vector<16x32xf32>
    %194 = tpu.matmul %1, %185, %cst_99 {dimension_numbers = #tpu.dot_dimension_numbers<[1], [0], [0], [1], [0, 0, 1, 1], [], []>} : vector<16x32xf32>, vector<32x32xf32>, vector<16x32xf32> -> vector<16x32xf32>
    %195 = vector.broadcast %186 : vector<1x32xf32> to vector<16x32xf32>
    %196 = arith.addf %194, %195 : vector<16x32xf32>
    %cst_100 = arith.constant dense<0.000000e+00> : vector<16x32xf32>
    %197 = tpu.matmul %1, %187, %cst_100 {dimension_numbers = #tpu.dot_dimension_numbers<[1], [0], [0], [1], [0, 0, 1, 1], [], []>} : vector<16x32xf32>, vector<32x32xf32>, vector<16x32xf32> -> vector<16x32xf32>
    %198 = vector.broadcast %188 : vector<1x32xf32> to vector<16x32xf32>
    %199 = arith.addf %197, %198 : vector<16x32xf32>
    %200 = vector.shape_cast %193 : vector<16x32xf32> to vector<2x8x32xf32>
    %201 = vector.shape_cast %196 : vector<16x32xf32> to vector<2x8x32xf32>
    %202 = vector.shape_cast %199 : vector<16x32xf32> to vector<2x8x32xf32>
    %203 = tpu.iota {dimensions = array<i32: 2>} : vector<1x1x32xi32>
    %cst_101 = arith.constant 0.000000e+00 : f32
    %204 = vector.broadcast %cst_101 : f32 to vector<2x8x32xf32>
    %c0_i32_102 = arith.constant 0 : i32
    %205 = vector.broadcast %c0_i32_102 : i32 to vector<1x1x32xi32>
    %206 = arith.cmpi sge, %203, %205 : vector<1x1x32xi32>
    %c8_i32_103 = arith.constant 8 : i32
    %207 = vector.broadcast %c8_i32_103 : i32 to vector<1x1x32xi32>
    %208 = arith.cmpi slt, %203, %207 : vector<1x1x32xi32>
    %209 = arith.andi %206, %208 : vector<1x1x32xi1>
    %210 = arith.extui %209 : vector<1x1x32xi1> to vector<1x1x32xi32>
    %211 = arith.sitofp %210 : vector<1x1x32xi32> to vector<1x1x32xf32>
    %212 = vector.broadcast %211 : vector<1x1x32xf32> to vector<2x8x32xf32>
    %213 = arith.mulf %200, %212 : vector<2x8x32xf32>
    %214 = vector.broadcast %211 : vector<1x1x32xf32> to vector<2x8x32xf32>
    %215 = arith.mulf %202, %214 : vector<2x8x32xf32>
    "tpu.trace_start"() <{level = 10 : i32, message = "bqd,bkd->bqk"}> : () -> ()
    %cst_104 = arith.constant dense<0.000000e+00> : vector<2x8x8xf32>
    %216 = tpu.matmul %213, %201, %cst_104 {dimension_numbers = #tpu.dot_dimension_numbers<[2], [2], [1], [1], [0, 0, 0, 1, 1, 1], [0], [0]>} : vector<2x8x32xf32>, vector<2x8x32xf32>, vector<2x8x8xf32> -> vector<2x8x8xf32>
    "tpu.trace_stop"() : () -> ()
    %cst_105 = arith.constant 0.353553385 : f32
    %217 = vector.broadcast %cst_105 : f32 to vector<2x8x8xf32>
    %218 = arith.mulf %216, %217 : vector<2x8x8xf32>
    %cst_106 = arith.constant 0.000000e+00 : f32
    %219 = vector.broadcast %cst_106 : f32 to vector<2x8x8xf32>
    %220 = arith.cmpf ogt, %182, %219 : vector<2x8x8xf32>
    %cst_107 = arith.constant -1.000000e+10 : f32
    %221 = vector.broadcast %cst_107 : f32 to vector<2x8x8xf32>
    %222 = arith.select %220, %218, %221 : vector<2x8x8xi1>, vector<2x8x8xf32>
    %cst_108 = arith.constant dense<0xFF800000> : vector<2x8xf32>
    %223 = vector.multi_reduction <maximumf>, %222, %cst_108 [2] : vector<2x8x8xf32> to vector<2x8xf32>
    %224 = vector.shape_cast %223 : vector<2x8xf32> to vector<2x8x1xf32>
    %225 = vector.broadcast %224 : vector<2x8x1xf32> to vector<2x8x8xf32>
    %226 = arith.subf %222, %225 : vector<2x8x8xf32>
    %227 = math.exp %226 : vector<2x8x8xf32>
    %cst_109 = arith.constant dense<0.000000e+00> : vector<2x8xf32>
    %228 = vector.multi_reduction <add>, %227, %cst_109 [2] : vector<2x8x8xf32> to vector<2x8xf32>
    %229 = vector.shape_cast %228 : vector<2x8xf32> to vector<2x8x1xf32>
    %230 = vector.broadcast %229 : vector<2x8x1xf32> to vector<2x8x8xf32>
    %231 = arith.divf %227, %230 : vector<2x8x8xf32>
    %c0_110 = arith.constant 0 : index
    %c0_111 = arith.constant 0 : index
    %c0_112 = arith.constant 0 : index
    %c0_113 = arith.constant 0 : index
    %232 = vector.load %arg32[%c0_110, %c0_111, %c0_112, %c0_113] : memref<4x2x8x8xf32, #tpu.memory_space<vmem>>, vector<1x2x8x8xf32>
    %233 = vector.shape_cast %232 : vector<1x2x8x8xf32> to vector<2x8x8xf32>
    %234 = vector.shape_cast %231 : vector<2x8x8xf32> to vector<1x2x8x8xf32>
    tpu.vector_store %arg32[%c0_110, %c0_111, %c0_112, %c0_113], %234 {strides = array<i32>} : memref<4x2x8x8xf32, #tpu.memory_space<vmem>>, vector<1x2x8x8xf32>,
    "tpu.trace_start"() <{level = 10 : i32, message = "bqk,bkd->bqd"}> : () -> ()
    %cst_114 = arith.constant dense<0.000000e+00> : vector<2x8x32xf32>
    %235 = tpu.matmul %231, %215, %cst_114 {dimension_numbers = #tpu.dot_dimension_numbers<[2], [1], [1], [2], [0, 0, 0, 1, 1, 2], [0], [0]>} : vector<2x8x8xf32>, vector<2x8x32xf32>, vector<2x8x32xf32> -> vector<2x8x32xf32>
    "tpu.trace_stop"() : () -> ()
    %236 = arith.addf %204, %235 : vector<2x8x32xf32>
    %c8_i32_115 = arith.constant 8 : i32
    %237 = vector.broadcast %c8_i32_115 : i32 to vector<1x1x32xi32>
    %238 = arith.cmpi sge, %203, %237 : vector<1x1x32xi32>
    %c16_i32_116 = arith.constant 16 : i32
    %239 = vector.broadcast %c16_i32_116 : i32 to vector<1x1x32xi32>
    %240 = arith.cmpi slt, %203, %239 : vector<1x1x32xi32>
    %241 = arith.andi %238, %240 : vector<1x1x32xi1>
    %242 = arith.extui %241 : vector<1x1x32xi1> to vector<1x1x32xi32>
    %243 = arith.sitofp %242 : vector<1x1x32xi32> to vector<1x1x32xf32>
    %244 = vector.broadcast %243 : vector<1x1x32xf32> to vector<2x8x32xf32>
    %245 = arith.mulf %200, %244 : vector<2x8x32xf32>
    %246 = vector.broadcast %243 : vector<1x1x32xf32> to vector<2x8x32xf32>
    %247 = arith.mulf %202, %246 : vector<2x8x32xf32>
    "tpu.trace_start"() <{level = 10 : i32, message = "bqd,bkd->bqk"}> : () -> ()
    %cst_117 = arith.constant dense<0.000000e+00> : vector<2x8x8xf32>
    %248 = tpu.matmul %245, %201, %cst_117 {dimension_numbers = #tpu.dot_dimension_numbers<[2], [2], [1], [1], [0, 0, 0, 1, 1, 1], [0], [0]>} : vector<2x8x32xf32>, vector<2x8x32xf32>, vector<2x8x8xf32> -> vector<2x8x8xf32>
    "tpu.trace_stop"() : () -> ()
    %cst_118 = arith.constant 0.353553385 : f32
    %249 = vector.broadcast %cst_118 : f32 to vector<2x8x8xf32>
    %250 = arith.mulf %248, %249 : vector<2x8x8xf32>
    %cst_119 = arith.constant 0.000000e+00 : f32
    %251 = vector.broadcast %cst_119 : f32 to vector<2x8x8xf32>
    %252 = arith.cmpf ogt, %182, %251 : vector<2x8x8xf32>
    %cst_120 = arith.constant -1.000000e+10 : f32
    %253 = vector.broadcast %cst_120 : f32 to vector<2x8x8xf32>
    %254 = arith.select %252, %250, %253 : vector<2x8x8xi1>, vector<2x8x8xf32>
    %cst_121 = arith.constant dense<0xFF800000> : vector<2x8xf32>
    %255 = vector.multi_reduction <maximumf>, %254, %cst_121 [2] : vector<2x8x8xf32> to vector<2x8xf32>
    %256 = vector.shape_cast %255 : vector<2x8xf32> to vector<2x8x1xf32>
    %257 = vector.broadcast %256 : vector<2x8x1xf32> to vector<2x8x8xf32>
    %258 = arith.subf %254, %257 : vector<2x8x8xf32>
    %259 = math.exp %258 : vector<2x8x8xf32>
    %cst_122 = arith.constant dense<0.000000e+00> : vector<2x8xf32>
    %260 = vector.multi_reduction <add>, %259, %cst_122 [2] : vector<2x8x8xf32> to vector<2x8xf32>
    %261 = vector.shape_cast %260 : vector<2x8xf32> to vector<2x8x1xf32>
    %262 = vector.broadcast %261 : vector<2x8x1xf32> to vector<2x8x8xf32>
    %263 = arith.divf %259, %262 : vector<2x8x8xf32>
    %c1_123 = arith.constant 1 : index
    %c0_124 = arith.constant 0 : index
    %c0_125 = arith.constant 0 : index
    %c0_126 = arith.constant 0 : index
    %264 = vector.load %arg32[%c1_123, %c0_124, %c0_125, %c0_126] : memref<4x2x8x8xf32, #tpu.memory_space<vmem>>, vector<1x2x8x8xf32>
    %265 = vector.shape_cast %264 : vector<1x2x8x8xf32> to vector<2x8x8xf32>
    %266 = vector.shape_cast %263 : vector<2x8x8xf32> to vector<1x2x8x8xf32>
    tpu.vector_store %arg32[%c1_123, %c0_124, %c0_125, %c0_126], %266 {strides = array<i32>} : memref<4x2x8x8xf32, #tpu.memory_space<vmem>>, vector<1x2x8x8xf32>,
    "tpu.trace_start"() <{level = 10 : i32, message = "bqk,bkd->bqd"}> : () -> ()
    %cst_127 = arith.constant dense<0.000000e+00> : vector<2x8x32xf32>
    %267 = tpu.matmul %263, %247, %cst_127 {dimension_numbers = #tpu.dot_dimension_numbers<[2], [1], [1], [2], [0, 0, 0, 1, 1, 2], [0], [0]>} : vector<2x8x8xf32>, vector<2x8x32xf32>, vector<2x8x32xf32> -> vector<2x8x32xf32>
    "tpu.trace_stop"() : () -> ()
    %268 = arith.addf %236, %267 : vector<2x8x32xf32>
    %c16_i32_128 = arith.constant 16 : i32
    %269 = vector.broadcast %c16_i32_128 : i32 to vector<1x1x32xi32>
    %270 = arith.cmpi sge, %203, %269 : vector<1x1x32xi32>
    %c24_i32_129 = arith.constant 24 : i32
    %271 = vector.broadcast %c24_i32_129 : i32 to vector<1x1x32xi32>
    %272 = arith.cmpi slt, %203, %271 : vector<1x1x32xi32>
    %273 = arith.andi %270, %272 : vector<1x1x32xi1>
    %274 = arith.extui %273 : vector<1x1x32xi1> to vector<1x1x32xi32>
    %275 = arith.sitofp %274 : vector<1x1x32xi32> to vector<1x1x32xf32>
    %276 = vector.broadcast %275 : vector<1x1x32xf32> to vector<2x8x32xf32>
    %277 = arith.mulf %200, %276 : vector<2x8x32xf32>
    %278 = vector.broadcast %275 : vector<1x1x32xf32> to vector<2x8x32xf32>
    %279 = arith.mulf %202, %278 : vector<2x8x32xf32>
    "tpu.trace_start"() <{level = 10 : i32, message = "bqd,bkd->bqk"}> : () -> ()
    %cst_130 = arith.constant dense<0.000000e+00> : vector<2x8x8xf32>
    %280 = tpu.matmul %277, %201, %cst_130 {dimension_numbers = #tpu.dot_dimension_numbers<[2], [2], [1], [1], [0, 0, 0, 1, 1, 1], [0], [0]>} : vector<2x8x32xf32>, vector<2x8x32xf32>, vector<2x8x8xf32> -> vector<2x8x8xf32>
    "tpu.trace_stop"() : () -> ()
    %cst_131 = arith.constant 0.353553385 : f32
    %281 = vector.broadcast %cst_131 : f32 to vector<2x8x8xf32>
    %282 = arith.mulf %280, %281 : vector<2x8x8xf32>
    %cst_132 = arith.constant 0.000000e+00 : f32
    %283 = vector.broadcast %cst_132 : f32 to vector<2x8x8xf32>
    %284 = arith.cmpf ogt, %182, %283 : vector<2x8x8xf32>
    %cst_133 = arith.constant -1.000000e+10 : f32
    %285 = vector.broadcast %cst_133 : f32 to vector<2x8x8xf32>
    %286 = arith.select %284, %282, %285 : vector<2x8x8xi1>, vector<2x8x8xf32>
    %cst_134 = arith.constant dense<0xFF800000> : vector<2x8xf32>
    %287 = vector.multi_reduction <maximumf>, %286, %cst_134 [2] : vector<2x8x8xf32> to vector<2x8xf32>
    %288 = vector.shape_cast %287 : vector<2x8xf32> to vector<2x8x1xf32>
    %289 = vector.broadcast %288 : vector<2x8x1xf32> to vector<2x8x8xf32>
    %290 = arith.subf %286, %289 : vector<2x8x8xf32>
    %291 = math.exp %290 : vector<2x8x8xf32>
    %cst_135 = arith.constant dense<0.000000e+00> : vector<2x8xf32>
    %292 = vector.multi_reduction <add>, %291, %cst_135 [2] : vector<2x8x8xf32> to vector<2x8xf32>
    %293 = vector.shape_cast %292 : vector<2x8xf32> to vector<2x8x1xf32>
    %294 = vector.broadcast %293 : vector<2x8x1xf32> to vector<2x8x8xf32>
    %295 = arith.divf %291, %294 : vector<2x8x8xf32>
    %c2_136 = arith.constant 2 : index
    %c0_137 = arith.constant 0 : index
    %c0_138 = arith.constant 0 : index
    %c0_139 = arith.constant 0 : index
    %296 = vector.load %arg32[%c2_136, %c0_137, %c0_138, %c0_139] : memref<4x2x8x8xf32, #tpu.memory_space<vmem>>, vector<1x2x8x8xf32>
    %297 = vector.shape_cast %296 : vector<1x2x8x8xf32> to vector<2x8x8xf32>
    %298 = vector.shape_cast %295 : vector<2x8x8xf32> to vector<1x2x8x8xf32>
    tpu.vector_store %arg32[%c2_136, %c0_137, %c0_138, %c0_139], %298 {strides = array<i32>} : memref<4x2x8x8xf32, #tpu.memory_space<vmem>>, vector<1x2x8x8xf32>,
    "tpu.trace_start"() <{level = 10 : i32, message = "bqk,bkd->bqd"}> : () -> ()
    %cst_140 = arith.constant dense<0.000000e+00> : vector<2x8x32xf32>
    %299 = tpu.matmul %295, %279, %cst_140 {dimension_numbers = #tpu.dot_dimension_numbers<[2], [1], [1], [2], [0, 0, 0, 1, 1, 2], [0], [0]>} : vector<2x8x8xf32>, vector<2x8x32xf32>, vector<2x8x32xf32> -> vector<2x8x32xf32>
    "tpu.trace_stop"() : () -> ()
    %300 = arith.addf %268, %299 : vector<2x8x32xf32>
    %c24_i32_141 = arith.constant 24 : i32
    %301 = vector.broadcast %c24_i32_141 : i32 to vector<1x1x32xi32>
    %302 = arith.cmpi sge, %203, %301 : vector<1x1x32xi32>
    %c32_i32_142 = arith.constant 32 : i32
    %303 = vector.broadcast %c32_i32_142 : i32 to vector<1x1x32xi32>
    %304 = arith.cmpi slt, %203, %303 : vector<1x1x32xi32>
    %305 = arith.andi %302, %304 : vector<1x1x32xi1>
    %306 = arith.extui %305 : vector<1x1x32xi1> to vector<1x1x32xi32>
    %307 = arith.sitofp %306 : vector<1x1x32xi32> to vector<1x1x32xf32>
    %308 = vector.broadcast %307 : vector<1x1x32xf32> to vector<2x8x32xf32>
    %309 = arith.mulf %200, %308 : vector<2x8x32xf32>
    %310 = vector.broadcast %307 : vector<1x1x32xf32> to vector<2x8x32xf32>
    %311 = arith.mulf %202, %310 : vector<2x8x32xf32>
    "tpu.trace_start"() <{level = 10 : i32, message = "bqd,bkd->bqk"}> : () -> ()
    %cst_143 = arith.constant dense<0.000000e+00> : vector<2x8x8xf32>
    %312 = tpu.matmul %309, %201, %cst_143 {dimension_numbers = #tpu.dot_dimension_numbers<[2], [2], [1], [1], [0, 0, 0, 1, 1, 1], [0], [0]>} : vector<2x8x32xf32>, vector<2x8x32xf32>, vector<2x8x8xf32> -> vector<2x8x8xf32>
    "tpu.trace_stop"() : () -> ()
    %cst_144 = arith.constant 0.353553385 : f32
    %313 = vector.broadcast %cst_144 : f32 to vector<2x8x8xf32>
    %314 = arith.mulf %312, %313 : vector<2x8x8xf32>
    %cst_145 = arith.constant 0.000000e+00 : f32
    %315 = vector.broadcast %cst_145 : f32 to vector<2x8x8xf32>
    %316 = arith.cmpf ogt, %182, %315 : vector<2x8x8xf32>
    %cst_146 = arith.constant -1.000000e+10 : f32
    %317 = vector.broadcast %cst_146 : f32 to vector<2x8x8xf32>
    %318 = arith.select %316, %314, %317 : vector<2x8x8xi1>, vector<2x8x8xf32>
    %cst_147 = arith.constant dense<0xFF800000> : vector<2x8xf32>
    %319 = vector.multi_reduction <maximumf>, %318, %cst_147 [2] : vector<2x8x8xf32> to vector<2x8xf32>
    %320 = vector.shape_cast %319 : vector<2x8xf32> to vector<2x8x1xf32>
    %321 = vector.broadcast %320 : vector<2x8x1xf32> to vector<2x8x8xf32>
    %322 = arith.subf %318, %321 : vector<2x8x8xf32>
    %323 = math.exp %322 : vector<2x8x8xf32>
    %cst_148 = arith.constant dense<0.000000e+00> : vector<2x8xf32>
    %324 = vector.multi_reduction <add>, %323, %cst_148 [2] : vector<2x8x8xf32> to vector<2x8xf32>
    %325 = vector.shape_cast %324 : vector<2x8xf32> to vector<2x8x1xf32>
    %326 = vector.broadcast %325 : vector<2x8x1xf32> to vector<2x8x8xf32>
    %327 = arith.divf %323, %326 : vector<2x8x8xf32>
    %c3_149 = arith.constant 3 : index
    %c0_150 = arith.constant 0 : index
    %c0_151 = arith.constant 0 : index
    %c0_152 = arith.constant 0 : index
    %328 = vector.load %arg32[%c3_149, %c0_150, %c0_151, %c0_152] : memref<4x2x8x8xf32, #tpu.memory_space<vmem>>, vector<1x2x8x8xf32>
    %329 = vector.shape_cast %328 : vector<1x2x8x8xf32> to vector<2x8x8xf32>
    %330 = vector.shape_cast %327 : vector<2x8x8xf32> to vector<1x2x8x8xf32>
    tpu.vector_store %arg32[%c3_149, %c0_150, %c0_151, %c0_152], %330 {strides = array<i32>} : memref<4x2x8x8xf32, #tpu.memory_space<vmem>>, vector<1x2x8x8xf32>,
    "tpu.trace_start"() <{level = 10 : i32, message = "bqk,bkd->bqd"}> : () -> ()
    %cst_153 = arith.constant dense<0.000000e+00> : vector<2x8x32xf32>
    %331 = tpu.matmul %327, %311, %cst_153 {dimension_numbers = #tpu.dot_dimension_numbers<[2], [1], [1], [2], [0, 0, 0, 1, 1, 2], [0], [0]>} : vector<2x8x8xf32>, vector<2x8x32xf32>, vector<2x8x32xf32> -> vector<2x8x32xf32>
    "tpu.trace_stop"() : () -> ()
    %332 = arith.addf %300, %331 : vector<2x8x32xf32>
    %333 = vector.shape_cast %332 : vector<2x8x32xf32> to vector<16x32xf32>
    %cst_154 = arith.constant dense<0.000000e+00> : vector<16x32xf32>
    %334 = tpu.matmul %333, %189, %cst_154 {dimension_numbers = #tpu.dot_dimension_numbers<[1], [0], [0], [1], [0, 0, 1, 1], [], []>} : vector<16x32xf32>, vector<32x32xf32>, vector<16x32xf32> -> vector<16x32xf32>
    %335 = vector.broadcast %190 : vector<1x32xf32> to vector<16x32xf32>
    %336 = arith.addf %334, %335 : vector<16x32xf32>
    %337 = arith.addf %181, %336 : vector<16x32xf32>
    %c0_155 = arith.constant 0 : index
    %c0_156 = arith.constant 0 : index
    %338 = vector.load %arg22[%c0_155, %c0_156] : memref<1x32xf32, #tpu.memory_space<vmem>>, vector<1x32xf32>
    %c0_157 = arith.constant 0 : index
    %c0_158 = arith.constant 0 : index
    %339 = vector.load %arg23[%c0_157, %c0_158] : memref<1x32xf32, #tpu.memory_space<vmem>>, vector<1x32xf32>
    %cst_159 = arith.constant dense<0.000000e+00> : vector<16xf32>
    %340 = vector.multi_reduction <add>, %337, %cst_159 [1] : vector<16x32xf32> to vector<16xf32>
    %341 = vector.shape_cast %340 : vector<16xf32> to vector<16x1xf32>
    %cst_160 = arith.constant 3.200000e+01 : f32
    %342 = vector.broadcast %cst_160 : f32 to vector<16x1xf32>
    %343 = arith.divf %341, %342 : vector<16x1xf32>
    %344 = vector.broadcast %343 : vector<16x1xf32> to vector<16x32xf32>
    %345 = arith.subf %337, %344 : vector<16x32xf32>
    %346 = arith.mulf %345, %345 : vector<16x32xf32>
    %cst_161 = arith.constant dense<0.000000e+00> : vector<16xf32>
    %347 = vector.multi_reduction <add>, %346, %cst_161 [1] : vector<16x32xf32> to vector<16xf32>
    %348 = vector.shape_cast %347 : vector<16xf32> to vector<16x1xf32>
    %cst_162 = arith.constant 3.200000e+01 : f32
    %349 = vector.broadcast %cst_162 : f32 to vector<16x1xf32>
    %350 = arith.divf %348, %349 : vector<16x1xf32>
    %351 = vector.broadcast %343 : vector<16x1xf32> to vector<16x32xf32>
    %352 = arith.subf %337, %351 : vector<16x32xf32>
    %cst_163 = arith.constant 9.99999974E-6 : f32
    %353 = vector.broadcast %cst_163 : f32 to vector<16x1xf32>
    %354 = arith.addf %350, %353 : vector<16x1xf32>
    %355 = math.rsqrt %354 : vector<16x1xf32>
    %356 = vector.broadcast %355 : vector<16x1xf32> to vector<16x32xf32>
    %357 = arith.mulf %352, %356 : vector<16x32xf32>
    %358 = vector.broadcast %338 : vector<1x32xf32> to vector<16x32xf32>
    %359 = arith.mulf %357, %358 : vector<16x32xf32>
    %360 = vector.broadcast %339 : vector<1x32xf32> to vector<16x32xf32>
    %361 = arith.addf %359, %360 : vector<16x32xf32>
    %c0_164 = arith.constant 0 : index
    %c0_165 = arith.constant 0 : index
    %362 = vector.load %arg24[%c0_164, %c0_165] : memref<32x64xf32, #tpu.memory_space<vmem>>, vector<32x64xf32>
    %cst_166 = arith.constant dense<0.000000e+00> : vector<16x64xf32>
    %363 = tpu.matmul %361, %362, %cst_166 {dimension_numbers = #tpu.dot_dimension_numbers<[1], [0], [0], [1], [0, 0, 1, 1], [], []>} : vector<16x32xf32>, vector<32x64xf32>, vector<16x64xf32> -> vector<16x64xf32>
    %c0_167 = arith.constant 0 : index
    %c0_168 = arith.constant 0 : index
    %364 = vector.load %arg25[%c0_167, %c0_168] : memref<1x64xf32, #tpu.memory_space<vmem>>, vector<1x64xf32>
    %365 = vector.broadcast %364 : vector<1x64xf32> to vector<16x64xf32>
    %366 = arith.addf %363, %365 : vector<16x64xf32>
    %cst_169 = arith.constant 0.000000e+00 : f32
    %367 = vector.broadcast %cst_169 : f32 to vector<16x64xf32>
    %368 = arith.maximumf %366, %367 : vector<16x64xf32>
    %c0_170 = arith.constant 0 : index
    %c0_171 = arith.constant 0 : index
    %369 = vector.load %arg26[%c0_170, %c0_171] : memref<64x32xf32, #tpu.memory_space<vmem>>, vector<64x32xf32>
    %cst_172 = arith.constant dense<0.000000e+00> : vector<16x32xf32>
    %370 = tpu.matmul %368, %369, %cst_172 {dimension_numbers = #tpu.dot_dimension_numbers<[1], [0], [0], [1], [0, 0, 1, 1], [], []>} : vector<16x64xf32>, vector<64x32xf32>, vector<16x32xf32> -> vector<16x32xf32>
    %c0_173 = arith.constant 0 : index
    %c0_174 = arith.constant 0 : index
    %371 = vector.load %arg27[%c0_173, %c0_174] : memref<1x32xf32, #tpu.memory_space<vmem>>, vector<1x32xf32>
    %372 = vector.broadcast %371 : vector<1x32xf32> to vector<16x32xf32>
    %373 = arith.addf %370, %372 : vector<16x32xf32>
    %374 = arith.addf %361, %373 : vector<16x32xf32>
    %c0_175 = arith.constant 0 : index
    %c0_176 = arith.constant 0 : index
    %375 = vector.load %arg28[%c0_175, %c0_176] : memref<1x32xf32, #tpu.memory_space<vmem>>, vector<1x32xf32>
    %c0_177 = arith.constant 0 : index
    %c0_178 = arith.constant 0 : index
    %376 = vector.load %arg29[%c0_177, %c0_178] : memref<1x32xf32, #tpu.memory_space<vmem>>, vector<1x32xf32>
    %cst_179 = arith.constant dense<0.000000e+00> : vector<16xf32>
    %377 = vector.multi_reduction <add>, %374, %cst_179 [1] : vector<16x32xf32> to vector<16xf32>
    %378 = vector.shape_cast %377 : vector<16xf32> to vector<16x1xf32>
    %cst_180 = arith.constant 3.200000e+01 : f32
    %379 = vector.broadcast %cst_180 : f32 to vector<16x1xf32>
    %380 = arith.divf %378, %379 : vector<16x1xf32>
    %381 = vector.broadcast %380 : vector<16x1xf32> to vector<16x32xf32>
    %382 = arith.subf %374, %381 : vector<16x32xf32>
    %383 = arith.mulf %382, %382 : vector<16x32xf32>
    %cst_181 = arith.constant dense<0.000000e+00> : vector<16xf32>
    %384 = vector.multi_reduction <add>, %383, %cst_181 [1] : vector<16x32xf32> to vector<16xf32>
    %385 = vector.shape_cast %384 : vector<16xf32> to vector<16x1xf32>
    %cst_182 = arith.constant 3.200000e+01 : f32
    %386 = vector.broadcast %cst_182 : f32 to vector<16x1xf32>
    %387 = arith.divf %385, %386 : vector<16x1xf32>
    %388 = vector.broadcast %380 : vector<16x1xf32> to vector<16x32xf32>
    %389 = arith.subf %374, %388 : vector<16x32xf32>
    %cst_183 = arith.constant 9.99999974E-6 : f32
    %390 = vector.broadcast %cst_183 : f32 to vector<16x1xf32>
    %391 = arith.addf %387, %390 : vector<16x1xf32>
    %392 = math.rsqrt %391 : vector<16x1xf32>
    %393 = vector.broadcast %392 : vector<16x1xf32> to vector<16x32xf32>
    %394 = arith.mulf %389, %393 : vector<16x32xf32>
    %395 = vector.broadcast %375 : vector<1x32xf32> to vector<16x32xf32>
    %396 = arith.mulf %394, %395 : vector<16x32xf32>
    %397 = vector.broadcast %376 : vector<1x32xf32> to vector<16x32xf32>
    %398 = arith.addf %396, %397 : vector<16x32xf32>
    %c0_184 = arith.constant 0 : index
    %c0_185 = arith.constant 0 : index
    %399 = vector.load %arg30[%c0_184, %c0_185] : memref<16x32xf32, #tpu.memory_space<vmem>>, vector<16x32xf32>
    tpu.vector_store %arg30[%c0_184, %c0_185], %398 {strides = array<i32>} : memref<16x32xf32, #tpu.memory_space<vmem>>, vector<16x32xf32>,
    return
  }
}

</mosaic_0001>

<bundles_post_ra>
// kernel: _lambda_.9
= control target key start
LH: loop header
LB: loop body
LE: loop exit
PB: predicated region body
PF: predicated region fallthrough
CT: control target
= control target key end

     0   :  { %vm28_vm0 = vcmask 261120   ;;  %s240_s0 = inlined_call_operand.vmem [shape: f32[16,32], index: 0, kind: input, shape index: {}]   ;;  %s241_s1 = inlined_call_operand.vmem [shape: f32[32,22], index: 1, kind: input, shape index: {}]   ;;  %s242_s2 = inlined_call_operand.vmem [shape: f32[1,22], index: 2, kind: input, shape index: {}]   ;;  %s243_s3 = inlined_call_operand.hbm [shape: f32[16,22], index: 3, kind: output, shape index: {}]  }
   0x1   :  { %v17_v0 = vld [vmem:[%s241_s1] sm:$0xff]  ;;  %v18_v1 = vld [vmem:[%s241_s1 + $0x8] sm:$0xff]  ;;  %v19_v2 = vld [vmem:[%s241_s1 + $0x10] sm:$0xff] }
   0x2   :  { %v149_v3 = vpack.c.bf16 %v18_v1, %v17_v0  ;;  %v20_v4 = vld [vmem:[%s241_s1 + $0x18] sm:$0xff]  ;;  %v15_v5 = vld [vmem:[%s240_s0] sm:$0xff] }
   0x3   :  { %v153_v6 = vpack.c.bf16 %v20_v4, %v19_v2  ;;  %146 = vmatprep.mubr.msk.f32.mxu0 %vm28_vm0, %v15_v5 }
   0x4   :  { %8 = vsyncpa [#allocation3], 0  ;;  %150 = vmatprep.subr.bf16.mxu0 %v149_v3  ;;  %v16_v7 = vld [vmem:[%s240_s0 + $0x8] sm:$0xff]  ;;  %v129_v8 = vld [vmem:[%s242_s2] ss:$0 sm:$0xff]  ;;  %s184_s1 = smov [#allocation2]  }
   0x5   :  { %152 = vmatpush3.bf16.msra.mxu0 %v149_v3  ;;  %s118_s26 = sshll.u32 %s184_s1, 4  ;;  %vm110_vm1 = vcmask 179200   ;;  %s119_s26 = int_to_ptr.vmem [resolvable:$true] %s118_s26 }
   0x6   :  { %154 = vmatprep.subr.bf16.mxu0 %v153_v6  ;;  %s160_s27 = scalar_lea.vmem %s119_s26, 256  ;;  %p165_p1 = scmp.lt.s32.totalorder %s119_s26, %s119_s26 }
   0x7   :  { %p161_p0 = scmp.ne.s32.totalorder %s119_s26, %s160_s27  ;;  %p166_p2 = scmp.lt.s32.totalorder %s160_s27, %s160_s27 }
   0x9   :  { %156 = vmatpush3.bf16.msra.mxu0 %v153_v6  ;;  %p167_p3 = por %p166_p2, %p165_p1 }
   0xb   :  { %p168_p4 = pnand %p167_p3, %p161_p0 }
   0xc   :  { %147 = vmatmul.mubr.msk.f32.vlgmr.msra.gmra.mrb[0].mxu0 %vm28_vm0, %v16_v7 }
  0xdf   :  { %v148_v9 = vpop.f32.mrb[0].mxu0 }
  0xe0   :  { %v107_v10 = vadd.f32 %v148_v9, %v129_v8  ;;  %v101_v11 = vpop.f32.mrb[1].mxu0 }
  0xe1   :  { %v102_v12 = vadd.f32 %v129_v8, %v101_v11 }
  0xe2   :  { %112 = vst.msk [vmem:[#allocation2 + $0x8] sm:$0xff] %vm110_vm1, %v107_v10 }
  0xe3   :  { %111 = vst.msk [vmem:[#allocation2] sm:$0xff] %vm110_vm1, %v102_v12 }
  0xe4   :  { %171 = shalt.err (!%p168_p4)
}
  0xe5   :  { %s172_s2 = scalar_lea.hbm %s243_s3, 256 }
  0xe6   :  { %p173_p5 = scmp.ne.s32.totalorder %s243_s3, %s172_s2  ;;  %p176_p6 = scmp.lt.u32.totalorder %s172_s2, %s243_s3 }
  0xe8   :  { %p178_p7 = pnand %p176_p6, %p173_p5 }
  0xea   :  { %181 = shalt.err (!%p178_p7)
}
  0xeb   :  { %s185_s6 = smov 128   ;;  %s186_s7 = smov 8  }
  0xec   :  { %124 = dma.vmem_to_hbm [thread:$0]  %s119_s26, 256, %s243_s3, [#allocation3], %s185_s6, %s185_s6, %s186_s7  }
  0xed   :  { %182 = dma.done.wait [#allocation3], 256  }
  0xee   :  { %183 = vsyncadd [#allocation3], 4294967040 }
  0xef   :  { %128 = vsyncpa [#allocation3], 1 }

// kernel: _lambda_.5
= control target key start
LH: loop header
LB: loop body
LE: loop exit
PB: predicated region body
PF: predicated region fallthrough
CT: control target
= control target key end

     0   :  { %vm91_vm0 = vcmask 261120   ;;  %v2442_v20 = vmov 0.0   ;;  %vm2443_vm1 = vmmov 0   ;;  %v335_v21 = vlaneseq  ;;  %s2908_s2 = inlined_call_operand.vmem [shape: f32[32,32], index: 2, kind: input, shape index: {}]   ;;  %s2909_s0 = inlined_call_operand.vmem [shape: f32[16,32], index: 0, kind: input, shape index: {}]   ;;  %s2910_s4 = inlined_call_operand.vmem [shape: f32[32,32], index: 4, kind: input, shape index: {}]   ;;  %s2911_s6 = inlined_call_operand.vmem [shape: f32[32,32], index: 6, kind: input, shape index: {}]   ;;  %s2912_s3 = inlined_call_operand.vmem [shape: f32[1,32], index: 3, kind: input, shape index: {}, may-alias: {3,5,7,9,11,15,17}]   ;;  %s2913_s5 = inlined_call_operand.vmem [shape: f32[1,32], index: 5, kind: input, shape index: {}, may-alias: {3,5,7,9,11,15,17}]   ;;  %s2914_s7 = inlined_call_operand.vmem [shape: f32[1,32], index: 7, kind: input, shape index: {}, may-alias: {3,5,7,9,11,15,17}]   ;;  %s2915_s1 = inlined_call_operand.vmem [shape: f32[2,8,8], index: 1, kind: input, shape index: {}]   ;;  %s2916_s19 = inlined_call_operand.vmem [shape: f32[4,2,8,8], index: 19, kind: output, shape index: {1}]   ;;  %s2917_s8 = inlined_call_operand.vmem [shape: f32[32,32], index: 8, kind: input, shape index: {}]   ;;  %s2918_s9 = inlined_call_operand.vmem [shape: f32[1,32], index: 9, kind: input, shape index: {}, may-alias: {3,5,7,9,11,15,17}]   ;;  %s2919_s12 = inlined_call_operand.vmem [shape: f32[32,64], index: 12, kind: input, shape index: {}]   ;;  %s2920_s14 = inlined_call_operand.vmem [shape: f32[64,32], index: 14, kind: input, shape index: {}]   ;;  %s2921_s10 = inlined_call_operand.vmem [shape: f32[1,32], index: 10, kind: input, shape index: {}, may-alias: {10,16}]   ;;  %s2922_s11 = inlined_call_operand.vmem [shape: f32[1,32], index: 11, kind: input, shape index: {}, may-alias: {3,5,7,9,11,15,17}]   ;;  %s2923_s13 = inlined_call_operand.vmem [shape: f32[1,64], index: 13, kind: input, shape index: {}]   ;;  %s2924_s15 = inlined_call_operand.vmem [shape: f32[1,32], index: 15, kind: input, shape index: {}, may-alias: {3,5,7,9,11,15,17}]   ;;  %s2925_s16 = inlined_call_operand.vmem [shape: f32[1,32], index: 16, kind: input, shape index: {}, may-alias: {10,16}]   ;;  %s2926_s17 = inlined_call_operand.vmem [shape: f32[1,32], index: 17, kind: input, shape index: {}, may-alias: {3,5,7,9,11,15,17}]   ;;  %s2927_s18 = inlined_call_operand.vmem [shape: f32[16,32], index: 18, kind: output, shape index: {0}]  }
   0x1   :  { %2932 = sst [smem:[#allocation2_spill]] %s2908_s2  ;;  %v2050_v23 = vld [vmem:[%s2912_s3] ss:$0 sm:$0xff]  ;;  %vm504_vm13 = vcmask 64512   ;;  %v2690_v59 = vld [vmem:[%s2915_s1 + $0x8] sm:$0xff]  ;;  %vm1912_vm15 = vcmask 523264  }
   0x2   :  { %2933 = sst [smem:[#allocation3_spill]] %s2909_s0  ;;  %s2936_s20 = sld [smem:[#allocation2_spill]]  ;;  %v336_v22 = vand.u32 127, %v335_v21  ;;  %v2053_v34 = vld [vmem:[%s2913_s5] ss:$0 sm:$0xff]  ;;  %vm501_vm14 = vcmp.gt.f32.partialorder %v2690_v59, 0.0 }
   0x3   :  { %2934 = sst [smem:[#allocation4_spill]] %s2910_s4  ;;  %s2937_s26 = sld [smem:[#allocation3_spill]]  ;;  %v2056_v47 = vld [vmem:[%s2914_s7] ss:$0 sm:$0xff] }
   0x4   :  { %2935 = sst [smem:[#allocation5_spill]] %s2911_s6  ;;  %s2938_s29 = sld [smem:[#allocation4_spill]]  ;;  %vm1005_vm2 = vcmp.ge.s32.totalorder %v336_v22, 16  ;;  %vm1006_vm3 = vcmp.lt.s32.totalorder %v336_v22, 24  ;;  %vm1337_vm4 = vcmp.ge.s32.totalorder %v336_v22, 24  ;;  %vm1338_vm5 = vcmp.lt.s32.totalorder %v336_v22, 32 }
   0x5   :  { %s2939_s0 = sld [smem:[#allocation5_spill]]  ;;  %vm1007_vm6 = vmand %vm1005_vm2, %vm1006_vm3  ;;  %vm529_vm8 = vcmp.ge.s32.totalorder %v336_v22, 8  ;;  %vm530_vm9 = vcmp.lt.s32.totalorder %v336_v22, 16  ;;  %vm338_vm10 = vcmp.lt.s32.totalorder %v336_v22, 8  ;;  %v2684_v56 = vld [vmem:[%s2915_s1] sm:$0xff] }
   0x6   :  { %vm1339_vm7 = vmand %vm1337_vm4, %vm1338_vm5  ;;  %v2075_v25 = vsel %vm1007_vm6, 1.0, %v2442_v20  ;;  %v2625_v37 = vsel %vm338_vm10, 1.0, %v2442_v20  ;;  %vm500_vm12 = vcmp.gt.f32.partialorder %v2684_v56, 0.0 }
   0x7   :  { %v2084_v26 = vsel %vm1339_vm7, 1.0, %v2442_v20  ;;  %vm531_vm11 = vmand %vm529_vm8, %vm530_vm9 }
   0x8   :  { %v65_v0 = vld [vmem:[%s2936_s20] sm:$0xff]  ;;  %v66_v1 = vld [vmem:[%s2936_s20 + $0x8] sm:$0xff]  ;;  %v67_v2 = vld [vmem:[%s2936_s20 + $0x10] sm:$0xff]  ;;  %v2064_v38 = vsel %vm531_vm11, 1.0, %v2442_v20 }
   0x9   :  { %v2332_v3 = vpack.c.bf16 %v66_v1, %v65_v0  ;;  %v68_v4 = vld [vmem:[%s2936_s20 + $0x18] sm:$0xff]  ;;  %v2559_v5 = vld [vmem:[%s2937_s26] sm:$0xff]  ;;  %v2586_v15 = vld [vmem:[%s2937_s26 + $0x8] sm:$0xff] }
   0xa   :  { %v2336_v6 = vpack.c.bf16 %v68_v4, %v67_v2  ;;  %2186 = vmatprep.mubr.msk.f32.mxu1 %vm91_vm0, %v2559_v5  ;;  %v70_v7 = vld [vmem:[%s2938_s29] sm:$0xff]  ;;  %v71_v8 = vld [vmem:[%s2938_s29 + $0x8] sm:$0xff]  ;;  %2208 = vmatprep.mubr.msk.f32.mxu0 %vm91_vm0, %v2559_v5  ;;  %v72_v13 = vld [vmem:[%s2938_s29 + $0x10] sm:$0xff] }
   0xb   :  { %2333 = vmatprep.subr.bf16.mxu1 %v2332_v3  ;;  %v75_v9 = vld [vmem:[%s2939_s0] sm:$0xff]  ;;  %v76_v10 = vld [vmem:[%s2939_s0 + $0x8] sm:$0xff]  ;;  %v2340_v12 = vpack.c.bf16 %v71_v8, %v70_v7  ;;  %v73_v14 = vld [vmem:[%s2938_s29 + $0x18] sm:$0xff] }
   0xc   :  { %2335 = vmatpush3.bf16.msra.mxu1 %v2332_v3  ;;  %v2348_v11 = vpack.c.bf16 %v76_v10, %v75_v9  ;;  %v2344_v16 = vpack.c.bf16 %v73_v14, %v72_v13  ;;  %v77_v17 = vld [vmem:[%s2939_s0 + $0x10] sm:$0xff]  ;;  %v78_v18 = vld [vmem:[%s2939_s0 + $0x18] sm:$0xff] }
   0xd   :  { %2337 = vmatprep.subr.bf16.mxu1 %v2336_v6  ;;  %v2352_v19 = vpack.c.bf16 %v78_v18, %v77_v17 }
   0xe   :  { %2349 = vmatprep.subr.bf16.mxu0 %v2348_v11 }
   0xf   :  { %2351 = vmatpush3.bf16.msra.mxu0 %v2348_v11 }
  0x10   :  { %2339 = vmatpush3.bf16.msra.mxu1 %v2336_v6  ;;  %2353 = vmatprep.subr.bf16.mxu0 %v2352_v19 }
  0x11   :  { %2341 = vmatprep.subr.bf16.mxu1 %v2340_v12 }
  0x13   :  { %2187 = vmatmul.mubr.msk.f32.vlgmr.msra.gmra.mrb[0].mxu1 %vm91_vm0, %v2586_v15  ;;  %2355 = vmatpush3.bf16.msra.mxu0 %v2352_v19 }
  0x14   :  { %2343 = vmatpush3.bf16.msra.mxu1 %v2340_v12  ;;  %2197 = vmatprep.mubr.msk.f32.mxu1 %vm91_vm0, %v2559_v5 }
  0x15   :  { %2345 = vmatprep.subr.bf16.mxu1 %v2344_v16  ;;  %2221 = vmatprep.subr.mxu0 %v2442_v20 }
  0x16   :  { %2209 = vmatmul.mubr.msk.f32.vlgmr.msra.gmra.mrb[0].mxu0 %vm91_vm0, %v2586_v15 }
  0x17   :  { %2223 = vmatprep.mubr.msk.f32.mxu0 %vm2443_vm1, %v2442_v20 }
  0x18   :  { %2347 = vmatpush3.bf16.msra.mxu1 %v2344_v16 }
  0x19   :  { %2211 = vmatprep.subr.mxu1 %v2442_v20 }
  0x1b   :  { %2198 = vmatmul.mubr.msk.f32.vlgmr.msra.gmra.mrb[2].mxu1 %vm91_vm0, %v2586_v15 }
  0x1c   :  { %2213 = vmatprep.mubr.msk.f32.mxu1 %vm2443_vm1, %v2442_v20 }
  0xe6   :  { %v2188_v24 = vpop.f32.mrb[0].mxu1 }
  0xe7   :  { %v170_v27 = vadd.f32 %v2188_v24, %v2050_v23  ;;  %v164_v28 = vpop.f32.mrb[1].mxu1 }
  0xe8   :  { %v165_v29 = vadd.f32 %v2050_v23, %v164_v28 }
  0xe9   :  { %v2613_v30 = vmul.f32 %v2075_v25, %v170_v27  ;;  %v2615_v31 = vmul.f32 %v2084_v26, %v170_v27  ;;  %v343_v43 = vmul.f32 %v2625_v37, %v170_v27  ;;  %v535_v44 = vmul.f32 %v2064_v38, %v170_v27  ;;  %v2210_v45 = vpop.f32.mrb[0].mxu0 }
  0xea   :  { %v2617_v32 = vmul.f32 %v2075_v25, %v165_v29  ;;  %v2619_v33 = vmul.f32 %v2084_v26, %v165_v29  ;;  %v342_v40 = vmul.f32 %v2625_v37, %v165_v29  ;;  %v534_v41 = vmul.f32 %v2064_v38, %v165_v29  ;;  %v326_v46 = vpop.f32.mrb[1].mxu0 }
  0xeb   :  { %v2661_v48 = vadd.f32 %v2210_v45, %v2056_v47  ;;  %v2663_v49 = vadd.f32 %v2056_v47, %v326_v46 }
  0xed   :  { %v536_v50 = vmul.f32 %v2064_v38, %v2663_v49  ;;  %v537_v51 = vmul.f32 %v2064_v38, %v2661_v48  ;;  %v2668_v52 = vmul.f32 %v2075_v25, %v2663_v49  ;;  %v2671_v53 = vmul.f32 %v2075_v25, %v2661_v48 }
  0xee   :  { %v2199_v35 = vpop.f32.mrb[2].mxu1  ;;  %v2674_v54 = vmul.f32 %v2084_v26, %v2663_v49  ;;  %v2677_v55 = vmul.f32 %v2084_v26, %v2661_v48 }
  0xef   :  { %v245_v36 = vpop.f32.mrb[3].mxu1  ;;  %v2637_v42 = vadd.f32 %v2199_v35, %v2053_v34 }
  0xf0   :  { %v2628_v39 = vadd.f32 %v2053_v34, %v245_v36 }
  0xf2   :  { %2212 = vmatpush3.xpose.msk.msra.mxu1 %vm91_vm0, %v2628_v39  ;;  %2222 = vmatpush3.xpose.msk.msra.mxu0 %vm91_vm0, %v2628_v39 }
  0xf3   :  { %2216 = vmatprep.subr.mxu1 %v2442_v20  ;;  %2231 = vmatprep.subr.mxu0 %v2442_v20 }
  0xf5   :  { %2214 = vmatmul.mubr.msk.f32.vlgmr.msra.gmra.mrb[4].mxu1 %vm91_vm0, %v342_v40  ;;  %2224 = vmatmul.mubr.msk.f32.vlgmr.msra.gmra.mrb[2].mxu0 %vm91_vm0, %v534_v41 }
  0xf6   :  { %2217 = vmatpush3.xpose.msk.msra.mxu1 %vm91_vm0, %v2637_v42  ;;  %2218 = vmatprep.mubr.msk.f32.mxu1 %vm2443_vm1, %v2442_v20 }
  0xf7   :  { %2226 = vmatprep.subr.mxu1 %v2442_v20  ;;  %2233 = vmatprep.mubr.msk.f32.mxu0 %vm2443_vm1, %v2442_v20 }
  0xf8   :  { %2232 = vmatpush3.msra.mxu0 %v536_v50 }
  0xf9   :  { %2219 = vmatmul.mubr.msk.f32.vlgmr.msra.gmra.mrb[6].mxu1 %vm91_vm0, %v343_v43  ;;  %2241 = vmatprep.subr.mxu0 %v2442_v20 }
  0xfa   :  { %2227 = vmatpush3.xpose.msk.msra.mxu1 %vm91_vm0, %v2637_v42  ;;  %2228 = vmatprep.mubr.msk.f32.mxu1 %vm2443_vm1, %v2442_v20 }
  0xfb   :  { %2236 = vmatprep.subr.mxu1 %v2442_v20 }
  0xfd   :  { %2229 = vmatmul.mubr.msk.f32.vlgmr.msra.gmra.mrb[8].mxu1 %vm91_vm0, %v535_v44 }
  0xfe   :  { %2238 = vmatprep.mubr.msk.f32.mxu1 %vm2443_vm1, %v2442_v20  ;;  %2237 = vmatpush3.msra.mxu1 %v537_v51 }
  0xff   :  { %2246 = vmatprep.subr.mxu1 %v2442_v20 }
 0x1c8   :  { %v418_v57 = vpop.f32.mrb[4].mxu1  ;;  %v607_v58 = vpop.f32.mrb[2].mxu0 }
 0x1c9   :  { %v498_v60 = vmul.f32 0.35355338, %v418_v57  ;;  %v684_v61 = vmul.f32 0.35355338, %v607_v58  ;;  %v2215_v62 = vpop.f32.mrb[5].mxu1  ;;  %v2225_v63 = vpop.f32.mrb[3].mxu0  ;;  %v344_v57 = vmul.f32 %v2625_v37, %v2663_v49 }
 0x1ca   :  { %v345_v62 = vmul.f32 %v2625_v37, %v2661_v48 }
 0x1cb   :  { %v686_v0 = vsel %vm500_vm12, %v684_v61, -1e+10  ;;  %v502_v1 = vsel %vm500_vm12, %v498_v60, -1e+10 }
 0x1cc   :  { %v494_v2 = vpop.f32.mrb[6].mxu1  ;;  %v688_v3 = vsel %vm504_vm13, %v686_v0, -inf  ;;  %v505_v4 = vsel %vm504_vm13, %v502_v1, -inf }
 0x1cd   :  { %v499_v6 = vmul.f32 0.35355338, %v494_v2  ;;  %689 = vmax.xlane.f32.xlu0 %v688_v3  ;;  %506 = vmax.xlane.f32.xlu1 %v505_v4  ;;  %v2220_v7 = vpop.f32.mrb[7].mxu1 }
 0x1cf   :  { %v503_v8 = vsel %vm501_vm14, %v499_v6, -1e+10 }
 0x1d0   :  { %v680_v9 = vpop.f32.mrb[8].mxu1  ;;  %v508_v10 = vsel %vm504_vm13, %v503_v8, -inf }
 0x1d1   :  { %v685_v11 = vmul.f32 0.35355338, %v680_v9  ;;  %509 = vmax.xlane.f32.xlu1 %v508_v10  ;;  %v2230_v12 = vpop.f32.mrb[9].mxu1 }
 0x1d3   :  { %v687_v13 = vsel %vm501_vm14, %v685_v11, -1e+10 }
 0x1d4   :  { %v691_v14 = vsel %vm504_vm13, %v687_v13, -inf }
 0x1d5   :  { %692 = vmax.xlane.f32.xlu0 %v691_v14 }
 0x25a   :  { %v690_v16 = vpop.xlane.xlu0 %689  ;;  %v507_v17 = vpop.xlane.xlu1 %506 }
 0x25b   :  { %v694_v18 = vsub.f32 %v686_v0, %v690_v16  ;;  %v511_v19 = vsub.f32 %v502_v1, %v507_v17 }
 0x25d   :  { %v696_v21 = vmul.f32 1.442695, %v694_v18  ;;  %v513_v22 = vmul.f32 1.442695, %v511_v19 }
 0x25e   :  { %v510_v23 = vpop.xlane.xlu1 %509 }
 0x25f   :  { %2402 = vpow2.f32 %v696_v21  ;;  %v512_v24 = vsub.f32 %v503_v8, %v510_v23 }
 0x260   :  { %2404 = vpow2.f32 %v513_v22 }
 0x261   :  { %v515_v27 = vmul.f32 1.442695, %v512_v24 }
 0x262   :  { %v693_v25 = vpop.xlane.xlu0 %692 }
 0x263   :  { %v695_v26 = vsub.f32 %v687_v13, %v693_v25 }
 0x265   :  { %v698_v28 = vmul.f32 1.442695, %v695_v26 }
 0x267   :  { %2406 = vpow2.f32 %v698_v28 }
 0x268   :  { %2408 = vpow2.f32 %v515_v27 }
 0x269   :  { %v2403_v29 = vpop.eup %2402 }
 0x26a   :  { %v700_v34 = vsel %vm504_vm13, %v2403_v29, 0.0  ;;  %v2405_v35 = vpop.eup %2404 }
 0x26b   :  { %701 = vadd.xlane.f32.xlu0 %v700_v34  ;;  %v517_v36 = vsel %vm504_vm13, %v2405_v35, 0.0 }
 0x26f   :  { %518 = vadd.xlane.f32.xlu0 %v517_v36 }
 0x271   :  { %v2407_v38 = vpop.eup %2406 }
 0x272   :  { %v703_v40 = vsel %vm504_vm13, %v2407_v38, 0.0  ;;  %v2409_v41 = vpop.eup %2408 }
 0x273   :  { %704 = vadd.xlane.f32.xlu1 %v703_v40  ;;  %v520_v43 = vsel %vm504_vm13, %v2409_v41, 0.0 }
 0x277   :  { %521 = vadd.xlane.f32.xlu1 %v520_v43 }
 0x2f8   :  { %v702_v44 = vpop.xlane.xlu0 %701 }
 0x2f9   :  { %2410 = vrcp.f32 %v702_v44 }
 0x2fc   :  { %v519_v45 = vpop.xlane.xlu0 %518 }
 0x2fd   :  { %2412 = vrcp.f32 %v519_v45 }
 0x300   :  { %v705_v46 = vpop.xlane.xlu1 %704 }
 0x301   :  { %2414 = vrcp.f32 %v705_v46 }
 0x303   :  { %v2411_v47 = vpop.eup %2410 }
 0x304   :  { %v707_v50 = vmul.f32 %v2411_v47, %v2403_v29  ;;  %v522_v51 = vpop.xlane.xlu1 %521 }
 0x305   :  { %2416 = vrcp.f32 %v522_v51  ;;  %v81_v51 = vld [vmem:[%s2917_s8 + $0x8] sm:$0xff] }
 0x306   :  { %2069 = vst.msk [vmem:[%s2916_s19 + $0x10] sm:$0xff] %vm504_vm13, %v707_v50  ;;  %2234 = vmatmul.mubr.msk.f32.vlgmr.msra.gmra.mrb[4].mxu0 %vm504_vm13, %v707_v50  ;;  %v80_v50 = vld [vmem:[%s2917_s8] sm:$0xff] }
 0x307   :  { %v2413_v58 = vpop.eup %2412  ;;  %2242 = vmatpush3.msra.mxu0 %v344_v57  ;;  %2243 = vmatprep.mubr.msk.f32.mxu0 %vm2443_vm1, %v2442_v20  ;;  %v2356_v57 = vpack.c.bf16 %v81_v51, %v80_v50 }
 0x308   :  { %v524_v60 = vmul.f32 %v2413_v58, %v2405_v35  ;;  %2251 = vmatprep.subr.mxu0 %v2442_v20  ;;  %v82_v58 = vld [vmem:[%s2917_s8 + $0x10] sm:$0xff] }
 0x30a   :  { %527 = vst.msk [vmem:[%s2916_s19] sm:$0xff] %vm504_vm13, %v524_v60 }
 0x30b   :  { %v2415_v49 = vpop.eup %2414 }
 0x30c   :  { %v709_v61 = vmul.f32 %v2415_v49, %v2407_v38 }
 0x30e   :  { %2070 = vst.msk [vmem:[%s2916_s19 + $0x18] sm:$0xff] %vm504_vm13, %v709_v61  ;;  %2239 = vmatmul.mubr.msk.f32.vlgmr.msra.gmra.mrb[10].mxu1 %vm504_vm13, %v709_v61  ;;  %2244 = vmatmul.mubr.msk.f32.vlgmr.msra.gmra.mrb[4].mxu0 %vm504_vm13, %v524_v60  ;;  %v83_v60 = vld [vmem:[%s2917_s8 + $0x18] sm:$0xff] }
 0x30f   :  { %v2417_v63 = vpop.eup %2416  ;;  %2247 = vmatpush3.msra.mxu1 %v345_v62  ;;  %2252 = vmatpush3.xpose.msk.msra.mxu0 %vm91_vm0, %v2628_v39  ;;  %v2360_v49 = vpack.c.bf16 %v83_v60, %v82_v58 }
 0x310   :  { %v526_v0 = vmul.f32 %v2417_v63, %v2409_v41  ;;  %2253 = vmatprep.mubr.msk.f32.mxu0 %vm2443_vm1, %v2442_v20  ;;  %2261 = vmatprep.subr.mxu0 %v2442_v20 }
 0x311   :  { %2248 = vmatprep.mubr.msk.f32.mxu1 %vm2443_vm1, %v2442_v20  ;;  %2256 = vmatprep.subr.mxu1 %v2442_v20 }
 0x312   :  { %528 = vst.msk [vmem:[%s2916_s19 + $0x8] sm:$0xff] %vm504_vm13, %v526_v0  ;;  %2254 = vmatmul.mubr.msk.f32.vlgmr.msra.gmra.mrb[6].mxu0 %vm91_vm0, %v2617_v32 }
 0x313   :  { %2262 = vmatpush3.msra.mxu0 %v2668_v52  ;;  %2263 = vmatprep.mubr.msk.f32.mxu0 %vm2443_vm1, %v2442_v20 }
 0x314   :  { %2271 = vmatprep.subr.mxu0 %v2442_v20 }
 0x316   :  { %2249 = vmatmul.mubr.msk.f32.vlgmr.msra.gmra.mrb[10].mxu1 %vm504_vm13, %v526_v0 }
 0x317   :  { %2257 = vmatpush3.xpose.msk.msra.mxu1 %vm91_vm0, %v2637_v42  ;;  %2258 = vmatprep.mubr.msk.f32.mxu1 %vm2443_vm1, %v2442_v20 }
 0x318   :  { %2266 = vmatprep.subr.mxu1 %v2442_v20 }
 0x31a   :  { %2259 = vmatmul.mubr.msk.f32.vlgmr.msra.gmra.mrb[12].mxu1 %vm91_vm0, %v2613_v30 }
 0x31b   :  { %2267 = vmatpush3.msra.mxu1 %v2671_v53  ;;  %2268 = vmatprep.mubr.msk.f32.mxu1 %vm2443_vm1, %v2442_v20 }
 0x31c   :  { %2276 = vmatprep.subr.mxu1 %v2442_v20 }
 0x3e5   :  { %v1083_v32 = vpop.f32.mrb[6].mxu0 }
 0x3e6   :  { %v1160_v37 = vmul.f32 0.35355338, %v1083_v32  ;;  %v2255_v48 = vpop.f32.mrb[7].mxu0  ;;  %v2093_v32 = vld [vmem:[%s2918_s9] ss:$0 sm:$0xff] }
 0x3e8   :  { %v1162_v52 = vsel %vm500_vm12, %v1160_v37, -1e+10 }
 0x3e9   :  { %v1164_v1 = vsel %vm504_vm13, %v1162_v52, -inf }
 0x3ea   :  { %1165 = vmax.xlane.f32.xlu0 %v1164_v1 }
 0x3ed   :  { %v1156_v2 = vpop.f32.mrb[12].mxu1 }
 0x3ee   :  { %v1161_v3 = vmul.f32 0.35355338, %v1156_v2  ;;  %v2260_v4 = vpop.f32.mrb[13].mxu1 }
 0x3f0   :  { %v1163_v30 = vsel %vm501_vm14, %v1161_v3, -1e+10 }
 0x3f1   :  { %v1167_v53 = vsel %vm504_vm13, %v1163_v30, -inf }
 0x3f2   :  { %1168 = vmax.xlane.f32.xlu1 %v1167_v53 }
 0x477   :  { %v1166_v6 = vpop.xlane.xlu0 %1165 }
 0x478   :  { %v1170_v7 = vsub.f32 %v1162_v52, %v1166_v6 }
 0x47a   :  { %v1172_v8 = vmul.f32 1.442695, %v1170_v7 }
 0x47c   :  { %2418 = vpow2.f32 %v1172_v8 }
 0x47f   :  { %v1169_v9 = vpop.xlane.xlu1 %1168 }
 0x480   :  { %v1171_v10 = vsub.f32 %v1163_v30, %v1169_v9 }
 0x482   :  { %v1174_v11 = vmul.f32 1.442695, %v1171_v10 }
 0x484   :  { %2420 = vpow2.f32 %v1174_v11 }
 0x486   :  { %v2419_v12 = vpop.eup %2418 }
 0x487   :  { %v1176_v13 = vsel %vm504_vm13, %v2419_v12, 0.0 }
 0x488   :  { %1177 = vadd.xlane.f32.xlu0 %v1176_v13 }
 0x48e   :  { %v2421_v14 = vpop.eup %2420 }
 0x48f   :  { %v1179_v16 = vsel %vm504_vm13, %v2421_v14, 0.0 }
 0x490   :  { %1180 = vadd.xlane.f32.xlu1 %v1179_v16 }
 0x515   :  { %v1178_v17 = vpop.xlane.xlu0 %1177 }
 0x516   :  { %2422 = vrcp.f32 %v1178_v17  ;;  %v1805_v17 = vld [vmem:[%s2919_s12 + $0x10] sm:$0xff] }
 0x51d   :  { %v1181_v18 = vpop.xlane.xlu1 %1180 }
 0x51e   :  { %2424 = vrcp.f32 %v1181_v18  ;;  %v1806_v18 = vld [vmem:[%s2919_s12 + $0x18] sm:$0xff] }
 0x520   :  { %v2423_v19 = vpop.eup %2422 }
 0x521   :  { %v1183_v21 = vmul.f32 %v2423_v19, %v2419_v12  ;;  %v2368_v19 = vpack.c.bf16 %v1806_v18, %v1805_v17  ;;  %v2104_v17 = vld [vmem:[%s2925_s16] ss:$0 sm:$0xff] }
 0x523   :  { %2080 = vst.msk [vmem:[%s2916_s19 + $0x20] sm:$0xff] %vm504_vm13, %v1183_v21  ;;  %2264 = vmatmul.mubr.msk.f32.vlgmr.msra.gmra.mrb[4].mxu0 %vm504_vm13, %v1183_v21  ;;  %v1897_v21 = vld [vmem:[%s2920_s14] sm:$0xff] }
 0x524   :  { %2272 = vmatpush3.xpose.msk.msra.mxu0 %vm91_vm0, %v2628_v39  ;;  %2273 = vmatprep.mubr.msk.f32.mxu0 %vm2443_vm1, %v2442_v20 }
 0x525   :  { %2281 = vmatprep.subr.mxu0 %v2442_v20 }
 0x527   :  { %2274 = vmatmul.mubr.msk.f32.vlgmr.msra.gmra.mrb[8].mxu0 %vm91_vm0, %v2619_v33 }
 0x528   :  { %v2425_v22 = vpop.eup %2424  ;;  %2282 = vmatpush3.msra.mxu0 %v2674_v54  ;;  %2283 = vmatprep.mubr.msk.f32.mxu0 %vm2443_vm1, %v2442_v20 }
 0x529   :  { %v1185_v23 = vmul.f32 %v2425_v22, %v2421_v14  ;;  %2357 = vmatprep.subr.bf16.mxu0 %v2356_v57  ;;  %v1804_v14 = vld [vmem:[%s2919_s12 + $0x8] sm:$0xff] }
 0x52a   :  { %v1898_v22 = vld [vmem:[%s2920_s14 + $0x8] sm:$0xff] }
 0x52b   :  { %2081 = vst.msk [vmem:[%s2916_s19 + $0x28] sm:$0xff] %vm504_vm13, %v1185_v23  ;;  %2269 = vmatmul.mubr.msk.f32.vlgmr.msra.gmra.mrb[10].mxu1 %vm504_vm13, %v1185_v23  ;;  %v1899_v23 = vld [vmem:[%s2920_s14 + $0x10] sm:$0xff] }
 0x52c   :  { %2277 = vmatpush3.xpose.msk.msra.mxu1 %vm91_vm0, %v2637_v42  ;;  %2278 = vmatprep.mubr.msk.f32.mxu1 %vm2443_vm1, %v2442_v20 }
 0x52d   :  { %2286 = vmatprep.subr.mxu1 %v2442_v20 }
 0x52f   :  { %2279 = vmatmul.mubr.msk.f32.vlgmr.msra.gmra.mrb[14].mxu1 %vm91_vm0, %v2615_v31 }
 0x530   :  { %2287 = vmatpush3.msra.mxu1 %v2677_v55  ;;  %2288 = vmatprep.mubr.msk.f32.mxu1 %vm2443_vm1, %v2442_v20 }
 0x5fa   :  { %v1415_v33 = vpop.f32.mrb[8].mxu0 }
 0x5fb   :  { %v1492_v39 = vmul.f32 0.35355338, %v1415_v33  ;;  %v2275_v54 = vpop.f32.mrb[9].mxu0  ;;  %v2372_v33 = vpack.c.bf16 %v1898_v22, %v1897_v21  ;;  %v2105_v21 = vld [vmem:[%s2926_s17] ss:$0 sm:$0xff] }
 0x5fd   :  { %v1494_v24 = vsel %vm500_vm12, %v1492_v39, -1e+10  ;;  %v1900_v39 = vld [vmem:[%s2920_s14 + $0x18] sm:$0xff] }
 0x5fe   :  { %v1496_v42 = vsel %vm504_vm13, %v1494_v24, -inf  ;;  %v2376_v54 = vpack.c.bf16 %v1900_v39, %v1899_v23 }
 0x5ff   :  { %1497 = vmax.xlane.f32.xlu0 %v1496_v42  ;;  %v1902_v42 = vld [vmem:[%s2920_s14 + $0x28] sm:$0xff] }
 0x602   :  { %v1488_v25 = vpop.f32.mrb[14].mxu1 }
 0x603   :  { %v1493_v26 = vmul.f32 0.35355338, %v1488_v25  ;;  %v2280_v27 = vpop.f32.mrb[15].mxu1 }
 0x605   :  { %v1495_v31 = vsel %vm501_vm14, %v1493_v26, -1e+10 }
 0x606   :  { %v1499_v55 = vsel %vm504_vm13, %v1495_v31, -inf }
 0x607   :  { %1500 = vmax.xlane.f32.xlu1 %v1499_v55 }
 0x68c   :  { %v1498_v28 = vpop.xlane.xlu0 %1497 }
 0x68d   :  { %v1502_v20 = vsub.f32 %v1494_v24, %v1498_v28  ;;  %v1901_v24 = vld [vmem:[%s2920_s14 + $0x20] sm:$0xff] }
 0x68e   :  { %v2380_v25 = vpack.c.bf16 %v1902_v42, %v1901_v24 }
 0x68f   :  { %v1504_v29 = vmul.f32 1.442695, %v1502_v20 }
 0x691   :  { %2426 = vpow2.f32 %v1504_v29 }
 0x694   :  { %v1501_v34 = vpop.xlane.xlu1 %1500 }
 0x695   :  { %v1503_v35 = vsub.f32 %v1495_v31, %v1501_v34  ;;  %v2096_v34 = vld [vmem:[%s2921_s10] ss:$0 sm:$0xff] }
 0x697   :  { %v1506_v56 = vmul.f32 1.442695, %v1503_v35 }
 0x699   :  { %2428 = vpow2.f32 %v1506_v56 }
 0x69b   :  { %v2427_v36 = vpop.eup %2426 }
 0x69c   :  { %v1508_v38 = vsel %vm504_vm13, %v2427_v36, 0.0 }
 0x69d   :  { %1509 = vadd.xlane.f32.xlu0 %v1508_v38  ;;  %v2097_v38 = vld [vmem:[%s2922_s11] ss:$0 sm:$0xff] }
 0x6a3   :  { %v2429_v40 = vpop.eup %2428 }
 0x6a4   :  { %v1511_v41 = vsel %vm504_vm13, %v2429_v40, 0.0 }
 0x6a5   :  { %1512 = vadd.xlane.f32.xlu1 %v1511_v41 }
 0x72a   :  { %v1510_v59 = vpop.xlane.xlu0 %1509 }
 0x72b   :  { %2430 = vrcp.f32 %v1510_v59 }
 0x732   :  { %v1513_v43 = vpop.xlane.xlu1 %1512 }
 0x733   :  { %2432 = vrcp.f32 %v1513_v43 }
 0x735   :  { %v2431_v44 = vpop.eup %2430 }
 0x736   :  { %v1515_v45 = vmul.f32 %v2431_v44, %v2427_v36  ;;  %v1903_v44 = vld [vmem:[%s2920_s14 + $0x30] sm:$0xff] }
 0x738   :  { %2089 = vst.msk [vmem:[%s2916_s19 + $0x30] sm:$0xff] %vm504_vm13, %v1515_v45  ;;  %2284 = vmatmul.mubr.msk.f32.vlgmr.msra.gmra.mrb[4].mxu0 %vm504_vm13, %v1515_v45  ;;  %v1904_v45 = vld [vmem:[%s2920_s14 + $0x38] sm:$0xff] }
 0x739   :  { %2359 = vmatpush3.bf16.msra.mxu0 %v2356_v57 }
 0x73a   :  { %2361 = vmatprep.subr.bf16.mxu0 %v2360_v49 }
 0x73d   :  { %v2433_v46 = vpop.eup %2432  ;;  %2363 = vmatpush3.bf16.msra.mxu0 %v2360_v49 }
 0x73e   :  { %v1517_v47 = vmul.f32 %v2433_v46, %v2429_v40  ;;  %2373 = vmatprep.subr.bf16.mxu0 %v2372_v33  ;;  %v2384_v46 = vpack.c.bf16 %v1904_v45, %v1903_v44 }
 0x740   :  { %2090 = vst.msk [vmem:[%s2916_s19 + $0x38] sm:$0xff] %vm504_vm13, %v1517_v47  ;;  %2289 = vmatmul.mubr.msk.f32.vlgmr.msra.gmra.mrb[10].mxu1 %vm504_vm13, %v1517_v47  ;;  %v2098_v47 = vld [vmem:[%s2923_s13] ss:$0 sm:$0xff] }
 0x80b   :  { %v1590_v61 = vpop.f32.mrb[4].mxu0 }
 0x80c   :  { %v2285_v62 = vpop.f32.mrb[5].mxu0  ;;  %2299 = vmatprep.mubr.msk.f32.mxu0 %vm91_vm0, %v1590_v61  ;;  %v2101_v61 = vld [vmem:[%s2924_s15] ss:$0 sm:$0xff] }
 0x813   :  { %v1663_v63 = vpop.f32.mrb[10].mxu1 }
 0x814   :  { %v2290_v0 = vpop.f32.mrb[11].mxu1  ;;  %2300 = vmatmul.mubr.msk.f32.vlgmr.msra.gmra.mrb[10].mxu0 %vm91_vm0, %v1663_v63 }
 0x815   :  { %2375 = vmatpush3.bf16.msra.mxu0 %v2372_v33 }
 0x816   :  { %2377 = vmatprep.subr.bf16.mxu0 %v2376_v54 }
 0x819   :  { %2379 = vmatpush3.bf16.msra.mxu0 %v2376_v54 }
 0x81a   :  { %2381 = vmatprep.subr.bf16.mxu0 %v2380_v25 }
 0x81d   :  { %2383 = vmatpush3.bf16.msra.mxu0 %v2380_v25 }
 0x81e   :  { %2385 = vmatprep.subr.bf16.mxu0 %v2384_v46 }
 0x821   :  { %2387 = vmatpush3.bf16.msra.mxu0 %v2384_v46 }
 0x8e7   :  { %v2301_v37 = vpop.f32.mrb[10].mxu0 }
 0x8e8   :  { %v1753_v48 = vadd.f32 %v2301_v37, %v2093_v32  ;;  %v1747_v52 = vpop.f32.mrb[11].mxu0 }
 0x8e9   :  { %v1748_v1 = vadd.f32 %v2093_v32, %v1747_v52 }
 0x8ea   :  { %v1757_v2 = vadd.f32 %v1753_v48, %v2586_v15 }
 0x8eb   :  { %v1756_v3 = vadd.f32 %v1748_v1, %v2559_v5  ;;  %v1803_v5 = vld [vmem:[%s2919_s12] sm:$0xff] }
 0x8ec   :  { %v1763_v4 = vsel %vm91_vm0, %v1757_v2, 0.0  ;;  %v2364_v16 = vpack.c.bf16 %v1804_v14, %v1803_v5 }
 0x8ed   :  { %1764 = vadd.xlane.f32.xlu1 %v1763_v4  ;;  %v1760_v30 = vsel %vm91_vm0, %v1756_v3, 0.0 }
 0x8ee   :  { %1761 = vadd.xlane.f32.xlu0 %v1760_v30  ;;  %2365 = vmatprep.subr.bf16.mxu1 %v2364_v16 }
 0x8ef   :  { %2367 = vmatpush3.bf16.msra.mxu1 %v2364_v16 }
 0x8f0   :  { %2369 = vmatprep.subr.bf16.mxu1 %v2368_v19 }
 0x8f3   :  { %2371 = vmatpush3.bf16.msra.mxu1 %v2368_v19 }
 0x97a   :  { %v1765_v53 = vpop.xlane.xlu1 %1764 }
 0x97b   :  { %v1768_v6 = vmul.f32 0.03125, %v1765_v53  ;;  %v1762_v7 = vpop.xlane.xlu0 %1761 }
 0x97c   :  { %v1767_v8 = vmul.f32 0.03125, %v1762_v7 }
 0x97d   :  { %v1770_v9 = vsub.f32 %v1757_v2, %v1768_v6 }
 0x97e   :  { %v1769_v10 = vsub.f32 %v1756_v3, %v1767_v8 }
 0x97f   :  { %v1772_v11 = vmul.f32 %v1770_v9, %v1770_v9 }
 0x980   :  { %v1771_v12 = vmul.f32 %v1769_v10, %v1769_v10 }
 0x981   :  { %v1776_v13 = vsel %vm91_vm0, %v1772_v11, 0.0 }
 0x982   :  { %1777 = vadd.xlane.f32.xlu1 %v1776_v13  ;;  %v1773_v15 = vsel %vm91_vm0, %v1771_v12, 0.0 }
 0x983   :  { %1774 = vadd.xlane.f32.xlu0 %v1773_v15 }
 0xa0f   :  { %v1778_v26 = vpop.xlane.xlu1 %1777 }
 0xa10   :  { %v1780_v27 = vmul.f32 0.03125, %v1778_v26  ;;  %v1775_v31 = vpop.xlane.xlu0 %1774 }
 0xa11   :  { %v1779_v55 = vmul.f32 0.03125, %v1775_v31 }
 0xa12   :  { %v1782_v28 = vadd.f32 1e-05, %v1780_v27 }
 0xa13   :  { %v1781_v20 = vadd.f32 1e-05, %v1779_v55 }
 0xa14   :  { %2434 = vrsqrt.f32 %v1782_v28 }
 0xa15   :  { %2436 = vrsqrt.f32 %v1781_v20 }
 0xa1e   :  { %v2435_v29 = vpop.eup %2434 }
 0xa1f   :  { %v2437_v35 = vpop.eup %2436  ;;  %v1786_v56 = vmul.f32 %v2435_v29, %v1770_v9 }
 0xa20   :  { %v1785_v36 = vmul.f32 %v2437_v35, %v1769_v10 }
 0xa21   :  { %v1794_v40 = vmul.f32 %v2096_v34, %v1786_v56 }
 0xa22   :  { %v1793_v41 = vmul.f32 %v2096_v34, %v1785_v36 }
 0xa23   :  { %v1802_v43 = vadd.f32 %v2097_v38, %v1794_v40 }
 0xa24   :  { %v1801_v59 = vadd.f32 %v2097_v38, %v1793_v41 }
 0xa26   :  { %2310 = vmatprep.mubr.msk.f32.mxu1 %vm91_vm0, %v1801_v59 }
 0xa27   :  { %2311 = vmatmul.mubr.msk.f32.vlgmr.msra.gmra.mrb[16].mxu1 %vm91_vm0, %v1802_v43 }
 0xafa   :  { %v2312_v50 = vpop.f32.mrb[16].mxu1 }
 0xafb   :  { %v1892_v51 = vadd.f32 %v2312_v50, %v2098_v47  ;;  %v1886_v57 = vpop.f32.mrb[17].mxu1 }
 0xafc   :  { %v1887_v58 = vadd.f32 %v2098_v47, %v1886_v57 }
 0xafd   :  { %v1896_v49 = vmax.f32 %v1892_v51, 0.0 }
 0xafe   :  { %v1895_v60 = vmax.f32 %v1887_v58, 0.0 }
 0xb00   :  { %2329 = vmatprep.mubr.msk.f32.mxu0 %vm1912_vm15, %v1895_v60 }
 0xb01   :  { %2330 = vmatmul.mubr.msk.f32.vlgmr.msra.gmra.mrb[12].mxu0 %vm1912_vm15, %v1896_v49 }
 0xbd4   :  { %v2331_v62 = vpop.f32.mrb[12].mxu0 }
 0xbd5   :  { %v1991_v63 = vadd.f32 %v2331_v62, %v2101_v61  ;;  %v1985_v0 = vpop.f32.mrb[13].mxu0 }
 0xbd6   :  { %v1986_v32 = vadd.f32 %v2101_v61, %v1985_v0 }
 0xbd7   :  { %v1995_v37 = vadd.f32 %v1991_v63, %v1802_v43 }
 0xbd8   :  { %v1994_v48 = vadd.f32 %v1986_v32, %v1801_v59 }
 0xbd9   :  { %v2001_v52 = vsel %vm91_vm0, %v1995_v37, 0.0 }
 0xbda   :  { %2002 = vadd.xlane.f32.xlu1 %v2001_v52  ;;  %v1998_v1 = vsel %vm91_vm0, %v1994_v48, 0.0 }
 0xbdb   :  { %1999 = vadd.xlane.f32.xlu0 %v1998_v1 }
 0xc67   :  { %v2003_v2 = vpop.xlane.xlu1 %2002 }
 0xc68   :  { %v2005_v3 = vmul.f32 0.03125, %v2003_v2  ;;  %v2000_v4 = vpop.xlane.xlu0 %1999 }
 0xc69   :  { %v2004_v30 = vmul.f32 0.03125, %v2000_v4 }
 0xc6a   :  { %v2007_v53 = vsub.f32 %v1995_v37, %v2005_v3 }
 0xc6b   :  { %v2006_v6 = vsub.f32 %v1994_v48, %v2004_v30 }
 0xc6c   :  { %v2009_v7 = vmul.f32 %v2007_v53, %v2007_v53 }
 0xc6d   :  { %v2008_v8 = vmul.f32 %v2006_v6, %v2006_v6 }
 0xc6e   :  { %v2013_v9 = vsel %vm91_vm0, %v2009_v7, 0.0 }
 0xc6f   :  { %2014 = vadd.xlane.f32.xlu1 %v2013_v9  ;;  %v2010_v10 = vsel %vm91_vm0, %v2008_v8, 0.0 }
 0xc70   :  { %2011 = vadd.xlane.f32.xlu0 %v2010_v10 }
 0xcfc   :  { %v2015_v11 = vpop.xlane.xlu1 %2014 }
 0xcfd   :  { %v2017_v12 = vmul.f32 0.03125, %v2015_v11  ;;  %v2012_v13 = vpop.xlane.xlu0 %2011 }
 0xcfe   :  { %v2016_v15 = vmul.f32 0.03125, %v2012_v13 }
 0xcff   :  { %v2019_v5 = vadd.f32 1e-05, %v2017_v12 }
 0xd00   :  { %v2018_v14 = vadd.f32 1e-05, %v2016_v15 }
 0xd01   :  { %2438 = vrsqrt.f32 %v2019_v5 }
 0xd02   :  { %2440 = vrsqrt.f32 %v2018_v14 }
 0xd0b   :  { %v2439_v16 = vpop.eup %2438 }
 0xd0c   :  { %v2441_v18 = vpop.eup %2440  ;;  %v2023_v19 = vmul.f32 %v2439_v16, %v2007_v53 }
 0xd0d   :  { %v2022_v22 = vmul.f32 %v2441_v18, %v2006_v6 }
 0xd0e   :  { %v2031_v23 = vmul.f32 %v2104_v17, %v2023_v19 }
 0xd0f   :  { %v2030_v33 = vmul.f32 %v2104_v17, %v2022_v22 }
 0xd10   :  { %v2039_v39 = vadd.f32 %v2105_v21, %v2031_v23 }
 0xd11   :  { %v2038_v54 = vadd.f32 %v2105_v21, %v2030_v33 }
 0xd12   :  { %2041 = vst.msk [vmem:[%s2927_s18 + $0x8] sm:$0xff] %vm91_vm0, %v2039_v39 }
 0xd13   :  { %2040 = vst.msk [vmem:[%s2927_s18] sm:$0xff] %vm91_vm0, %v2038_v54 }

// kernel: _lambda_.7
= control target key start
LH: loop header
LB: loop body
LE: loop exit
PB: predicated region body
PF: predicated region fallthrough
CT: control target
= control target key end

     0   :  { %s4607_s3 = smov 4   ;;  %s4608_s10 = smov 6   ;;  %vm163_vm0 = vcmask 261120   ;;  %v4610_v20 = vmov 0.0   ;;  %vm4611_vm1 = vmmov 0   ;;  %v407_v21 = vlaneseq  ;;  %s5194_s0 = inlined_call_operand.smem [shape: u32[33], index: -1, kind: input, shape index: {}] }
   0x1   :  { %s3850_s6 = sld [smem:[%s5194_s0 + %s4607_s3]]   ;;  %s4609_s14 = smov 8   ;;  %vm576_vm7 = vcmask 64512  }
   0x2   :  { %s1_s9 = sld [smem:[%s5194_s0]]   ;;  %s4612_s18 = smov 5   ;;  %v4692_v23 = vand.u32 127, %v407_v21 }
   0x3   :  { %s3852_s13 = sld [smem:[%s5194_s0 + %s4608_s10]]   ;;  %s4613_s22 = smov 7  }
   0x4   :  { %s4658_s17 = sld [smem:[%s5194_s0 + %s4609_s14]]   ;;  %vm601_vm2 = vcmp.ge.s32.totalorder %v4692_v23, 8  ;;  %vm602_vm3 = vcmp.lt.s32.totalorder %v4692_v23, 16  ;;  %vm410_vm4 = vcmp.lt.s32.totalorder %v4692_v23, 8  ;;  %s4614_s26 = smov 9   ;;  %vm1077_vm9 = vcmp.ge.s32.totalorder %v4692_v23, 16 }
   0x5   :  { %s3851_s21 = sld [smem:[%s5194_s0 + %s4612_s18]]   ;;  %vm603_vm5 = vmand %vm601_vm2, %vm602_vm3  ;;  %v4700_v30 = vsel %vm410_vm4, 1.0, %v4610_v20  ;;  %s4615_s30 = smov 2   ;;  %vm1078_vm10 = vcmp.lt.s32.totalorder %v4692_v23, 24  ;;  %vm1409_vm12 = vcmp.ge.s32.totalorder %v4692_v23, 24  ;;  %vm1410_vm13 = vcmp.lt.s32.totalorder %v4692_v23, 32 }
   0x6   :  { %s3853_s25 = sld [smem:[%s5194_s0 + %s4613_s22]]   ;;  %v4703_v31 = vsel %vm603_vm5, 1.0, %v4610_v20  ;;  %s4616_s4 = smov 31   ;;  %vm1079_vm11 = vmand %vm1077_vm9, %vm1078_vm10 }
   0x7   :  { %v137_v0 = vld [vmem:[%s3850_s6] sm:$0xff]  ;;  %v138_v1 = vld [vmem:[%s3850_s6 + $0x8] sm:$0xff]  ;;  %v139_v2 = vld [vmem:[%s3850_s6 + $0x10] sm:$0xff]  ;;  %s3855_s29 = sld [smem:[%s5194_s0 + %s4614_s26]]   ;;  %s4617_s8 = smov 10  }
   0x8   :  { %v4385_v3 = vpack.c.bf16 %v138_v1, %v137_v0  ;;  %v140_v4 = vld [vmem:[%s3850_s6 + $0x18] sm:$0xff]  ;;  %v4660_v5 = vld [vmem:[%s1_s9] sm:$0xff]  ;;  %v4668_v15 = vld [vmem:[%s1_s9 + $0x8] sm:$0xff]  ;;  %s3848_s3 = sld [smem:[%s5194_s0 + %s4615_s30]]   ;;  %s4618_s12 = smov 11  }
   0x9   :  { %v4389_v6 = vpack.c.bf16 %v140_v4, %v139_v2  ;;  %4115 = vmatprep.mubr.msk.f32.mxu1 %vm163_vm0, %v4660_v5  ;;  %v142_v7 = vld [vmem:[%s3852_s13] sm:$0xff]  ;;  %v143_v8 = vld [vmem:[%s3852_s13 + $0x8] sm:$0xff]  ;;  %4137 = vmatprep.mubr.msk.f32.mxu0 %vm163_vm0, %v4660_v5  ;;  %v144_v13 = vld [vmem:[%s3852_s13 + $0x10] sm:$0xff]  ;;  %s4784_s7 = sld [smem:[%s5194_s0 + %s4616_s4]]   ;;  %s4619_s16 = smov 16  }
   0xa   :  { %4386 = vmatprep.subr.bf16.mxu1 %v4385_v3  ;;  %v147_v9 = vld [vmem:[%s4658_s17] sm:$0xff]  ;;  %v148_v10 = vld [vmem:[%s4658_s17 + $0x8] sm:$0xff]  ;;  %v4393_v12 = vpack.c.bf16 %v143_v8, %v142_v7  ;;  %v145_v14 = vld [vmem:[%s3852_s13 + $0x18] sm:$0xff]  ;;  %s3856_s11 = sld [smem:[%s5194_s0 + %s4617_s8]]   ;;  %s4620_s20 = smov 14  }
   0xb   :  { %4388 = vmatpush3.bf16.msra.mxu1 %v4385_v3  ;;  %v4401_v11 = vpack.c.bf16 %v148_v10, %v147_v9  ;;  %v4397_v16 = vpack.c.bf16 %v145_v14, %v144_v13  ;;  %v149_v17 = vld [vmem:[%s4658_s17 + $0x10] sm:$0xff]  ;;  %v150_v18 = vld [vmem:[%s4658_s17 + $0x18] sm:$0xff]  ;;  %v3879_v25 = vld [vmem:[%s3851_s21] ss:$0 sm:$0xff]  ;;  %s3857_s15 = sld [smem:[%s5194_s0 + %s4618_s12]]   ;;  %s4621_s24 = smov 1  }
   0xc   :  { %4390 = vmatprep.subr.bf16.mxu1 %v4389_v6  ;;  %v4405_v19 = vpack.c.bf16 %v150_v18, %v149_v17  ;;  %v3882_v26 = vld [vmem:[%s3853_s25] ss:$0 sm:$0xff]  ;;  %vm1411_vm14 = vmand %vm1409_vm12, %vm1410_vm13  ;;  %s3862_s19 = sld [smem:[%s5194_s0 + %s4619_s16]]   ;;  %s4622_s28 = smov 18  }
   0xd   :  { %4402 = vmatprep.subr.bf16.mxu0 %v4401_v11  ;;  %v3885_v41 = vld [vmem:[%s3855_s29] ss:$0 sm:$0xff]  ;;  %s3860_s23 = sld [smem:[%s5194_s0 + %s4620_s20]]   ;;  %s4623_s2 = smov 12  }
   0xe   :  { %4404 = vmatpush3.bf16.msra.mxu0 %v4401_v11  ;;  %v4759_v46 = vld [vmem:[%s3848_s3] sm:$0xff]  ;;  %v4762_v49 = vld [vmem:[%s3848_s3 + $0x8] sm:$0xff]  ;;  %s3847_s27 = sld [smem:[%s5194_s0 + %s4621_s24]]   ;;  %s4624_s6 = smov 13  }
   0xf   :  { %4392 = vmatpush3.bf16.msra.mxu1 %v4389_v6  ;;  %4406 = vmatprep.subr.bf16.mxu0 %v4405_v19  ;;  %vm572_vm6 = vcmp.gt.f32.partialorder %v4759_v46, 0.0  ;;  %vm573_vm8 = vcmp.gt.f32.partialorder %v4762_v49, 0.0  ;;  %s3864_s1 = sld [smem:[%s5194_s0 + %s4622_s28]]   ;;  %s4625_s10 = smov 17  }
  0x10   :  { %4394 = vmatprep.subr.bf16.mxu1 %v4393_v12  ;;  %s3858_s5 = sld [smem:[%s5194_s0 + %s4623_s2]]   ;;  %s4626_s14 = smov 15  }
  0x11   :  { %s3859_s9 = sld [smem:[%s5194_s0 + %s4624_s6]]   ;;  %s4627_s18 = smov 19  }
  0x12   :  { %4116 = vmatmul.mubr.msk.f32.vlgmr.msra.gmra.mrb[0].mxu1 %vm163_vm0, %v4668_v15  ;;  %4408 = vmatpush3.bf16.msra.mxu0 %v4405_v19  ;;  %s3863_s13 = sld [smem:[%s5194_s0 + %s4625_s10]]   ;;  %s4628_s22 = smov 3  }
  0x13   :  { %4396 = vmatpush3.bf16.msra.mxu1 %v4393_v12  ;;  %4126 = vmatprep.mubr.msk.f32.mxu1 %vm163_vm0, %v4660_v5  ;;  %s3861_s17 = sld [smem:[%s5194_s0 + %s4626_s14]]   ;;  %s4629_s26 = smov 32  }
  0x14   :  { %4398 = vmatprep.subr.bf16.mxu1 %v4397_v16  ;;  %4150 = vmatprep.subr.mxu0 %v4610_v20  ;;  %s3865_s21 = sld [smem:[%s5194_s0 + %s4627_s18]]   ;;  %s4630_s30 = smov 20  }
  0x15   :  { %4138 = vmatmul.mubr.msk.f32.vlgmr.msra.gmra.mrb[0].mxu0 %vm163_vm0, %v4668_v15  ;;  %s3849_s25 = sld [smem:[%s5194_s0 + %s4628_s22]]   ;;  %s4631_s4 = smov 21  }
  0x16   :  { %4152 = vmatprep.mubr.msk.f32.mxu0 %vm4611_vm1, %v4610_v20  ;;  %s5033_s29 = sld [smem:[%s5194_s0 + %s4629_s26]]   ;;  %s4632_s8 = smov 24  }
  0x17   :  { %4400 = vmatpush3.bf16.msra.mxu1 %v4397_v16  ;;  %s3866_s3 = sld [smem:[%s5194_s0 + %s4630_s30]]   ;;  %s4633_s12 = smov 26  }
  0x18   :  { %4140 = vmatprep.subr.mxu1 %v4610_v20  ;;  %s4634_s16 = smov 22   ;;  %s4635_s20 = smov 23  }
  0x19   :  { %s4636_s24 = smov 25   ;;  %s4637_s28 = smov 27  }
  0x1a   :  { %4127 = vmatmul.mubr.msk.f32.vlgmr.msra.gmra.mrb[2].mxu1 %vm163_vm0, %v4668_v15  ;;  %s4638_s2 = smov 28   ;;  %s4639_s6 = smov 29  }
  0x1b   :  { %4142 = vmatprep.mubr.msk.f32.mxu1 %vm4611_vm1, %v4610_v20  ;;  %s4640_s10 = smov 30  }
  0xe5   :  { %v4117_v22 = vpop.f32.mrb[0].mxu1 }
  0xe6   :  { %v236_v24 = vpop.f32.mrb[1].mxu1  ;;  %v4711_v33 = vadd.f32 %v4117_v22, %v3879_v25 }
  0xe7   :  { %v4697_v28 = vadd.f32 %v3879_v25, %v236_v24 }
  0xe8   :  { %v415_v37 = vmul.f32 %v4700_v30, %v4711_v33  ;;  %v607_v38 = vmul.f32 %v4703_v31, %v4711_v33  ;;  %v4139_v39 = vpop.f32.mrb[0].mxu0 }
  0xe9   :  { %v414_v34 = vmul.f32 %v4700_v30, %v4697_v28  ;;  %v606_v35 = vmul.f32 %v4703_v31, %v4697_v28  ;;  %v398_v40 = vpop.f32.mrb[1].mxu0  ;;  %v4746_v42 = vadd.f32 %v4139_v39, %v3885_v41 }
  0xea   :  { %v4748_v43 = vadd.f32 %v3885_v41, %v398_v40 }
  0xeb   :  { %v609_v45 = vmul.f32 %v4703_v31, %v4746_v42 }
  0xec   :  { %v608_v44 = vmul.f32 %v4703_v31, %v4748_v43  ;;  %v416_v40 = vmul.f32 %v4700_v30, %v4748_v43 }
  0xed   :  { %v4128_v27 = vpop.f32.mrb[2].mxu1 }
  0xee   :  { %v317_v29 = vpop.f32.mrb[3].mxu1  ;;  %v4719_v36 = vadd.f32 %v4128_v27, %v3882_v26 }
  0xef   :  { %v4705_v32 = vadd.f32 %v3882_v26, %v317_v29 }
  0xf1   :  { %4141 = vmatpush3.xpose.msk.msra.mxu1 %vm163_vm0, %v4705_v32  ;;  %4151 = vmatpush3.xpose.msk.msra.mxu0 %vm163_vm0, %v4705_v32 }
  0xf2   :  { %4145 = vmatprep.subr.mxu1 %v4610_v20  ;;  %4160 = vmatprep.subr.mxu0 %v4610_v20 }
  0xf4   :  { %4143 = vmatmul.mubr.msk.f32.vlgmr.msra.gmra.mrb[4].mxu1 %vm163_vm0, %v414_v34  ;;  %4153 = vmatmul.mubr.msk.f32.vlgmr.msra.gmra.mrb[2].mxu0 %vm163_vm0, %v606_v35 }
  0xf5   :  { %4146 = vmatpush3.xpose.msk.msra.mxu1 %vm163_vm0, %v4719_v36  ;;  %4147 = vmatprep.mubr.msk.f32.mxu1 %vm4611_vm1, %v4610_v20 }
  0xf6   :  { %4155 = vmatprep.subr.mxu1 %v4610_v20  ;;  %4162 = vmatprep.mubr.msk.f32.mxu0 %vm4611_vm1, %v4610_v20 }
  0xf7   :  { %4161 = vmatpush3.msra.mxu0 %v608_v44 }
  0xf8   :  { %4148 = vmatmul.mubr.msk.f32.vlgmr.msra.gmra.mrb[6].mxu1 %vm163_vm0, %v415_v37  ;;  %4170 = vmatprep.subr.mxu0 %v4610_v20 }
  0xf9   :  { %4156 = vmatpush3.xpose.msk.msra.mxu1 %vm163_vm0, %v4719_v36  ;;  %4157 = vmatprep.mubr.msk.f32.mxu1 %vm4611_vm1, %v4610_v20 }
  0xfa   :  { %4165 = vmatprep.subr.mxu1 %v4610_v20 }
  0xfc   :  { %4158 = vmatmul.mubr.msk.f32.vlgmr.msra.gmra.mrb[8].mxu1 %vm163_vm0, %v607_v38 }
  0xfd   :  { %4167 = vmatprep.mubr.msk.f32.mxu1 %vm4611_vm1, %v4610_v20  ;;  %4166 = vmatpush3.msra.mxu1 %v609_v45 }
  0xfe   :  { %4175 = vmatprep.subr.mxu1 %v4610_v20 }
 0x1c7   :  { %v490_v47 = vpop.f32.mrb[4].mxu1  ;;  %v679_v48 = vpop.f32.mrb[2].mxu0 }
 0x1c8   :  { %v570_v50 = vmul.f32 0.35355338, %v490_v47  ;;  %v756_v51 = vmul.f32 0.35355338, %v679_v48  ;;  %v4144_v52 = vpop.f32.mrb[5].mxu1  ;;  %v4154_v53 = vpop.f32.mrb[3].mxu0 }
 0x1c9   :  { %v4799_v48 = vsel %vm1079_vm11, 1.0, %v4610_v20 }
 0x1ca   :  { %v758_v54 = vsel %vm572_vm6, %v756_v51, -1e+10  ;;  %v574_v55 = vsel %vm572_vm6, %v570_v50, -1e+10  ;;  %v417_v50 = vmul.f32 %v4700_v30, %v4746_v42  ;;  %v1082_v52 = vmul.f32 %v4799_v48, %v4697_v28 }
 0x1cb   :  { %v566_v56 = vpop.f32.mrb[6].mxu1  ;;  %v760_v57 = vsel %vm576_vm7, %v758_v54, -inf  ;;  %v577_v58 = vsel %vm576_vm7, %v574_v55, -inf }
 0x1cc   :  { %v571_v59 = vmul.f32 0.35355338, %v566_v56  ;;  %761 = vmax.xlane.f32.xlu0 %v760_v57  ;;  %578 = vmax.xlane.f32.xlu1 %v577_v58  ;;  %v4149_v60 = vpop.f32.mrb[7].mxu1  ;;  %v1085_v56 = vmul.f32 %v4799_v48, %v4746_v42 }
 0x1ce   :  { %v575_v61 = vsel %vm573_vm8, %v571_v59, -1e+10 }
 0x1cf   :  { %v752_v62 = vpop.f32.mrb[8].mxu1  ;;  %v580_v63 = vsel %vm576_vm7, %v575_v61, -inf }
 0x1d0   :  { %v757_v0 = vmul.f32 0.35355338, %v752_v62  ;;  %581 = vmax.xlane.f32.xlu1 %v580_v63  ;;  %v4159_v1 = vpop.f32.mrb[9].mxu1 }
 0x1d2   :  { %v759_v2 = vsel %vm573_vm8, %v757_v0, -1e+10 }
 0x1d3   :  { %v763_v3 = vsel %vm576_vm7, %v759_v2, -inf }
 0x1d4   :  { %764 = vmax.xlane.f32.xlu0 %v763_v3 }
 0x259   :  { %v762_v4 = vpop.xlane.xlu0 %761  ;;  %v579_v6 = vpop.xlane.xlu1 %578 }
 0x25a   :  { %v766_v7 = vsub.f32 %v758_v54, %v762_v4  ;;  %v583_v8 = vsub.f32 %v574_v55, %v579_v6  ;;  %v1084_v54 = vmul.f32 %v4799_v48, %v4748_v43  ;;  %v1083_v55 = vmul.f32 %v4799_v48, %v4711_v33 }
 0x25c   :  { %v768_v9 = vmul.f32 1.442695, %v766_v7  ;;  %v585_v10 = vmul.f32 1.442695, %v583_v8 }
 0x25d   :  { %v582_v11 = vpop.xlane.xlu1 %581 }
 0x25e   :  { %4531 = vpow2.f32 %v768_v9  ;;  %v584_v12 = vsub.f32 %v575_v61, %v582_v11 }
 0x25f   :  { %4533 = vpow2.f32 %v585_v10 }
 0x260   :  { %v587_v16 = vmul.f32 1.442695, %v584_v12 }
 0x261   :  { %v765_v13 = vpop.xlane.xlu0 %764 }
 0x262   :  { %v767_v14 = vsub.f32 %v759_v2, %v765_v13 }
 0x264   :  { %v770_v17 = vmul.f32 1.442695, %v767_v14 }
 0x266   :  { %4535 = vpow2.f32 %v770_v17 }
 0x267   :  { %4537 = vpow2.f32 %v587_v16 }
 0x268   :  { %v4532_v18 = vpop.eup %4531 }
 0x269   :  { %v772_v19 = vsel %vm576_vm7, %v4532_v18, 0.0  ;;  %v4534_v21 = vpop.eup %4533 }
 0x26a   :  { %773 = vadd.xlane.f32.xlu0 %v772_v19  ;;  %v589_v22 = vsel %vm576_vm7, %v4534_v21, 0.0  ;;  %v4850_v19 = vsel %vm1411_vm14, 1.0, %v4610_v20 }
 0x26b   :  { %v1414_v23 = vmul.f32 %v4850_v19, %v4697_v28  ;;  %v1415_v28 = vmul.f32 %v4850_v19, %v4711_v33 }
 0x26e   :  { %590 = vadd.xlane.f32.xlu0 %v589_v22 }
 0x270   :  { %v4536_v24 = vpop.eup %4535 }
 0x271   :  { %v775_v25 = vsel %vm576_vm7, %v4536_v24, 0.0  ;;  %v4538_v26 = vpop.eup %4537 }
 0x272   :  { %776 = vadd.xlane.f32.xlu1 %v775_v25  ;;  %v592_v27 = vsel %vm576_vm7, %v4538_v26, 0.0 }
 0x276   :  { %593 = vadd.xlane.f32.xlu1 %v592_v27 }
 0x2f7   :  { %v774_v29 = vpop.xlane.xlu0 %773 }
 0x2f8   :  { %4539 = vrcp.f32 %v774_v29 }
 0x2fb   :  { %v591_v34 = vpop.xlane.xlu0 %590 }
 0x2fc   :  { %4541 = vrcp.f32 %v591_v34 }
 0x2ff   :  { %v777_v35 = vpop.xlane.xlu1 %776 }
 0x300   :  { %4543 = vrcp.f32 %v777_v35 }
 0x302   :  { %v4540_v37 = vpop.eup %4539 }
 0x303   :  { %v779_v38 = vmul.f32 %v4540_v37, %v4532_v18  ;;  %v594_v39 = vpop.xlane.xlu1 %593 }
 0x304   :  { %4545 = vrcp.f32 %v594_v39 }
 0x305   :  { %3898 = vst.msk [vmem:[%s4784_s7 + $0x10] sm:$0xff] %vm576_vm7, %v779_v38  ;;  %4163 = vmatmul.mubr.msk.f32.vlgmr.msra.gmra.mrb[4].mxu0 %vm576_vm7, %v779_v38 }
 0x306   :  { %v4542_v41 = vpop.eup %4541  ;;  %4171 = vmatpush3.msra.mxu0 %v416_v40  ;;  %4172 = vmatprep.mubr.msk.f32.mxu0 %vm4611_vm1, %v4610_v20 }
 0x307   :  { %v596_v44 = vmul.f32 %v4542_v41, %v4534_v21  ;;  %4180 = vmatprep.subr.mxu0 %v4610_v20  ;;  %v1416_v21 = vmul.f32 %v4850_v19, %v4748_v43 }
 0x309   :  { %599 = vst.msk [vmem:[%s4784_s7] sm:$0xff] %vm576_vm7, %v596_v44 }
 0x30a   :  { %v4544_v45 = vpop.eup %4543 }
 0x30b   :  { %v781_v47 = vmul.f32 %v4544_v45, %v4536_v24 }
 0x30d   :  { %3899 = vst.msk [vmem:[%s4784_s7 + $0x18] sm:$0xff] %vm576_vm7, %v781_v47  ;;  %4168 = vmatmul.mubr.msk.f32.vlgmr.msra.gmra.mrb[10].mxu1 %vm576_vm7, %v781_v47  ;;  %4173 = vmatmul.mubr.msk.f32.vlgmr.msra.gmra.mrb[4].mxu0 %vm576_vm7, %v596_v44 }
 0x30e   :  { %v4546_v51 = vpop.eup %4545  ;;  %4176 = vmatpush3.msra.mxu1 %v417_v50  ;;  %4181 = vmatpush3.xpose.msk.msra.mxu0 %vm163_vm0, %v4705_v32 }
 0x30f   :  { %v598_v53 = vmul.f32 %v4546_v51, %v4538_v26  ;;  %4182 = vmatprep.mubr.msk.f32.mxu0 %vm4611_vm1, %v4610_v20  ;;  %4190 = vmatprep.subr.mxu0 %v4610_v20 }
 0x310   :  { %4177 = vmatprep.mubr.msk.f32.mxu1 %vm4611_vm1, %v4610_v20  ;;  %4185 = vmatprep.subr.mxu1 %v4610_v20 }
 0x311   :  { %600 = vst.msk [vmem:[%s4784_s7 + $0x8] sm:$0xff] %vm576_vm7, %v598_v53  ;;  %4183 = vmatmul.mubr.msk.f32.vlgmr.msra.gmra.mrb[6].mxu0 %vm163_vm0, %v1082_v52 }
 0x312   :  { %4191 = vmatpush3.msra.mxu0 %v1084_v54  ;;  %4192 = vmatprep.mubr.msk.f32.mxu0 %vm4611_vm1, %v4610_v20 }
 0x313   :  { %4200 = vmatprep.subr.mxu0 %v4610_v20 }
 0x315   :  { %4178 = vmatmul.mubr.msk.f32.vlgmr.msra.gmra.mrb[10].mxu1 %vm576_vm7, %v598_v53 }
 0x316   :  { %4186 = vmatpush3.xpose.msk.msra.mxu1 %vm163_vm0, %v4719_v36  ;;  %4187 = vmatprep.mubr.msk.f32.mxu1 %vm4611_vm1, %v4610_v20 }
 0x317   :  { %4195 = vmatprep.subr.mxu1 %v4610_v20 }
 0x319   :  { %4188 = vmatmul.mubr.msk.f32.vlgmr.msra.gmra.mrb[12].mxu1 %vm163_vm0, %v1083_v55 }
 0x31a   :  { %4196 = vmatpush3.msra.mxu1 %v1085_v56  ;;  %4197 = vmatprep.mubr.msk.f32.mxu1 %vm4611_vm1, %v4610_v20  ;;  %v152_v56 = vld [vmem:[%s3856_s11] sm:$0xff] }
 0x31b   :  { %4205 = vmatprep.subr.mxu1 %v4610_v20 }
 0x3e4   :  { %v1155_v57 = vpop.f32.mrb[6].mxu0 }
 0x3e5   :  { %v1232_v58 = vmul.f32 0.35355338, %v1155_v57  ;;  %v4184_v59 = vpop.f32.mrb[7].mxu0  ;;  %v153_v57 = vld [vmem:[%s3856_s11 + $0x8] sm:$0xff] }
 0x3e6   :  { %v154_v59 = vld [vmem:[%s3856_s11 + $0x10] sm:$0xff] }
 0x3e7   :  { %v1234_v60 = vsel %vm572_vm6, %v1232_v58, -1e+10  ;;  %v4409_v58 = vpack.c.bf16 %v153_v57, %v152_v56  ;;  %v1889_v57 = vld [vmem:[%s3864_s1 + $0x10] sm:$0xff] }
 0x3e8   :  { %v1236_v61 = vsel %vm576_vm7, %v1234_v60, -inf }
 0x3e9   :  { %1237 = vmax.xlane.f32.xlu0 %v1236_v61 }
 0x3ec   :  { %v1228_v62 = vpop.f32.mrb[12].mxu1 }
 0x3ed   :  { %v1233_v63 = vmul.f32 0.35355338, %v1228_v62  ;;  %v4189_v0 = vpop.f32.mrb[13].mxu1 }
 0x3ef   :  { %v1235_v1 = vsel %vm573_vm8, %v1233_v63, -1e+10 }
 0x3f0   :  { %v1239_v2 = vsel %vm576_vm7, %v1235_v1, -inf }
 0x3f1   :  { %1240 = vmax.xlane.f32.xlu1 %v1239_v2  ;;  %v3922_v2 = vld [vmem:[%s3857_s15] ss:$0 sm:$0xff]  ;;  %s5155_s15 = sld [smem:[%s5194_s0 + %s4633_s12]]  }
 0x476   :  { %v1238_v3 = vpop.xlane.xlu0 %1237 }
 0x477   :  { %v1242_v4 = vsub.f32 %v1234_v60, %v1238_v3  ;;  %v155_v60 = vld [vmem:[%s3856_s11 + $0x18] sm:$0xff]  ;;  %s3870_s11 = sld [smem:[%s5194_s0 + %s4632_s8]]  }
 0x478   :  { %v4413_v61 = vpack.c.bf16 %v155_v60, %v154_v59 }
 0x479   :  { %v1244_v6 = vmul.f32 1.442695, %v1242_v4 }
 0x47b   :  { %4547 = vpow2.f32 %v1244_v6 }
 0x47e   :  { %v1241_v7 = vpop.xlane.xlu1 %1240 }
 0x47f   :  { %v1243_v8 = vsub.f32 %v1235_v1, %v1241_v7 }
 0x481   :  { %v1246_v9 = vmul.f32 1.442695, %v1243_v8 }
 0x483   :  { %4549 = vpow2.f32 %v1246_v9 }
 0x485   :  { %v4548_v10 = vpop.eup %4547 }
 0x486   :  { %v1248_v11 = vsel %vm576_vm7, %v4548_v10, 0.0 }
 0x487   :  { %1249 = vadd.xlane.f32.xlu0 %v1248_v11 }
 0x48d   :  { %v4550_v12 = vpop.eup %4549 }
 0x48e   :  { %v1251_v13 = vsel %vm576_vm7, %v4550_v12, 0.0 }
 0x48f   :  { %1252 = vadd.xlane.f32.xlu1 %v1251_v13 }
 0x514   :  { %v1250_v14 = vpop.xlane.xlu0 %1249 }
 0x515   :  { %4551 = vrcp.f32 %v1250_v14 }
 0x51c   :  { %v1253_v16 = vpop.xlane.xlu1 %1252 }
 0x51d   :  { %4553 = vrcp.f32 %v1253_v16 }
 0x51f   :  { %v4552_v17 = vpop.eup %4551 }
 0x520   :  { %v1255_v18 = vmul.f32 %v4552_v17, %v4548_v10 }
 0x522   :  { %3909 = vst.msk [vmem:[%s4784_s7 + $0x20] sm:$0xff] %vm576_vm7, %v1255_v18  ;;  %4193 = vmatmul.mubr.msk.f32.vlgmr.msra.gmra.mrb[4].mxu0 %vm576_vm7, %v1255_v18 }
 0x523   :  { %4201 = vmatpush3.xpose.msk.msra.mxu0 %vm163_vm0, %v4705_v32  ;;  %4202 = vmatprep.mubr.msk.f32.mxu0 %vm4611_vm1, %v4610_v20  ;;  %v1417_v32 = vmul.f32 %v4850_v19, %v4746_v42 }
 0x524   :  { %4210 = vmatprep.subr.mxu0 %v4610_v20 }
 0x526   :  { %4203 = vmatmul.mubr.msk.f32.vlgmr.msra.gmra.mrb[8].mxu0 %vm163_vm0, %v1414_v23 }
 0x527   :  { %v4554_v22 = vpop.eup %4553  ;;  %4211 = vmatpush3.msra.mxu0 %v1416_v21  ;;  %4212 = vmatprep.mubr.msk.f32.mxu0 %vm4611_vm1, %v4610_v20 }
 0x528   :  { %v1257_v24 = vmul.f32 %v4554_v22, %v4550_v12  ;;  %4410 = vmatprep.subr.bf16.mxu0 %v4409_v58 }
 0x52a   :  { %3910 = vst.msk [vmem:[%s4784_s7 + $0x28] sm:$0xff] %vm576_vm7, %v1257_v24  ;;  %4198 = vmatmul.mubr.msk.f32.vlgmr.msra.gmra.mrb[10].mxu1 %vm576_vm7, %v1257_v24  ;;  %v1883_v24 = vld [vmem:[%s3862_s19 + $0x8] sm:$0xff] }
 0x52b   :  { %4206 = vmatpush3.xpose.msk.msra.mxu1 %vm163_vm0, %v4719_v36  ;;  %4207 = vmatprep.mubr.msk.f32.mxu1 %vm4611_vm1, %v4610_v20 }
 0x52c   :  { %4215 = vmatprep.subr.mxu1 %v4610_v20 }
 0x52e   :  { %4208 = vmatmul.mubr.msk.f32.vlgmr.msra.gmra.mrb[14].mxu1 %vm163_vm0, %v1415_v28 }
 0x52f   :  { %4216 = vmatpush3.msra.mxu1 %v1417_v32  ;;  %4217 = vmatprep.mubr.msk.f32.mxu1 %vm4611_vm1, %v4610_v20  ;;  %v1877_v32 = vld [vmem:[%s3860_s23] sm:$0xff] }
 0x5f9   :  { %v1487_v43 = vpop.f32.mrb[8].mxu0 }
 0x5fa   :  { %v1564_v25 = vmul.f32 0.35355338, %v1487_v43  ;;  %v4204_v36 = vpop.f32.mrb[9].mxu0  ;;  %v1878_v43 = vld [vmem:[%s3860_s23 + $0x8] sm:$0xff] }
 0x5fb   :  { %v1884_v36 = vld [vmem:[%s3862_s19 + $0x10] sm:$0xff] }
 0x5fc   :  { %v1566_v26 = vsel %vm572_vm6, %v1564_v25, -1e+10  ;;  %v4417_v25 = vpack.c.bf16 %v1878_v43, %v1877_v32  ;;  %v5010_v43 = vld [vmem:[%s3849_s25] sm:$0xff] }
 0x5fd   :  { %v1568_v27 = vsel %vm576_vm7, %v1566_v26, -inf  ;;  %vm2310_vm2 = vcmp.gt.f32.partialorder %v5010_v43, 0.0 }
 0x5fe   :  { %1569 = vmax.xlane.f32.xlu0 %v1568_v27  ;;  %v1879_v27 = vld [vmem:[%s3860_s23 + $0x10] sm:$0xff]  ;;  %4418 = vmatprep.subr.bf16.mxu1 %v4417_v25 }
 0x601   :  { %v1560_v33 = vpop.f32.mrb[14].mxu1 }
 0x602   :  { %v1565_v29 = vmul.f32 0.35355338, %v1560_v33  ;;  %v4209_v34 = vpop.f32.mrb[15].mxu1 }
 0x604   :  { %v1567_v42 = vsel %vm573_vm8, %v1565_v29, -1e+10  ;;  %v1880_v29 = vld [vmem:[%s3860_s23 + $0x18] sm:$0xff]  ;;  %s3869_s23 = sld [smem:[%s5194_s0 + %s4635_s20]]  }
 0x605   :  { %v1571_v35 = vsel %vm576_vm7, %v1567_v42, -inf  ;;  %v4421_v34 = vpack.c.bf16 %v1880_v29, %v1879_v27 }
 0x606   :  { %1572 = vmax.xlane.f32.xlu1 %v1571_v35  ;;  %v134_v35 = vld [vmem:[%s3847_s27 + $0x8] sm:$0xff] }
 0x68b   :  { %v1570_v37 = vpop.xlane.xlu0 %1569 }
 0x68c   :  { %v1574_v38 = vsub.f32 %v1566_v26, %v1570_v37  ;;  %v1885_v26 = vld [vmem:[%s3862_s19 + $0x18] sm:$0xff]  ;;  %v1887_v37 = vld [vmem:[%s3864_s1] sm:$0xff] }
 0x68d   :  { %v4429_v33 = vpack.c.bf16 %v1885_v26, %v1884_v36 }
 0x68e   :  { %v1576_v39 = vmul.f32 1.442695, %v1574_v38  ;;  %v1888_v38 = vld [vmem:[%s3864_s1 + $0x8] sm:$0xff] }
 0x690   :  { %4555 = vpow2.f32 %v1576_v39  ;;  %v4433_v39 = vpack.c.bf16 %v1888_v38, %v1887_v37 }
 0x693   :  { %v1573_v40 = vpop.xlane.xlu1 %1572 }
 0x694   :  { %v1575_v46 = vsub.f32 %v1567_v42, %v1573_v40  ;;  %v133_v42 = vld [vmem:[%s3847_s27] sm:$0xff]  ;;  %s3871_s27 = sld [smem:[%s5194_s0 + %s4636_s24]]  }
 0x696   :  { %v1578_v41 = vmul.f32 1.442695, %v1575_v46 }
 0x698   :  { %4557 = vpow2.f32 %v1578_v41 }
 0x69a   :  { %v4556_v44 = vpop.eup %4555 }
 0x69b   :  { %v1580_v45 = vsel %vm576_vm7, %v4556_v44, 0.0 }
 0x69c   :  { %1581 = vadd.xlane.f32.xlu0 %v1580_v45 }
 0x6a2   :  { %v4558_v47 = vpop.eup %4557 }
 0x6a3   :  { %v1583_v49 = vsel %vm576_vm7, %v4558_v47, 0.0 }
 0x6a4   :  { %1584 = vadd.xlane.f32.xlu1 %v1583_v49 }
 0x729   :  { %v1582_v50 = vpop.xlane.xlu0 %1581 }
 0x72a   :  { %4559 = vrcp.f32 %v1582_v50  ;;  %v3925_v50 = vld [vmem:[%s3858_s5] ss:$0 sm:$0xff]  ;;  %s3874_s5 = sld [smem:[%s5194_s0 + %s4638_s2]]  }
 0x731   :  { %v1585_v51 = vpop.xlane.xlu1 %1584 }
 0x732   :  { %4561 = vrcp.f32 %v1585_v51 }
 0x734   :  { %v4560_v52 = vpop.eup %4559 }
 0x735   :  { %v1587_v53 = vmul.f32 %v4560_v52, %v4556_v44 }
 0x737   :  { %3918 = vst.msk [vmem:[%s4784_s7 + $0x30] sm:$0xff] %vm576_vm7, %v1587_v53  ;;  %4213 = vmatmul.mubr.msk.f32.vlgmr.msra.gmra.mrb[4].mxu0 %vm576_vm7, %v1587_v53 }
 0x738   :  { %4412 = vmatpush3.bf16.msra.mxu0 %v4409_v58  ;;  %v1890_v58 = vld [vmem:[%s3864_s1 + $0x18] sm:$0xff]  ;;  %s3873_s1 = sld [smem:[%s5194_s0 + %s4637_s28]]  }
 0x739   :  { %4414 = vmatprep.subr.bf16.mxu0 %v4413_v61 }
 0x73c   :  { %v4562_v54 = vpop.eup %4561  ;;  %4416 = vmatpush3.bf16.msra.mxu0 %v4413_v61  ;;  %v4437_v61 = vpack.c.bf16 %v1890_v58, %v1889_v57 }
 0x73d   :  { %v1589_v55 = vmul.f32 %v4562_v54, %v4558_v47  ;;  %v3926_v54 = vld [vmem:[%s3859_s9] ss:$0 sm:$0xff]  ;;  %s3875_s9 = sld [smem:[%s5194_s0 + %s4639_s6]]  }
 0x73f   :  { %3919 = vst.msk [vmem:[%s4784_s7 + $0x38] sm:$0xff] %vm576_vm7, %v1589_v55  ;;  %4218 = vmatmul.mubr.msk.f32.vlgmr.msra.gmra.mrb[10].mxu1 %vm576_vm7, %v1589_v55  ;;  %s3867_s7 = sld [smem:[%s5194_s0 + %s4631_s4]]  }
 0x740   :  { %4420 = vmatpush3.bf16.msra.mxu1 %v4417_v25 }
 0x741   :  { %4422 = vmatprep.subr.bf16.mxu1 %v4421_v34 }
 0x744   :  { %4424 = vmatpush3.bf16.msra.mxu1 %v4421_v34 }
 0x745   :  { %4434 = vmatprep.subr.bf16.mxu1 %v4433_v39 }
 0x80a   :  { %v1662_v62 = vpop.f32.mrb[4].mxu0 }
 0x80b   :  { %v4214_v63 = vpop.f32.mrb[5].mxu0  ;;  %4228 = vmatprep.mubr.msk.f32.mxu0 %vm163_vm0, %v1662_v62  ;;  %v3930_v62 = vld [vmem:[%s3863_s13] ss:$0 sm:$0xff]  ;;  %s3876_s13 = sld [smem:[%s5194_s0 + %s4640_s10]]  }
 0x812   :  { %v1735_v0 = vpop.f32.mrb[10].mxu1 }
 0x813   :  { %v4219_v1 = vpop.f32.mrb[11].mxu1  ;;  %4229 = vmatmul.mubr.msk.f32.vlgmr.msra.gmra.mrb[10].mxu0 %vm163_vm0, %v1735_v0 }
 0x814   :  { %4250 = vmatprep.mubr.msk.f32.mxu0 %vm163_vm0, %v133_v42 }
 0x8e6   :  { %v4230_v3 = vpop.f32.mrb[10].mxu0 }
 0x8e7   :  { %v1825_v4 = vadd.f32 %v4230_v3, %v3922_v2  ;;  %v1819_v6 = vpop.f32.mrb[11].mxu0  ;;  %v3927_v3 = vld [vmem:[%s3861_s17] ss:$0 sm:$0xff] }
 0x8e8   :  { %v1820_v7 = vadd.f32 %v3922_v2, %v1819_v6 }
 0x8e9   :  { %v1829_v8 = vadd.f32 %v1825_v4, %v4668_v15 }
 0x8ea   :  { %v1828_v9 = vadd.f32 %v1820_v7, %v4660_v5  ;;  %v1882_v5 = vld [vmem:[%s3862_s19] sm:$0xff]  ;;  %s3868_s19 = sld [smem:[%s5194_s0 + %s4634_s16]]  }
 0x8eb   :  { %v1835_v10 = vsel %vm163_vm0, %v1829_v8, 0.0  ;;  %v4425_v28 = vpack.c.bf16 %v1883_v24, %v1882_v5 }
 0x8ec   :  { %1836 = vadd.xlane.f32.xlu1 %v1835_v10  ;;  %v1832_v11 = vsel %vm163_vm0, %v1828_v9, 0.0 }
 0x8ed   :  { %1833 = vadd.xlane.f32.xlu0 %v1832_v11  ;;  %4426 = vmatprep.subr.bf16.mxu0 %v4425_v28 }
 0x8ee   :  { %4428 = vmatpush3.bf16.msra.mxu0 %v4425_v28  ;;  %v5008_v28 = vld [vmem:[%s3849_s25 + $0x8] sm:$0xff] }
 0x8ef   :  { %4430 = vmatprep.subr.bf16.mxu0 %v4429_v33  ;;  %vm2311_vm15 = vcmp.gt.f32.partialorder %v5008_v28, 0.0 }
 0x8f2   :  { %4432 = vmatpush3.bf16.msra.mxu0 %v4429_v33 }
 0x8f3   :  { %4264 = vmatprep.subr.mxu0 %v4610_v20 }
 0x8f5   :  { %4251 = vmatmul.mubr.msk.f32.vlgmr.msra.gmra.mrb[12].mxu0 %vm163_vm0, %v134_v35 }
 0x8f6   :  { %4266 = vmatprep.mubr.msk.f32.mxu0 %vm4611_vm1, %v4610_v20 }
 0x979   :  { %v1837_v12 = vpop.xlane.xlu1 %1836 }
 0x97a   :  { %v1840_v13 = vmul.f32 0.03125, %v1837_v12  ;;  %v1834_v14 = vpop.xlane.xlu0 %1833 }
 0x97b   :  { %v1839_v16 = vmul.f32 0.03125, %v1834_v14 }
 0x97c   :  { %v1842_v17 = vsub.f32 %v1829_v8, %v1840_v13 }
 0x97d   :  { %v1841_v18 = vsub.f32 %v1828_v9, %v1839_v16  ;;  %v3933_v16 = vld [vmem:[%s3865_s21] ss:$0 sm:$0xff] }
 0x97e   :  { %v1844_v23 = vmul.f32 %v1842_v17, %v1842_v17 }
 0x97f   :  { %v1843_v21 = vmul.f32 %v1841_v18, %v1841_v18 }
 0x980   :  { %v1848_v22 = vsel %vm163_vm0, %v1844_v23, 0.0 }
 0x981   :  { %1849 = vadd.xlane.f32.xlu1 %v1848_v22  ;;  %v1845_v15 = vsel %vm163_vm0, %v1843_v21, 0.0 }
 0x982   :  { %1846 = vadd.xlane.f32.xlu0 %v1845_v15 }
 0x9c8   :  { %v4252_v63 = vpop.f32.mrb[12].mxu0 }
 0x9c9   :  { %v4949_v0 = vadd.f32 %v4252_v63, %v3930_v62  ;;  %v2062_v1 = vpop.f32.mrb[13].mxu0 }
 0x9ca   :  { %v4951_v2 = vadd.f32 %v3930_v62, %v2062_v1 }
 0x9cc   :  { %4265 = vmatpush3.xpose.msk.msra.mxu0 %vm163_vm0, %v4951_v2 }
 0x9cd   :  { %4274 = vmatprep.subr.mxu0 %v4610_v20 }
 0xa0e   :  { %v1850_v40 = vpop.xlane.xlu1 %1849 }
 0xa0f   :  { %v1852_v46 = vmul.f32 0.03125, %v1850_v40  ;;  %v1847_v41 = vpop.xlane.xlu0 %1846 }
 0xa10   :  { %v1851_v44 = vmul.f32 0.03125, %v1847_v41 }
 0xa11   :  { %v1854_v45 = vadd.f32 1e-05, %v1852_v46 }
 0xa12   :  { %v1853_v47 = vadd.f32 1e-05, %v1851_v44 }
 0xa13   :  { %4563 = vrsqrt.f32 %v1854_v45 }
 0xa14   :  { %4565 = vrsqrt.f32 %v1853_v47 }
 0xa1d   :  { %v4564_v49 = vpop.eup %4563 }
 0xa1e   :  { %v4566_v51 = vpop.eup %4565  ;;  %v1858_v52 = vmul.f32 %v4564_v49, %v1842_v17 }
 0xa1f   :  { %v1857_v53 = vmul.f32 %v4566_v51, %v1841_v18 }
 0xa20   :  { %v1866_v55 = vmul.f32 %v3925_v50, %v1858_v52 }
 0xa21   :  { %v1865_v56 = vmul.f32 %v3925_v50, %v1857_v53 }
 0xa22   :  { %v4935_v60 = vadd.f32 %v3926_v54, %v1866_v55 }
 0xa23   :  { %v4933_v59 = vadd.f32 %v3926_v54, %v1865_v56 }
 0xa25   :  { %4239 = vmatprep.mubr.msk.f32.mxu1 %vm163_vm0, %v4933_v59 }
 0xa26   :  { %4240 = vmatmul.mubr.msk.f32.vlgmr.msra.gmra.mrb[16].mxu1 %vm163_vm0, %v4935_v60 }
 0xa27   :  { %4436 = vmatpush3.bf16.msra.mxu1 %v4433_v39  ;;  %4261 = vmatprep.mubr.msk.f32.mxu1 %vm163_vm0, %v133_v42 }
 0xa28   :  { %4438 = vmatprep.subr.bf16.mxu1 %v4437_v61 }
 0xa2b   :  { %4440 = vmatpush3.bf16.msra.mxu1 %v4437_v61 }
 0xa2c   :  { %4269 = vmatprep.subr.mxu1 %v4610_v20 }
 0xa2e   :  { %4262 = vmatmul.mubr.msk.f32.vlgmr.msra.gmra.mrb[18].mxu1 %vm163_vm0, %v134_v35 }
 0xa2f   :  { %4271 = vmatprep.mubr.msk.f32.mxu1 %vm4611_vm1, %v4610_v20 }
 0xa34   :  { %4270 = vmatpush3.xpose.msk.msra.mxu1 %vm163_vm0, %v4949_v0 }
 0xa35   :  { %4279 = vmatprep.subr.mxu1 %v4610_v20 }
 0xaf9   :  { %v4241_v4 = vpop.f32.mrb[16].mxu1 }
 0xafa   :  { %v4962_v6 = vadd.f32 %v4241_v4, %v3927_v3  ;;  %v1975_v7 = vpop.f32.mrb[17].mxu1 }
 0xafb   :  { %v4964_v8 = vadd.f32 %v3927_v3, %v1975_v7 }
 0xafc   :  { %v2153_v9 = vmul.f32 %v4700_v30, %v4962_v6  ;;  %v2339_v11 = vmul.f32 %v4703_v31, %v4962_v6 }
 0xafd   :  { %v2152_v10 = vmul.f32 %v4700_v30, %v4964_v8  ;;  %v2338_v12 = vmul.f32 %v4703_v31, %v4964_v8 }
 0xafe   :  { %4272 = vmatmul.mubr.msk.f32.vlgmr.msra.gmra.mrb[20].mxu1 %vm163_vm0, %v2153_v9 }
 0xaff   :  { %4280 = vmatpush3.xpose.msk.msra.mxu1 %vm163_vm0, %v4949_v0  ;;  %4267 = vmatmul.mubr.msk.f32.vlgmr.msra.gmra.mrb[14].mxu0 %vm163_vm0, %v2152_v10 }
 0xb00   :  { %4275 = vmatpush3.xpose.msk.msra.mxu0 %vm163_vm0, %v4951_v2  ;;  %4281 = vmatprep.mubr.msk.f32.mxu1 %vm4611_vm1, %v4610_v20 }
 0xb01   :  { %4276 = vmatprep.mubr.msk.f32.mxu0 %vm4611_vm1, %v4610_v20  ;;  %v4263_v13 = vpop.f32.mrb[18].mxu1  ;;  %4284 = vmatprep.subr.mxu0 %v4610_v20 }
 0xb02   :  { %4282 = vmatmul.mubr.msk.f32.vlgmr.msra.gmra.mrb[22].mxu1 %vm163_vm0, %v2339_v11  ;;  %v2143_v14 = vpop.f32.mrb[19].mxu1  ;;  %4289 = vmatprep.subr.mxu1 %v4610_v20  ;;  %v4995_v17 = vadd.f32 %v4263_v13, %v3933_v16 }
 0xb03   :  { %4277 = vmatmul.mubr.msk.f32.vlgmr.msra.gmra.mrb[16].mxu0 %vm163_vm0, %v2338_v12  ;;  %4291 = vmatprep.mubr.msk.f32.mxu1 %vm4611_vm1, %v4610_v20  ;;  %v4997_v18 = vadd.f32 %v3933_v16, %v2143_v14 }
 0xb04   :  { %4286 = vmatprep.mubr.msk.f32.mxu0 %vm4611_vm1, %v4610_v20  ;;  %v2341_v21 = vmul.f32 %v4703_v31, %v4995_v17 }
 0xb05   :  { %v2340_v23 = vmul.f32 %v4703_v31, %v4997_v18 }
 0xb06   :  { %4290 = vmatpush3.msra.mxu1 %v2341_v21  ;;  %v2154_v21 = vmul.f32 %v4700_v30, %v4997_v18 }
 0xb07   :  { %4285 = vmatpush3.msra.mxu0 %v2340_v23  ;;  %4299 = vmatprep.subr.mxu1 %v4610_v20  ;;  %v2155_v23 = vmul.f32 %v4700_v30, %v4995_v17  ;;  %v2810_v30 = vmul.f32 %v4799_v48, %v4962_v6 }
 0xb08   :  { %4294 = vmatprep.subr.mxu0 %v4610_v20 }
 0xbd1   :  { %v2304_v22 = vpop.f32.mrb[20].mxu1 }
 0xbd2   :  { %v2228_v15 = vpop.f32.mrb[14].mxu0  ;;  %v4273_v5 = vpop.f32.mrb[21].mxu1  ;;  %v2309_v31 = vmul.f32 0.35355338, %v2304_v22 }
 0xbd3   :  { %v4268_v24 = vpop.f32.mrb[15].mxu0  ;;  %v2308_v27 = vmul.f32 0.35355338, %v2228_v15 }
 0xbd4   :  { %v2313_v38 = vsel %vm2311_vm15, %v2309_v31, -1e+10  ;;  %v2812_v31 = vmul.f32 %v4799_v48, %v4995_v17 }
 0xbd5   :  { %v2484_v32 = vpop.f32.mrb[22].mxu1  ;;  %v2312_v39 = vsel %vm2310_vm2, %v2308_v27, -1e+10  ;;  %v2317_v40 = vsel %vm576_vm7, %v2313_v38, -inf }
 0xbd6   :  { %v2489_v25 = vmul.f32 0.35355338, %v2484_v32  ;;  %v2411_v36 = vpop.f32.mrb[16].mxu0  ;;  %v4283_v26 = vpop.f32.mrb[23].mxu1  ;;  %v2314_v46 = vsel %vm576_vm7, %v2312_v39, -inf  ;;  %v2809_v32 = vmul.f32 %v4799_v48, %v4964_v8 }
 0xbd7   :  { %v2488_v33 = vmul.f32 0.35355338, %v2411_v36  ;;  %v4278_v29 = vpop.f32.mrb[17].mxu0 }
 0xbd8   :  { %v2491_v34 = vsel %vm2311_vm15, %v2489_v25, -1e+10  ;;  %v2811_v25 = vmul.f32 %v4799_v48, %v4997_v18 }
 0xbd9   :  { %v2495_v42 = vsel %vm576_vm7, %v2491_v34, -inf  ;;  %v2490_v35 = vsel %vm2310_vm2, %v2488_v33, -1e+10 }
 0xbda   :  { %2496 = vmax.xlane.f32.xlu1 %v2495_v42  ;;  %v2492_v37 = vsel %vm576_vm7, %v2490_v35, -inf }
 0xbdb   :  { %2493 = vmax.xlane.f32.xlu0 %v2492_v37 }
 0xbde   :  { %2318 = vmax.xlane.f32.xlu1 %v2317_v40 }
 0xbdf   :  { %2315 = vmax.xlane.f32.xlu0 %v2314_v46 }
 0xc67   :  { %v2497_v41 = vpop.xlane.xlu1 %2496 }
 0xc68   :  { %v2499_v44 = vsub.f32 %v2491_v34, %v2497_v41  ;;  %v2494_v45 = vpop.xlane.xlu0 %2493 }
 0xc69   :  { %v2498_v47 = vsub.f32 %v2490_v35, %v2494_v45 }
 0xc6a   :  { %v2502_v49 = vmul.f32 1.442695, %v2499_v44 }
 0xc6b   :  { %v2500_v50 = vmul.f32 1.442695, %v2498_v47  ;;  %v2319_v51 = vpop.xlane.xlu1 %2318 }
 0xc6c   :  { %4567 = vpow2.f32 %v2502_v49  ;;  %v2321_v52 = vsub.f32 %v2313_v38, %v2319_v51  ;;  %v2316_v53 = vpop.xlane.xlu0 %2315 }
 0xc6d   :  { %4569 = vpow2.f32 %v2500_v50  ;;  %v2320_v54 = vsub.f32 %v2312_v39, %v2316_v53 }
 0xc6e   :  { %v2324_v55 = vmul.f32 1.442695, %v2321_v52 }
 0xc6f   :  { %v2322_v56 = vmul.f32 1.442695, %v2320_v54 }
 0xc70   :  { %4571 = vpow2.f32 %v2324_v55 }
 0xc71   :  { %4573 = vpow2.f32 %v2322_v56 }
 0xc76   :  { %v4568_v57 = vpop.eup %4567 }
 0xc77   :  { %v4570_v58 = vpop.eup %4569  ;;  %v2507_v61 = vsel %vm576_vm7, %v4568_v57, 0.0 }
 0xc78   :  { %2508 = vadd.xlane.f32.xlu1 %v2507_v61  ;;  %v2504_v62 = vsel %vm576_vm7, %v4570_v58, 0.0 }
 0xc79   :  { %2505 = vadd.xlane.f32.xlu0 %v2504_v62 }
 0xc7a   :  { %v4572_v63 = vpop.eup %4571 }
 0xc7b   :  { %v4574_v1 = vpop.eup %4573  ;;  %v2329_v3 = vsel %vm576_vm7, %v4572_v63, 0.0 }
 0xc7c   :  { %2330 = vadd.xlane.f32.xlu1 %v2329_v3  ;;  %v2326_v4 = vsel %vm576_vm7, %v4574_v1, 0.0 }
 0xc7d   :  { %2327 = vadd.xlane.f32.xlu0 %v2326_v4 }
 0xd05   :  { %v2509_v7 = vpop.xlane.xlu1 %2508 }
 0xd06   :  { %4575 = vrcp.f32 %v2509_v7  ;;  %v2506_v9 = vpop.xlane.xlu0 %2505 }
 0xd07   :  { %4577 = vrcp.f32 %v2506_v9 }
 0xd09   :  { %v2331_v10 = vpop.xlane.xlu1 %2330 }
 0xd0a   :  { %4579 = vrcp.f32 %v2331_v10  ;;  %v2328_v11 = vpop.xlane.xlu0 %2327 }
 0xd0b   :  { %4581 = vrcp.f32 %v2328_v11 }
 0xd10   :  { %v4576_v12 = vpop.eup %4575 }
 0xd11   :  { %v4578_v13 = vpop.eup %4577  ;;  %v2513_v14 = vmul.f32 %v4576_v12, %v4568_v57  ;;  %v3137_v57 = vmul.f32 %v4850_v19, %v4962_v6 }
 0xd12   :  { %v2511_v16 = vmul.f32 %v4578_v13, %v4570_v58  ;;  %v3136_v58 = vmul.f32 %v4850_v19, %v4964_v8 }
 0xd13   :  { %3945 = vst.msk [vmem:[%s5033_s29 + $0x18] sm:$0xff] %vm576_vm7, %v2513_v14  ;;  %4292 = vmatmul.mubr.msk.f32.vlgmr.msra.gmra.mrb[24].mxu1 %vm576_vm7, %v2513_v14  ;;  %v1892_v14 = vld [vmem:[%s3866_s3] sm:$0xff] }
 0xd14   :  { %v4580_v22 = vpop.eup %4579  ;;  %3944 = vst.msk [vmem:[%s5033_s29 + $0x10] sm:$0xff] %vm576_vm7, %v2511_v16  ;;  %4300 = vmatpush3.msra.mxu1 %v2155_v23  ;;  %4287 = vmatmul.mubr.msk.f32.vlgmr.msra.gmra.mrb[18].mxu0 %vm576_vm7, %v2511_v16  ;;  %v1893_v16 = vld [vmem:[%s3866_s3 + $0x8] sm:$0xff] }
 0xd15   :  { %v4582_v15 = vpop.eup %4581  ;;  %v2335_v5 = vmul.f32 %v4580_v22, %v4572_v63  ;;  %4295 = vmatpush3.msra.mxu0 %v2154_v21  ;;  %4301 = vmatprep.mubr.msk.f32.mxu1 %vm4611_vm1, %v4610_v20  ;;  %v4441_v23 = vpack.c.bf16 %v1893_v16, %v1892_v14 }
 0xd16   :  { %v2333_v24 = vmul.f32 %v4582_v15, %v4574_v1  ;;  %4309 = vmatprep.subr.mxu1 %v4610_v20  ;;  %4296 = vmatprep.mubr.msk.f32.mxu0 %vm4611_vm1, %v4610_v20  ;;  %v1894_v15 = vld [vmem:[%s3866_s3 + $0x10] sm:$0xff] }
 0xd17   :  { %2337 = vst.msk [vmem:[%s5033_s29 + $0x8] sm:$0xff] %vm576_vm7, %v2335_v5  ;;  %4304 = vmatprep.subr.mxu0 %v4610_v20 }
 0xd18   :  { %2336 = vst.msk [vmem:[%s5033_s29] sm:$0xff] %vm576_vm7, %v2333_v24 }
 0xd1b   :  { %4302 = vmatmul.mubr.msk.f32.vlgmr.msra.gmra.mrb[24].mxu1 %vm576_vm7, %v2335_v5  ;;  %v1895_v5 = vld [vmem:[%s3866_s3 + $0x18] sm:$0xff] }
 0xd1c   :  { %4310 = vmatpush3.xpose.msk.msra.mxu1 %vm163_vm0, %v4949_v0  ;;  %4297 = vmatmul.mubr.msk.f32.vlgmr.msra.gmra.mrb[18].mxu0 %vm576_vm7, %v2333_v24 }
 0xd1d   :  { %4305 = vmatpush3.xpose.msk.msra.mxu0 %vm163_vm0, %v4951_v2  ;;  %4311 = vmatprep.mubr.msk.f32.mxu1 %vm4611_vm1, %v4610_v20 }
 0xd1e   :  { %4319 = vmatprep.subr.mxu1 %v4610_v20  ;;  %4306 = vmatprep.mubr.msk.f32.mxu0 %vm4611_vm1, %v4610_v20 }
 0xd1f   :  { %4312 = vmatmul.mubr.msk.f32.vlgmr.msra.gmra.mrb[26].mxu1 %vm163_vm0, %v2810_v30  ;;  %4314 = vmatprep.subr.mxu0 %v4610_v20 }
 0xd20   :  { %4320 = vmatpush3.msra.mxu1 %v2812_v31  ;;  %4307 = vmatmul.mubr.msk.f32.vlgmr.msra.gmra.mrb[20].mxu0 %vm163_vm0, %v2809_v32 }
 0xd21   :  { %4315 = vmatpush3.msra.mxu0 %v2811_v25  ;;  %4321 = vmatprep.mubr.msk.f32.mxu1 %vm4611_vm1, %v4610_v20  ;;  %v4445_v25 = vpack.c.bf16 %v1895_v5, %v1894_v15  ;;  %v3971_v15 = vld [vmem:[%s3871_s27] ss:$0 sm:$0xff] }
 0xd22   :  { %4329 = vmatprep.subr.mxu1 %v4610_v20  ;;  %4316 = vmatprep.mubr.msk.f32.mxu0 %vm4611_vm1, %v4610_v20 }
 0xd23   :  { %4324 = vmatprep.subr.mxu0 %v4610_v20 }
 0xdf2   :  { %v2955_v36 = vpop.f32.mrb[26].mxu1 }
 0xdf3   :  { %v2960_v26 = vmul.f32 0.35355338, %v2955_v36  ;;  %v2882_v27 = vpop.f32.mrb[20].mxu0  ;;  %v4313_v33 = vpop.f32.mrb[27].mxu1 }
 0xdf4   :  { %v2959_v29 = vmul.f32 0.35355338, %v2882_v27  ;;  %v4308_v48 = vpop.f32.mrb[21].mxu0 }
 0xdf5   :  { %v2962_v34 = vsel %vm2311_vm15, %v2960_v26, -1e+10 }
 0xdf6   :  { %v2966_v42 = vsel %vm576_vm7, %v2962_v34, -inf  ;;  %v2961_v35 = vsel %vm2310_vm2, %v2959_v29, -1e+10  ;;  %v3966_v29 = vld [vmem:[%s3867_s7] ss:$0 sm:$0xff] }
 0xdf7   :  { %2967 = vmax.xlane.f32.xlu1 %v2966_v42  ;;  %v2963_v37 = vsel %vm576_vm7, %v2961_v35, -inf }
 0xdf8   :  { %2964 = vmax.xlane.f32.xlu0 %v2963_v37 }
 0xe84   :  { %v2968_v38 = vpop.xlane.xlu1 %2967 }
 0xe85   :  { %v2970_v39 = vsub.f32 %v2962_v34, %v2968_v38  ;;  %v2965_v40 = vpop.xlane.xlu0 %2964 }
 0xe86   :  { %v2969_v46 = vsub.f32 %v2961_v35, %v2965_v40 }
 0xe87   :  { %v2973_v41 = vmul.f32 1.442695, %v2970_v39 }
 0xe88   :  { %v2971_v44 = vmul.f32 1.442695, %v2969_v46 }
 0xe89   :  { %4583 = vpow2.f32 %v2973_v41 }
 0xe8a   :  { %4585 = vpow2.f32 %v2971_v44 }
 0xe93   :  { %v4584_v45 = vpop.eup %4583 }
 0xe94   :  { %v4586_v47 = vpop.eup %4585  ;;  %v2978_v49 = vsel %vm576_vm7, %v4584_v45, 0.0 }
 0xe95   :  { %2979 = vadd.xlane.f32.xlu1 %v2978_v49  ;;  %v2975_v50 = vsel %vm576_vm7, %v4586_v47, 0.0 }
 0xe96   :  { %2976 = vadd.xlane.f32.xlu0 %v2975_v50 }
 0xf22   :  { %v2980_v51 = vpop.xlane.xlu1 %2979 }
 0xf23   :  { %4587 = vrcp.f32 %v2980_v51  ;;  %v2977_v52 = vpop.xlane.xlu0 %2976 }
 0xf24   :  { %4589 = vrcp.f32 %v2977_v52 }
 0xf2d   :  { %v4588_v53 = vpop.eup %4587 }
 0xf2e   :  { %v4590_v54 = vpop.eup %4589  ;;  %v2984_v55 = vmul.f32 %v4588_v53, %v4584_v45  ;;  %v3597_v53 = vld [vmem:[%s3870_s11 + $0x8] sm:$0xff] }
 0xf2f   :  { %v2982_v56 = vmul.f32 %v4590_v54, %v4586_v47 }
 0xf30   :  { %3955 = vst.msk [vmem:[%s5033_s29 + $0x28] sm:$0xff] %vm576_vm7, %v2984_v55  ;;  %4322 = vmatmul.mubr.msk.f32.vlgmr.msra.gmra.mrb[24].mxu1 %vm576_vm7, %v2984_v55  ;;  %v3598_v55 = vld [vmem:[%s3870_s11 + $0x10] sm:$0xff] }
 0xf31   :  { %3954 = vst.msk [vmem:[%s5033_s29 + $0x20] sm:$0xff] %vm576_vm7, %v2982_v56  ;;  %4330 = vmatpush3.xpose.msk.msra.mxu1 %vm163_vm0, %v4949_v0  ;;  %4317 = vmatmul.mubr.msk.f32.vlgmr.msra.gmra.mrb[18].mxu0 %vm576_vm7, %v2982_v56  ;;  %v3139_v0 = vmul.f32 %v4850_v19, %v4995_v17  ;;  %v3599_v56 = vld [vmem:[%s3870_s11 + $0x18] sm:$0xff] }
 0xf32   :  { %4325 = vmatpush3.xpose.msk.msra.mxu0 %vm163_vm0, %v4951_v2  ;;  %4331 = vmatprep.mubr.msk.f32.mxu1 %vm4611_vm1, %v4610_v20  ;;  %v3138_v2 = vmul.f32 %v4850_v19, %v4997_v18 }
 0xf33   :  { %4339 = vmatprep.subr.mxu1 %v4610_v20  ;;  %4326 = vmatprep.mubr.msk.f32.mxu0 %vm4611_vm1, %v4610_v20 }
 0xf34   :  { %4332 = vmatmul.mubr.msk.f32.vlgmr.msra.gmra.mrb[28].mxu1 %vm163_vm0, %v3137_v57  ;;  %4334 = vmatprep.subr.mxu0 %v4610_v20  ;;  %v4453_v57 = vpack.c.bf16 %v3599_v56, %v3598_v55  ;;  %v3977_v55 = vld [vmem:[%s3874_s5] ss:$0 sm:$0xff] }
 0xf35   :  { %4340 = vmatpush3.msra.mxu1 %v3139_v0  ;;  %4327 = vmatmul.mubr.msk.f32.vlgmr.msra.gmra.mrb[22].mxu0 %vm163_vm0, %v3136_v58  ;;  %v3690_v58 = vld [vmem:[%s5155_s15] sm:$0xff]  ;;  %v3691_v0 = vld [vmem:[%s5155_s15 + $0x8] sm:$0xff] }
 0xf36   :  { %4335 = vmatpush3.msra.mxu0 %v3138_v2  ;;  %4341 = vmatprep.mubr.msk.f32.mxu1 %vm4611_vm1, %v4610_v20  ;;  %v3692_v2 = vld [vmem:[%s5155_s15 + $0x10] sm:$0xff] }
 0xf37   :  { %4336 = vmatprep.mubr.msk.f32.mxu0 %vm4611_vm1, %v4610_v20  ;;  %4442 = vmatprep.subr.bf16.mxu0 %v4441_v23  ;;  %vm3705_vm1 = vcmask 523264  }
0x1007   :  { %v3282_v6 = vpop.f32.mrb[28].mxu1 }
0x1008   :  { %v3287_v8 = vmul.f32 0.35355338, %v3282_v6  ;;  %v3209_v17 = vpop.f32.mrb[22].mxu0  ;;  %v4333_v61 = vpop.f32.mrb[29].mxu1  ;;  %v4457_v6 = vpack.c.bf16 %v3691_v0, %v3690_v58  ;;  %v3978_v58 = vld [vmem:[%s3875_s9] ss:$0 sm:$0xff] }
0x1009   :  { %v3286_v62 = vmul.f32 0.35355338, %v3209_v17  ;;  %v4328_v63 = vpop.f32.mrb[23].mxu0  ;;  %v3694_v61 = vld [vmem:[%s5155_s15 + $0x20] sm:$0xff] }
0x100a   :  { %v3289_v1 = vsel %vm2311_vm15, %v3287_v8, -1e+10  ;;  %v3693_v8 = vld [vmem:[%s5155_s15 + $0x18] sm:$0xff] }
0x100b   :  { %v3293_v19 = vsel %vm576_vm7, %v3289_v1, -inf  ;;  %v3288_v18 = vsel %vm2310_vm2, %v3286_v62, -1e+10  ;;  %v4461_v17 = vpack.c.bf16 %v3693_v8, %v3692_v2  ;;  %v3695_v62 = vld [vmem:[%s5155_s15 + $0x28] sm:$0xff] }
0x100c   :  { %3294 = vmax.xlane.f32.xlu1 %v3293_v19  ;;  %v3290_v3 = vsel %vm576_vm7, %v3288_v18, -inf  ;;  %v4465_v63 = vpack.c.bf16 %v3695_v62, %v3694_v61 }
0x100d   :  { %3291 = vmax.xlane.f32.xlu0 %v3290_v3 }
0x1099   :  { %v3295_v4 = vpop.xlane.xlu1 %3294 }
0x109a   :  { %v3297_v20 = vsub.f32 %v3289_v1, %v3295_v4  ;;  %v3292_v7 = vpop.xlane.xlu0 %3291 }
0x109b   :  { %v3296_v9 = vsub.f32 %v3288_v18, %v3292_v7 }
0x109c   :  { %v3300_v10 = vmul.f32 1.442695, %v3297_v20 }
0x109d   :  { %v3298_v11 = vmul.f32 1.442695, %v3296_v9  ;;  %v3969_v9 = vld [vmem:[%s3868_s19] ss:$0 sm:$0xff] }
0x109e   :  { %4591 = vpow2.f32 %v3300_v10 }
0x109f   :  { %4593 = vpow2.f32 %v3298_v11 }
0x10a8   :  { %v4592_v12 = vpop.eup %4591 }
0x10a9   :  { %v4594_v28 = vpop.eup %4593  ;;  %v3305_v13 = vsel %vm576_vm7, %v4592_v12, 0.0 }
0x10aa   :  { %3306 = vadd.xlane.f32.xlu1 %v3305_v13  ;;  %v3302_v43 = vsel %vm576_vm7, %v4594_v28, 0.0 }
0x10ab   :  { %3303 = vadd.xlane.f32.xlu0 %v3302_v43 }
0x1137   :  { %v3307_v21 = vpop.xlane.xlu1 %3306 }
0x1138   :  { %4595 = vrcp.f32 %v3307_v21  ;;  %v3304_v22 = vpop.xlane.xlu0 %3303  ;;  %v3697_v21 = vld [vmem:[%s5155_s15 + $0x38] sm:$0xff] }
0x1139   :  { %4597 = vrcp.f32 %v3304_v22 }
0x1142   :  { %v4596_v24 = vpop.eup %4595 }
0x1143   :  { %v4598_v30 = vpop.eup %4597  ;;  %v3311_v32 = vmul.f32 %v4596_v24, %v4592_v12 }
0x1144   :  { %v3309_v31 = vmul.f32 %v4598_v30, %v4594_v28  ;;  %v3970_v28 = vld [vmem:[%s3869_s23] ss:$0 sm:$0xff] }
0x1145   :  { %3963 = vst.msk [vmem:[%s5033_s29 + $0x38] sm:$0xff] %vm576_vm7, %v3311_v32  ;;  %4342 = vmatmul.mubr.msk.f32.vlgmr.msra.gmra.mrb[24].mxu1 %vm576_vm7, %v3311_v32 }
0x1146   :  { %3962 = vst.msk [vmem:[%s5033_s29 + $0x30] sm:$0xff] %vm576_vm7, %v3309_v31  ;;  %4337 = vmatmul.mubr.msk.f32.vlgmr.msra.gmra.mrb[18].mxu0 %vm576_vm7, %v3309_v31 }
0x1147   :  { %4444 = vmatpush3.bf16.msra.mxu0 %v4441_v23  ;;  %v3696_v23 = vld [vmem:[%s5155_s15 + $0x30] sm:$0xff] }
0x1148   :  { %4446 = vmatprep.subr.bf16.mxu0 %v4445_v25  ;;  %v4469_v22 = vpack.c.bf16 %v3697_v21, %v3696_v23 }
0x114b   :  { %4448 = vmatpush3.bf16.msra.mxu0 %v4445_v25 }
0x114c   :  { %4458 = vmatprep.subr.bf16.mxu0 %v4457_v6 }
0x1218   :  { %v3457_v36 = vpop.f32.mrb[24].mxu1 }
0x1219   :  { %v3384_v26 = vpop.f32.mrb[18].mxu0  ;;  %v4343_v27 = vpop.f32.mrb[25].mxu1 }
0x121a   :  { %v4338_v33 = vpop.f32.mrb[19].mxu0  ;;  %4352 = vmatprep.mubr.msk.f32.mxu0 %vm163_vm0, %v3384_v26 }
0x121b   :  { %4353 = vmatmul.mubr.msk.f32.vlgmr.msra.gmra.mrb[24].mxu0 %vm163_vm0, %v3457_v36  ;;  %v3974_v36 = vld [vmem:[%s3873_s1] ss:$0 sm:$0xff] }
0x121c   :  { %4460 = vmatpush3.bf16.msra.mxu0 %v4457_v6 }
0x121d   :  { %4462 = vmatprep.subr.bf16.mxu0 %v4461_v17 }
0x1220   :  { %4464 = vmatpush3.bf16.msra.mxu0 %v4461_v17 }
0x1221   :  { %4466 = vmatprep.subr.bf16.mxu0 %v4465_v63 }
0x1224   :  { %4468 = vmatpush3.bf16.msra.mxu0 %v4465_v63 }
0x1225   :  { %4470 = vmatprep.subr.bf16.mxu0 %v4469_v22 }
0x1228   :  { %4472 = vmatpush3.bf16.msra.mxu0 %v4469_v22 }
0x12ee   :  { %v4354_v48 = vpop.f32.mrb[24].mxu0 }
0x12ef   :  { %v3547_v34 = vadd.f32 %v4354_v48, %v3966_v29  ;;  %v3541_v42 = vpop.f32.mrb[25].mxu0 }
0x12f0   :  { %v3542_v35 = vadd.f32 %v3966_v29, %v3541_v42 }
0x12f1   :  { %v3551_v37 = vadd.f32 %v3547_v34, %v4935_v60 }
0x12f2   :  { %v3550_v38 = vadd.f32 %v3542_v35, %v4933_v59  ;;  %v3596_v59 = vld [vmem:[%s3870_s11] sm:$0xff] }
0x12f3   :  { %v3557_v39 = vsel %vm163_vm0, %v3551_v37, 0.0  ;;  %v4449_v54 = vpack.c.bf16 %v3597_v53, %v3596_v59 }
0x12f4   :  { %3558 = vadd.xlane.f32.xlu1 %v3557_v39  ;;  %v3554_v40 = vsel %vm163_vm0, %v3550_v38, 0.0 }
0x12f5   :  { %3555 = vadd.xlane.f32.xlu0 %v3554_v40  ;;  %4450 = vmatprep.subr.bf16.mxu1 %v4449_v54 }
0x12f6   :  { %4452 = vmatpush3.bf16.msra.mxu1 %v4449_v54 }
0x12f7   :  { %4454 = vmatprep.subr.bf16.mxu1 %v4453_v57 }
0x12fa   :  { %4456 = vmatpush3.bf16.msra.mxu1 %v4453_v57 }
0x1381   :  { %v3559_v46 = vpop.xlane.xlu1 %3558 }
0x1382   :  { %v3561_v41 = vmul.f32 0.03125, %v3559_v46  ;;  %v3556_v44 = vpop.xlane.xlu0 %3555 }
0x1383   :  { %v3560_v45 = vmul.f32 0.03125, %v3556_v44 }
0x1384   :  { %v3563_v47 = vsub.f32 %v3551_v37, %v3561_v41 }
0x1385   :  { %v3562_v49 = vsub.f32 %v3550_v38, %v3560_v45 }
0x1386   :  { %v3565_v50 = vmul.f32 %v3563_v47, %v3563_v47 }
0x1387   :  { %v3564_v51 = vmul.f32 %v3562_v49, %v3562_v49 }
0x1388   :  { %v3569_v52 = vsel %vm163_vm0, %v3565_v50, 0.0 }
0x1389   :  { %3570 = vadd.xlane.f32.xlu1 %v3569_v52  ;;  %v3566_v60 = vsel %vm163_vm0, %v3564_v51, 0.0 }
0x138a   :  { %3567 = vadd.xlane.f32.xlu0 %v3566_v60 }
0x1416   :  { %v3571_v1 = vpop.xlane.xlu1 %3570 }
0x1417   :  { %v3573_v19 = vmul.f32 0.03125, %v3571_v1  ;;  %v3568_v18 = vpop.xlane.xlu0 %3567 }
0x1418   :  { %v3572_v3 = vmul.f32 0.03125, %v3568_v18 }
0x1419   :  { %v3575_v4 = vadd.f32 1e-05, %v3573_v19 }
0x141a   :  { %v3574_v20 = vadd.f32 1e-05, %v3572_v3 }
0x141b   :  { %4599 = vrsqrt.f32 %v3575_v4 }
0x141c   :  { %4601 = vrsqrt.f32 %v3574_v20 }
0x1425   :  { %v4600_v7 = vpop.eup %4599 }
0x1426   :  { %v4602_v10 = vpop.eup %4601  ;;  %v3579_v11 = vmul.f32 %v4600_v7, %v3563_v47 }
0x1427   :  { %v3578_v12 = vmul.f32 %v4602_v10, %v3562_v49 }
0x1428   :  { %v3587_v13 = vmul.f32 %v3969_v9, %v3579_v11 }
0x1429   :  { %v3586_v43 = vmul.f32 %v3969_v9, %v3578_v12 }
0x142a   :  { %v3595_v16 = vadd.f32 %v3970_v28, %v3587_v13 }
0x142b   :  { %v3594_v14 = vadd.f32 %v3970_v28, %v3586_v43 }
0x142d   :  { %4363 = vmatprep.mubr.msk.f32.mxu1 %vm163_vm0, %v3594_v14 }
0x142e   :  { %4364 = vmatmul.mubr.msk.f32.vlgmr.msra.gmra.mrb[30].mxu1 %vm163_vm0, %v3595_v16 }
0x1501   :  { %v4365_v5 = vpop.f32.mrb[30].mxu1 }
0x1502   :  { %v3685_v24 = vadd.f32 %v4365_v5, %v3971_v15  ;;  %v3679_v30 = vpop.f32.mrb[31].mxu1 }
0x1503   :  { %v3680_v32 = vadd.f32 %v3971_v15, %v3679_v30 }
0x1504   :  { %v3689_v25 = vmax.f32 %v3685_v24, 0.0 }
0x1505   :  { %v3688_v31 = vmax.f32 %v3680_v32, 0.0 }
0x1507   :  { %4382 = vmatprep.mubr.msk.f32.mxu0 %vm3705_vm1, %v3688_v31 }
0x1508   :  { %4383 = vmatmul.mubr.msk.f32.vlgmr.msra.gmra.mrb[26].mxu0 %vm3705_vm1, %v3689_v25 }
0x15db   :  { %v4384_v26 = vpop.f32.mrb[26].mxu0 }
0x15dc   :  { %v3784_v27 = vadd.f32 %v4384_v26, %v3974_v36  ;;  %v3778_v33 = vpop.f32.mrb[27].mxu0 }
0x15dd   :  { %v3779_v29 = vadd.f32 %v3974_v36, %v3778_v33 }
0x15de   :  { %v3788_v48 = vadd.f32 %v3784_v27, %v3595_v16 }
0x15df   :  { %v3787_v34 = vadd.f32 %v3779_v29, %v3594_v14 }
0x15e0   :  { %v3794_v42 = vsel %vm163_vm0, %v3788_v48, 0.0 }
0x15e1   :  { %3795 = vadd.xlane.f32.xlu1 %v3794_v42  ;;  %v3791_v35 = vsel %vm163_vm0, %v3787_v34, 0.0 }
0x15e2   :  { %3792 = vadd.xlane.f32.xlu0 %v3791_v35 }
0x166e   :  { %v3796_v37 = vpop.xlane.xlu1 %3795 }
0x166f   :  { %v3798_v38 = vmul.f32 0.03125, %v3796_v37  ;;  %v3793_v39 = vpop.xlane.xlu0 %3792 }
0x1670   :  { %v3797_v40 = vmul.f32 0.03125, %v3793_v39 }
0x1671   :  { %v3800_v46 = vsub.f32 %v3788_v48, %v3798_v38 }
0x1672   :  { %v3799_v41 = vsub.f32 %v3787_v34, %v3797_v40 }
0x1673   :  { %v3802_v44 = vmul.f32 %v3800_v46, %v3800_v46 }
0x1674   :  { %v3801_v45 = vmul.f32 %v3799_v41, %v3799_v41 }
0x1675   :  { %v3806_v47 = vsel %vm163_vm0, %v3802_v44, 0.0 }
0x1676   :  { %3807 = vadd.xlane.f32.xlu1 %v3806_v47  ;;  %v3803_v49 = vsel %vm163_vm0, %v3801_v45, 0.0 }
0x1677   :  { %3804 = vadd.xlane.f32.xlu0 %v3803_v49 }
0x1703   :  { %v3808_v50 = vpop.xlane.xlu1 %3807 }
0x1704   :  { %v3810_v51 = vmul.f32 0.03125, %v3808_v50  ;;  %v3805_v52 = vpop.xlane.xlu0 %3804 }
0x1705   :  { %v3809_v60 = vmul.f32 0.03125, %v3805_v52 }
0x1706   :  { %v3812_v59 = vadd.f32 1e-05, %v3810_v51 }
0x1707   :  { %v3811_v53 = vadd.f32 1e-05, %v3809_v60 }
0x1708   :  { %4603 = vrsqrt.f32 %v3812_v59 }
0x1709   :  { %4605 = vrsqrt.f32 %v3811_v53 }
0x1712   :  { %v4604_v54 = vpop.eup %4603 }
0x1713   :  { %v4606_v56 = vpop.eup %4605  ;;  %v3816_v57 = vmul.f32 %v4604_v54, %v3800_v46 }
0x1714   :  { %v3815_v0 = vmul.f32 %v4606_v56, %v3799_v41 }
0x1715   :  { %v3824_v2 = vmul.f32 %v3977_v55, %v3816_v57 }
0x1716   :  { %v3823_v6 = vmul.f32 %v3977_v55, %v3815_v0 }
0x1717   :  { %v3832_v8 = vadd.f32 %v3978_v58, %v3824_v2 }
0x1718   :  { %v3831_v17 = vadd.f32 %v3978_v58, %v3823_v6 }
0x1719   :  { %3834 = vst.msk [vmem:[%s3876_s13 + $0x8] sm:$0xff] %vm163_vm0, %v3832_v8 }
0x171a   :  { %3833 = vst.msk [vmem:[%s3876_s13] sm:$0xff] %vm163_vm0, %v3831_v17 }

</bundles_post_ra>
